<compile_context>
chip_gen: v7x
topology: tpu7x:2x2x1
jax: 0.10.0
libtpu: 0.0.40
codegen_flags: <defaults>
</compile_context>

<pallas_src>
import math

import jax
import jax.numpy as jnp
from jax.experimental import pallas as pl
from jax.experimental.pallas import tpu as pltpu

# ---- config (small shapes consistent with the module's forward) ----
B = 2            # batch
S = 8            # sequence length
H = 128          # hidden size (BERT uses 768; shrunk per small-shape instruction)
NH = 4           # attention heads
DH = H // NH     # head dim
I = 4 * H        # FFN intermediate
LAYERS = 2
VOCAB = 64
TYPE_VOCAB = 2
NUM_LABELS = 19  # matches torch.nn.Linear(768, 19) output dim
DROP_P = 0.3
LN_EPS = 1e-12
BS = B * S
LANE = 128       # lane-dense padding for the classifier output


# ----------------- shared in-kernel helpers -----------------
def _layer_norm(x, gamma, beta):
    mu = jnp.mean(x, axis=-1, keepdims=True)
    var = jnp.mean(jnp.square(x - mu), axis=-1, keepdims=True)
    return (x - mu) * jax.lax.rsqrt(var + LN_EPS) * gamma + beta


def _gelu(x):
    # TODO(synk): HF BERT default is erf-GELU; tanh approximation used for simple lowering.
    c = math.sqrt(2.0 / math.pi)
    return 0.5 * x * (1.0 + jnp.tanh(c * (x + 0.044715 * x * x * x)))


# ----------------- fused full-forward kernel -----------------
def bert_fused_kernel(x_ref, mask_ref, drop_ref, ge_ref, gb_ref,
                      wqkv_ref, bqkv_ref, wo_ref, bo_ref, g1_ref, b1n_ref,
                      w1_ref, b1_ref, w2_ref, b2_ref, g2_ref, b2n_ref,
                      pw_ref, pb_ref, cw_ref, cb_ref, o_ref):
    # ---- embedding LayerNorm (fused; was a separate pallas_call) ----
    x = _layer_norm(x_ref[...].astype(jnp.float32), ge_ref[...], gb_ref[...])   # (B*S, H)

    # additive attention mask broadcast in-kernel: (B, S) -> (B, 1, S)
    madd = mask_ref[...][:, None, :]

    scale = 1.0 / math.sqrt(DH)
    for l in range(LAYERS):                       # static unroll over encoder layers
        # fused QKV projection on all B*S rows at once (bf16 operands, fp32 accumulation)
        qkv = jnp.dot(x.astype(jnp.bfloat16), wqkv_ref[l],
                      preferred_element_type=jnp.float32) + bqkv_ref[l]          # (B*S, 3H)
        q = qkv[:, 0:H] * scale                   # scale folded into q once
        k = qkv[:, H:2 * H]
        v = qkv[:, 2 * H:3 * H]

        wo_l = wo_ref[l]                          # (H, H) bf16
        attn = jnp.zeros((BS, H), jnp.float32)
        for h in range(NH):                       # heads: batched over B inside each einsum
            qh = q[:, h * DH:(h + 1) * DH].reshape(B, S, DH)
            kh = k[:, h * DH:(h + 1) * DH].reshape(B, S, DH)
            vh = v[:, h * DH:(h + 1) * DH].reshape(B, S, DH)
            s = jnp.einsum('bqd,bkd->bqk', qh, kh,
                           preferred_element_type=jnp.float32) + madd            # (B, S, S)
            s = s - jnp.max(s, axis=-1, keepdims=True)
            p = jnp.exp(s)
            # NOTE: plain divide kept (pl.reciprocal has no interpret-mode lowering).
            p = p / jnp.sum(p, axis=-1, keepdims=True)
            ctx = jnp.einsum('bqk,bkd->bqd', p, vh,
                             preferred_element_type=jnp.float32)                 # (B, S, DH)
            # accumulate per-head output projection instead of a lane concat
            attn = attn + jnp.dot(ctx.reshape(BS, DH).astype(jnp.bfloat16),
                                  wo_l[h * DH:(h + 1) * DH, :],
                                  preferred_element_type=jnp.float32)
        attn = attn + bo_ref[l]
        h1 = _layer_norm(x + attn, g1_ref[l], b1n_ref[l])

        ff = jnp.dot(h1.astype(jnp.bfloat16), w1_ref[l],
                     preferred_element_type=jnp.float32) + b1_ref[l]
        ff = _gelu(ff)
        y = jnp.dot(ff.astype(jnp.bfloat16), w2_ref[l],
                    preferred_element_type=jnp.float32) + b2_ref[l]
        x = _layer_norm(h1 + y, g2_ref[l], b2n_ref[l])

    # ---- pooler -> dropout -> classifier ([CLS] = row 0 of every sample) ----
    cls = x.reshape(B, S, H)[:, 0, :]                                             # (B, H)
    pooled = jnp.tanh(jnp.dot(cls.astype(jnp.bfloat16), pw_ref[...],
                              preferred_element_type=jnp.float32) + pb_ref[...])
    dropped = pooled * drop_ref[...]      # pre-scaled keep mask (inverted dropout, p=0.3)
    logits = jnp.dot(dropped.astype(jnp.bfloat16), cw_ref[...],
                     preferred_element_type=jnp.float32) + cb_ref[...]            # (B, 128)
    o_ref[...] = logits.astype(o_ref.dtype)


# ----------------- wrapper -----------------
def bert_class_forward(params, input_ids, attn_mask, token_type_ids, dropout_key):
    # embeddings (lookup/sum = glue); LayerNorm happens inside the fused kernel
    emb = (params["word_emb"][input_ids]
           + params["pos_emb"][jnp.arange(S)][None, :, :]
           + params["type_emb"][token_type_ids])                       # (B, S, H)
    x_emb = emb.reshape(BS, H)

    # additive attention mask, (B, S); broadcast to (B, 1, S) inside the kernel
    mask_add = (1.0 - attn_mask.astype(jnp.float32)) * -1e9

    # dropout keep mask drawn host-side with jax.random (portable to interpret mode),
    # pre-scaled by 1/(1-p) so the kernel just multiplies.
    keep = jax.random.bernoulli(dropout_key, 1.0 - DROP_P, (B, H))
    drop_mask = keep.astype(jnp.float32) / (1.0 - DROP_P)

    vmem = pl.BlockSpec(memory_space=pltpu.MemorySpace.VMEM)
    args = (x_emb, mask_add, drop_mask,
            params["emb_ln_g"], params["emb_ln_b"],
            params["wqkv"], params["bqkv"], params["wo"], params["bo"],
            params["ln1_g"], params["ln1_b"],
            params["w1"], params["b1"], params["w2"], params["b2"],
            params["ln2_g"], params["ln2_b"],
            params["pool_w"], params["pool_b"],
            params["cls_w"], params["cls_b"])

    # Single fused pallas_call: no grid, everything resident in VMEM (~1 MB total).
    # TODO(synk): at real BERT sizes (H=768, 12 layers) switch to grid=(LAYERS,) over the
    # stacked weights (resident activation scratch) and bf16/tiled FFN weights so the
    # design survives v7x's 64 MiB VMEM; a 2-way parallel axis would then feed both v7x TCs.
    logits_pad = pl.pallas_call(
        bert_fused_kernel,
        out_shape=jax.ShapeDtypeStruct((B, LANE), jnp.float32),
        in_specs=[vmem] * len(args),
        out_specs=vmem,
    )(*args)
    return logits_pad[:, :NUM_LABELS]                                  # (B, 19)


# ----------------- parameters (deterministic, synthetic) -----------------
def init_params(key):
    def nrm(k, shape, scale=0.02, dtype=jnp.float32):
        return (scale * jax.random.normal(k, shape, jnp.float32)).astype(dtype)

    keys = iter(jax.random.split(key, 32))
    p = {
        "word_emb": nrm(next(keys), (VOCAB, H)),
        "pos_emb": nrm(next(keys), (S, H)),
        "type_emb": nrm(next(keys), (TYPE_VOCAB, H)),
        "emb_ln_g": jnp.ones((1, H), jnp.float32),
        "emb_ln_b": jnp.zeros((1, H), jnp.float32),
        # stacked per-layer weights: matmul weights bf16 (MXU-native), biases/LN fp32
        "wqkv": nrm(next(keys), (LAYERS, H, 3 * H), dtype=jnp.bfloat16),
        "bqkv": jnp.zeros((LAYERS, 1, 3 * H), jnp.float32),
        "wo":   nrm(next(keys), (LAYERS, H, H), dtype=jnp.bfloat16),
        "bo":   jnp.zeros((LAYERS, 1, H), jnp.float32),
        "ln1_g": jnp.ones((LAYERS, 1, H), jnp.float32),
        "ln1_b": jnp.zeros((LAYERS, 1, H), jnp.float32),
        "w1":   nrm(next(keys), (LAYERS, H, I), dtype=jnp.bfloat16),
        "b1":   jnp.zeros((LAYERS, 1, I), jnp.float32),
        "w2":   nrm(next(keys), (LAYERS, I, H), dtype=jnp.bfloat16),
        "b2":   jnp.zeros((LAYERS, 1, H), jnp.float32),
        "ln2_g": jnp.ones((LAYERS, 1, H), jnp.float32),
        "ln2_b": jnp.zeros((LAYERS, 1, H), jnp.float32),
        "pool_w": nrm(next(keys), (H, H), dtype=jnp.bfloat16),
        "pool_b": jnp.zeros((1, H), jnp.float32),
    }
    # classifier (H -> 19) zero-padded to 128 output lanes for a lane-dense store
    cls_w = nrm(next(keys), (H, NUM_LABELS))
    p["cls_w"] = (jnp.zeros((H, LANE), jnp.float32)
                  .at[:, :NUM_LABELS].set(cls_w).astype(jnp.bfloat16))
    p["cls_b"] = jnp.zeros((1, LANE), jnp.float32)
    return p


if __name__ == "__main__":
    key = jax.random.PRNGKey(0)
    k_param, k_ids, k_types, k_drop = jax.random.split(key, 4)

    params = init_params(k_param)

    input_ids = jax.random.randint(k_ids, (B, S), 0, VOCAB, dtype=jnp.int32)
    attn_mask = jnp.ones((B, S), jnp.int32).at[1, -2:].set(0)   # pad last 2 tokens of sample 1
    token_type_ids = jax.random.randint(k_types, (B, S), 0, TYPE_VOCAB, dtype=jnp.int32)

    logits = bert_class_forward(params, input_ids, attn_mask, token_type_ids, k_drop)
    jax.block_until_ready(logits)
    assert logits.shape == (B, NUM_LABELS) and logits.dtype == jnp.float32
    print("KERNEL_OK")
</pallas_src>

<mosaic_0001>
module attributes {stable_mosaic.version = 11 : i64} {
  func.func @bert_fused_kernel(%arg0: memref<16x128xf32, #tpu.memory_space<vmem>>, %arg1: memref<2x8xf32, #tpu.memory_space<vmem>>, %arg2: memref<2x128xf32, #tpu.memory_space<vmem>>, %arg3: memref<1x128xf32, #tpu.memory_space<vmem>>, %arg4: memref<1x128xf32, #tpu.memory_space<vmem>>, %arg5: memref<2x128x384xbf16, #tpu.memory_space<vmem>>, %arg6: memref<2x1x384xf32, #tpu.memory_space<vmem>>, %arg7: memref<2x128x128xbf16, #tpu.memory_space<vmem>>, %arg8: memref<2x1x128xf32, #tpu.memory_space<vmem>>, %arg9: memref<2x1x128xf32, #tpu.memory_space<vmem>>, %arg10: memref<2x1x128xf32, #tpu.memory_space<vmem>>, %arg11: memref<2x128x512xbf16, #tpu.memory_space<vmem>>, %arg12: memref<2x1x512xf32, #tpu.memory_space<vmem>>, %arg13: memref<2x512x128xbf16, #tpu.memory_space<vmem>>, %arg14: memref<2x1x128xf32, #tpu.memory_space<vmem>>, %arg15: memref<2x1x128xf32, #tpu.memory_space<vmem>>, %arg16: memref<2x1x128xf32, #tpu.memory_space<vmem>>, %arg17: memref<128x128xbf16, #tpu.memory_space<vmem>>, %arg18: memref<1x128xf32, #tpu.memory_space<vmem>>, %arg19: memref<128x128xbf16, #tpu.memory_space<vmem>>, %arg20: memref<1x128xf32, #tpu.memory_space<vmem>>, %arg21: memref<2x128xf32, #tpu.memory_space<vmem>>) attributes {dimension_semantics = [], scalar_prefetch = 0 : i64, scratch_operands = 0 : i64, tpu.core_type = #tpu.core_type<tc>} {
    %c0 = arith.constant 0 : index
    %c0_0 = arith.constant 0 : index
    %0 = vector.load %arg0[%c0, %c0_0] : memref<16x128xf32, #tpu.memory_space<vmem>>, vector<16x128xf32>
    %c0_1 = arith.constant 0 : index
    %c0_2 = arith.constant 0 : index
    %1 = vector.load %arg3[%c0_1, %c0_2] : memref<1x128xf32, #tpu.memory_space<vmem>>, vector<1x128xf32>
    %c0_3 = arith.constant 0 : index
    %c0_4 = arith.constant 0 : index
    %2 = vector.load %arg4[%c0_3, %c0_4] : memref<1x128xf32, #tpu.memory_space<vmem>>, vector<1x128xf32>
    %cst = arith.constant dense<0.000000e+00> : vector<16xf32>
    %3 = vector.multi_reduction <add>, %0, %cst [1] : vector<16x128xf32> to vector<16xf32>
    %4 = vector.shape_cast %3 : vector<16xf32> to vector<16x1xf32>
    %cst_5 = arith.constant 1.280000e+02 : f32
    %5 = vector.broadcast %cst_5 : f32 to vector<16x1xf32>
    %6 = arith.divf %4, %5 : vector<16x1xf32>
    %7 = vector.broadcast %6 : vector<16x1xf32> to vector<16x128xf32>
    %8 = arith.subf %0, %7 : vector<16x128xf32>
    %9 = arith.mulf %8, %8 : vector<16x128xf32>
    %cst_6 = arith.constant dense<0.000000e+00> : vector<16xf32>
    %10 = vector.multi_reduction <add>, %9, %cst_6 [1] : vector<16x128xf32> to vector<16xf32>
    %11 = vector.shape_cast %10 : vector<16xf32> to vector<16x1xf32>
    %cst_7 = arith.constant 1.280000e+02 : f32
    %12 = vector.broadcast %cst_7 : f32 to vector<16x1xf32>
    %13 = arith.divf %11, %12 : vector<16x1xf32>
    %14 = vector.broadcast %6 : vector<16x1xf32> to vector<16x128xf32>
    %15 = arith.subf %0, %14 : vector<16x128xf32>
    %cst_8 = arith.constant 9.99999996E-13 : f32
    %16 = vector.broadcast %cst_8 : f32 to vector<16x1xf32>
    %17 = arith.addf %13, %16 : vector<16x1xf32>
    %18 = math.rsqrt %17 : vector<16x1xf32>
    %19 = vector.broadcast %18 : vector<16x1xf32> to vector<16x128xf32>
    %20 = arith.mulf %15, %19 : vector<16x128xf32>
    %21 = vector.broadcast %1 : vector<1x128xf32> to vector<16x128xf32>
    %22 = arith.mulf %20, %21 : vector<16x128xf32>
    %23 = vector.broadcast %2 : vector<1x128xf32> to vector<16x128xf32>
    %24 = arith.addf %22, %23 : vector<16x128xf32>
    %c0_9 = arith.constant 0 : index
    %c0_10 = arith.constant 0 : index
    %25 = vector.load %arg1[%c0_9, %c0_10] : memref<2x8xf32, #tpu.memory_space<vmem>>, vector<2x8xf32>
    %26 = vector.shape_cast %25 : vector<2x8xf32> to vector<2x1x8xf32>
    %27 = arith.truncf %24 : vector<16x128xf32> to vector<16x128xbf16>
    %c0_11 = arith.constant 0 : index
    %c0_12 = arith.constant 0 : index
    %c0_13 = arith.constant 0 : index
    %28 = vector.load %arg5[%c0_11, %c0_12, %c0_13] : memref<2x128x384xbf16, #tpu.memory_space<vmem>>, vector<1x128x384xbf16>
    %29 = vector.shape_cast %28 : vector<1x128x384xbf16> to vector<128x384xbf16>
    %cst_14 = arith.constant dense<0.000000e+00> : vector<16x384xf32>
    %30 = tpu.matmul %27, %29, %cst_14 {dimension_numbers = #tpu.dot_dimension_numbers<[1], [0], [0], [1], [0, 0, 1, 1], [], []>} : vector<16x128xbf16>, vector<128x384xbf16>, vector<16x384xf32> -> vector<16x384xf32>
    %c0_15 = arith.constant 0 : index
    %c0_16 = arith.constant 0 : index
    %c0_17 = arith.constant 0 : index
    %31 = vector.load %arg6[%c0_15, %c0_16, %c0_17] : memref<2x1x384xf32, #tpu.memory_space<vmem>>, vector<1x1x384xf32>
    %32 = vector.shape_cast %31 : vector<1x1x384xf32> to vector<1x384xf32>
    %33 = vector.broadcast %32 : vector<1x384xf32> to vector<16x384xf32>
    %34 = arith.addf %30, %33 : vector<16x384xf32>
    %35 = vector.extract_strided_slice %34 {offsets = [0, 0], sizes = [16, 128], strides = [1, 1]} : vector<16x384xf32> to vector<16x128xf32>
    %cst_18 = arith.constant 0.176776692 : f32
    %36 = vector.broadcast %cst_18 : f32 to vector<16x128xf32>
    %37 = arith.mulf %35, %36 : vector<16x128xf32>
    %38 = vector.extract_strided_slice %34 {offsets = [0, 128], sizes = [16, 128], strides = [1, 1]} : vector<16x384xf32> to vector<16x128xf32>
    %39 = vector.extract_strided_slice %34 {offsets = [0, 256], sizes = [16, 128], strides = [1, 1]} : vector<16x384xf32> to vector<16x128xf32>
    %c0_19 = arith.constant 0 : index
    %c0_20 = arith.constant 0 : index
    %c0_21 = arith.constant 0 : index
    %40 = vector.load %arg7[%c0_19, %c0_20, %c0_21] : memref<2x128x128xbf16, #tpu.memory_space<vmem>>, vector<1x128x128xbf16>
    %41 = vector.shape_cast %40 : vector<1x128x128xbf16> to vector<128x128xbf16>
    %cst_22 = arith.constant 0.000000e+00 : f32
    %42 = vector.broadcast %cst_22 : f32 to vector<16x128xf32>
    %43 = vector.extract_strided_slice %37 {offsets = [0, 0], sizes = [16, 32], strides = [1, 1]} : vector<16x128xf32> to vector<16x32xf32>
    %44 = vector.shape_cast %43 : vector<16x32xf32> to vector<2x8x32xf32>
    %45 = vector.extract_strided_slice %38 {offsets = [0, 0], sizes = [16, 32], strides = [1, 1]} : vector<16x128xf32> to vector<16x32xf32>
    %46 = vector.shape_cast %45 : vector<16x32xf32> to vector<2x8x32xf32>
    %47 = vector.extract_strided_slice %39 {offsets = [0, 0], sizes = [16, 32], strides = [1, 1]} : vector<16x128xf32> to vector<16x32xf32>
    %48 = vector.shape_cast %47 : vector<16x32xf32> to vector<2x8x32xf32>
    "tpu.trace_start"() <{level = 10 : i32, message = "bqd,bkd->bqk"}> : () -> ()
    %cst_23 = arith.constant dense<0.000000e+00> : vector<2x8x8xf32>
    %49 = tpu.matmul %44, %46, %cst_23 {dimension_numbers = #tpu.dot_dimension_numbers<[2], [2], [1], [1], [0, 0, 0, 1, 1, 1], [0], [0]>} : vector<2x8x32xf32>, vector<2x8x32xf32>, vector<2x8x8xf32> -> vector<2x8x8xf32>
    "tpu.trace_stop"() : () -> ()
    %50 = vector.broadcast %26 : vector<2x1x8xf32> to vector<2x8x8xf32>
    %51 = arith.addf %49, %50 : vector<2x8x8xf32>
    %cst_24 = arith.constant dense<0xFF800000> : vector<2x8xf32>
    %52 = vector.multi_reduction <maximumf>, %51, %cst_24 [2] : vector<2x8x8xf32> to vector<2x8xf32>
    %53 = vector.shape_cast %52 : vector<2x8xf32> to vector<2x8x1xf32>
    %54 = vector.broadcast %53 : vector<2x8x1xf32> to vector<2x8x8xf32>
    %55 = arith.subf %51, %54 : vector<2x8x8xf32>
    %56 = math.exp %55 : vector<2x8x8xf32>
    %cst_25 = arith.constant dense<0.000000e+00> : vector<2x8xf32>
    %57 = vector.multi_reduction <add>, %56, %cst_25 [2] : vector<2x8x8xf32> to vector<2x8xf32>
    %58 = vector.shape_cast %57 : vector<2x8xf32> to vector<2x8x1xf32>
    %59 = vector.broadcast %58 : vector<2x8x1xf32> to vector<2x8x8xf32>
    %60 = arith.divf %56, %59 : vector<2x8x8xf32>
    "tpu.trace_start"() <{level = 10 : i32, message = "bqk,bkd->bqd"}> : () -> ()
    %cst_26 = arith.constant dense<0.000000e+00> : vector<2x8x32xf32>
    %61 = tpu.matmul %60, %48, %cst_26 {dimension_numbers = #tpu.dot_dimension_numbers<[2], [1], [1], [2], [0, 0, 0, 1, 1, 2], [0], [0]>} : vector<2x8x8xf32>, vector<2x8x32xf32>, vector<2x8x32xf32> -> vector<2x8x32xf32>
    "tpu.trace_stop"() : () -> ()
    %62 = vector.shape_cast %61 : vector<2x8x32xf32> to vector<16x32xf32>
    %63 = arith.truncf %62 : vector<16x32xf32> to vector<16x32xbf16>
    %64 = vector.extract_strided_slice %41 {offsets = [0, 0], sizes = [32, 128], strides = [1, 1]} : vector<128x128xbf16> to vector<32x128xbf16>
    %cst_27 = arith.constant dense<0.000000e+00> : vector<16x128xf32>
    %65 = tpu.matmul %63, %64, %cst_27 {dimension_numbers = #tpu.dot_dimension_numbers<[1], [0], [0], [1], [0, 0, 1, 1], [], []>} : vector<16x32xbf16>, vector<32x128xbf16>, vector<16x128xf32> -> vector<16x128xf32>
    %66 = arith.addf %42, %65 : vector<16x128xf32>
    %67 = vector.extract_strided_slice %37 {offsets = [0, 32], sizes = [16, 32], strides = [1, 1]} : vector<16x128xf32> to vector<16x32xf32>
    %68 = vector.shape_cast %67 : vector<16x32xf32> to vector<2x8x32xf32>
    %69 = vector.extract_strided_slice %38 {offsets = [0, 32], sizes = [16, 32], strides = [1, 1]} : vector<16x128xf32> to vector<16x32xf32>
    %70 = vector.shape_cast %69 : vector<16x32xf32> to vector<2x8x32xf32>
    %71 = vector.extract_strided_slice %39 {offsets = [0, 32], sizes = [16, 32], strides = [1, 1]} : vector<16x128xf32> to vector<16x32xf32>
    %72 = vector.shape_cast %71 : vector<16x32xf32> to vector<2x8x32xf32>
    "tpu.trace_start"() <{level = 10 : i32, message = "bqd,bkd->bqk"}> : () -> ()
    %cst_28 = arith.constant dense<0.000000e+00> : vector<2x8x8xf32>
    %73 = tpu.matmul %68, %70, %cst_28 {dimension_numbers = #tpu.dot_dimension_numbers<[2], [2], [1], [1], [0, 0, 0, 1, 1, 1], [0], [0]>} : vector<2x8x32xf32>, vector<2x8x32xf32>, vector<2x8x8xf32> -> vector<2x8x8xf32>
    "tpu.trace_stop"() : () -> ()
    %74 = vector.broadcast %26 : vector<2x1x8xf32> to vector<2x8x8xf32>
    %75 = arith.addf %73, %74 : vector<2x8x8xf32>
    %cst_29 = arith.constant dense<0xFF800000> : vector<2x8xf32>
    %76 = vector.multi_reduction <maximumf>, %75, %cst_29 [2] : vector<2x8x8xf32> to vector<2x8xf32>
    %77 = vector.shape_cast %76 : vector<2x8xf32> to vector<2x8x1xf32>
    %78 = vector.broadcast %77 : vector<2x8x1xf32> to vector<2x8x8xf32>
    %79 = arith.subf %75, %78 : vector<2x8x8xf32>
    %80 = math.exp %79 : vector<2x8x8xf32>
    %cst_30 = arith.constant dense<0.000000e+00> : vector<2x8xf32>
    %81 = vector.multi_reduction <add>, %80, %cst_30 [2] : vector<2x8x8xf32> to vector<2x8xf32>
    %82 = vector.shape_cast %81 : vector<2x8xf32> to vector<2x8x1xf32>
    %83 = vector.broadcast %82 : vector<2x8x1xf32> to vector<2x8x8xf32>
    %84 = arith.divf %80, %83 : vector<2x8x8xf32>
    "tpu.trace_start"() <{level = 10 : i32, message = "bqk,bkd->bqd"}> : () -> ()
    %cst_31 = arith.constant dense<0.000000e+00> : vector<2x8x32xf32>
    %85 = tpu.matmul %84, %72, %cst_31 {dimension_numbers = #tpu.dot_dimension_numbers<[2], [1], [1], [2], [0, 0, 0, 1, 1, 2], [0], [0]>} : vector<2x8x8xf32>, vector<2x8x32xf32>, vector<2x8x32xf32> -> vector<2x8x32xf32>
    "tpu.trace_stop"() : () -> ()
    %86 = vector.shape_cast %85 : vector<2x8x32xf32> to vector<16x32xf32>
    %87 = arith.truncf %86 : vector<16x32xf32> to vector<16x32xbf16>
    %88 = vector.extract_strided_slice %41 {offsets = [32, 0], sizes = [32, 128], strides = [1, 1]} : vector<128x128xbf16> to vector<32x128xbf16>
    %cst_32 = arith.constant dense<0.000000e+00> : vector<16x128xf32>
    %89 = tpu.matmul %87, %88, %cst_32 {dimension_numbers = #tpu.dot_dimension_numbers<[1], [0], [0], [1], [0, 0, 1, 1], [], []>} : vector<16x32xbf16>, vector<32x128xbf16>, vector<16x128xf32> -> vector<16x128xf32>
    %90 = arith.addf %66, %89 : vector<16x128xf32>
    %91 = vector.extract_strided_slice %37 {offsets = [0, 64], sizes = [16, 32], strides = [1, 1]} : vector<16x128xf32> to vector<16x32xf32>
    %92 = vector.shape_cast %91 : vector<16x32xf32> to vector<2x8x32xf32>
    %93 = vector.extract_strided_slice %38 {offsets = [0, 64], sizes = [16, 32], strides = [1, 1]} : vector<16x128xf32> to vector<16x32xf32>
    %94 = vector.shape_cast %93 : vector<16x32xf32> to vector<2x8x32xf32>
    %95 = vector.extract_strided_slice %39 {offsets = [0, 64], sizes = [16, 32], strides = [1, 1]} : vector<16x128xf32> to vector<16x32xf32>
    %96 = vector.shape_cast %95 : vector<16x32xf32> to vector<2x8x32xf32>
    "tpu.trace_start"() <{level = 10 : i32, message = "bqd,bkd->bqk"}> : () -> ()
    %cst_33 = arith.constant dense<0.000000e+00> : vector<2x8x8xf32>
    %97 = tpu.matmul %92, %94, %cst_33 {dimension_numbers = #tpu.dot_dimension_numbers<[2], [2], [1], [1], [0, 0, 0, 1, 1, 1], [0], [0]>} : vector<2x8x32xf32>, vector<2x8x32xf32>, vector<2x8x8xf32> -> vector<2x8x8xf32>
    "tpu.trace_stop"() : () -> ()
    %98 = vector.broadcast %26 : vector<2x1x8xf32> to vector<2x8x8xf32>
    %99 = arith.addf %97, %98 : vector<2x8x8xf32>
    %cst_34 = arith.constant dense<0xFF800000> : vector<2x8xf32>
    %100 = vector.multi_reduction <maximumf>, %99, %cst_34 [2] : vector<2x8x8xf32> to vector<2x8xf32>
    %101 = vector.shape_cast %100 : vector<2x8xf32> to vector<2x8x1xf32>
    %102 = vector.broadcast %101 : vector<2x8x1xf32> to vector<2x8x8xf32>
    %103 = arith.subf %99, %102 : vector<2x8x8xf32>
    %104 = math.exp %103 : vector<2x8x8xf32>
    %cst_35 = arith.constant dense<0.000000e+00> : vector<2x8xf32>
    %105 = vector.multi_reduction <add>, %104, %cst_35 [2] : vector<2x8x8xf32> to vector<2x8xf32>
    %106 = vector.shape_cast %105 : vector<2x8xf32> to vector<2x8x1xf32>
    %107 = vector.broadcast %106 : vector<2x8x1xf32> to vector<2x8x8xf32>
    %108 = arith.divf %104, %107 : vector<2x8x8xf32>
    "tpu.trace_start"() <{level = 10 : i32, message = "bqk,bkd->bqd"}> : () -> ()
    %cst_36 = arith.constant dense<0.000000e+00> : vector<2x8x32xf32>
    %109 = tpu.matmul %108, %96, %cst_36 {dimension_numbers = #tpu.dot_dimension_numbers<[2], [1], [1], [2], [0, 0, 0, 1, 1, 2], [0], [0]>} : vector<2x8x8xf32>, vector<2x8x32xf32>, vector<2x8x32xf32> -> vector<2x8x32xf32>
    "tpu.trace_stop"() : () -> ()
    %110 = vector.shape_cast %109 : vector<2x8x32xf32> to vector<16x32xf32>
    %111 = arith.truncf %110 : vector<16x32xf32> to vector<16x32xbf16>
    %112 = vector.extract_strided_slice %41 {offsets = [64, 0], sizes = [32, 128], strides = [1, 1]} : vector<128x128xbf16> to vector<32x128xbf16>
    %cst_37 = arith.constant dense<0.000000e+00> : vector<16x128xf32>
    %113 = tpu.matmul %111, %112, %cst_37 {dimension_numbers = #tpu.dot_dimension_numbers<[1], [0], [0], [1], [0, 0, 1, 1], [], []>} : vector<16x32xbf16>, vector<32x128xbf16>, vector<16x128xf32> -> vector<16x128xf32>
    %114 = arith.addf %90, %113 : vector<16x128xf32>
    %115 = vector.extract_strided_slice %37 {offsets = [0, 96], sizes = [16, 32], strides = [1, 1]} : vector<16x128xf32> to vector<16x32xf32>
    %116 = vector.shape_cast %115 : vector<16x32xf32> to vector<2x8x32xf32>
    %117 = vector.extract_strided_slice %38 {offsets = [0, 96], sizes = [16, 32], strides = [1, 1]} : vector<16x128xf32> to vector<16x32xf32>
    %118 = vector.shape_cast %117 : vector<16x32xf32> to vector<2x8x32xf32>
    %119 = vector.extract_strided_slice %39 {offsets = [0, 96], sizes = [16, 32], strides = [1, 1]} : vector<16x128xf32> to vector<16x32xf32>
    %120 = vector.shape_cast %119 : vector<16x32xf32> to vector<2x8x32xf32>
    "tpu.trace_start"() <{level = 10 : i32, message = "bqd,bkd->bqk"}> : () -> ()
    %cst_38 = arith.constant dense<0.000000e+00> : vector<2x8x8xf32>
    %121 = tpu.matmul %116, %118, %cst_38 {dimension_numbers = #tpu.dot_dimension_numbers<[2], [2], [1], [1], [0, 0, 0, 1, 1, 1], [0], [0]>} : vector<2x8x32xf32>, vector<2x8x32xf32>, vector<2x8x8xf32> -> vector<2x8x8xf32>
    "tpu.trace_stop"() : () -> ()
    %122 = vector.broadcast %26 : vector<2x1x8xf32> to vector<2x8x8xf32>
    %123 = arith.addf %121, %122 : vector<2x8x8xf32>
    %cst_39 = arith.constant dense<0xFF800000> : vector<2x8xf32>
    %124 = vector.multi_reduction <maximumf>, %123, %cst_39 [2] : vector<2x8x8xf32> to vector<2x8xf32>
    %125 = vector.shape_cast %124 : vector<2x8xf32> to vector<2x8x1xf32>
    %126 = vector.broadcast %125 : vector<2x8x1xf32> to vector<2x8x8xf32>
    %127 = arith.subf %123, %126 : vector<2x8x8xf32>
    %128 = math.exp %127 : vector<2x8x8xf32>
    %cst_40 = arith.constant dense<0.000000e+00> : vector<2x8xf32>
    %129 = vector.multi_reduction <add>, %128, %cst_40 [2] : vector<2x8x8xf32> to vector<2x8xf32>
    %130 = vector.shape_cast %129 : vector<2x8xf32> to vector<2x8x1xf32>
    %131 = vector.broadcast %130 : vector<2x8x1xf32> to vector<2x8x8xf32>
    %132 = arith.divf %128, %131 : vector<2x8x8xf32>
    "tpu.trace_start"() <{level = 10 : i32, message = "bqk,bkd->bqd"}> : () -> ()
    %cst_41 = arith.constant dense<0.000000e+00> : vector<2x8x32xf32>
    %133 = tpu.matmul %132, %120, %cst_41 {dimension_numbers = #tpu.dot_dimension_numbers<[2], [1], [1], [2], [0, 0, 0, 1, 1, 2], [0], [0]>} : vector<2x8x8xf32>, vector<2x8x32xf32>, vector<2x8x32xf32> -> vector<2x8x32xf32>
    "tpu.trace_stop"() : () -> ()
    %134 = vector.shape_cast %133 : vector<2x8x32xf32> to vector<16x32xf32>
    %135 = arith.truncf %134 : vector<16x32xf32> to vector<16x32xbf16>
    %136 = vector.extract_strided_slice %41 {offsets = [96, 0], sizes = [32, 128], strides = [1, 1]} : vector<128x128xbf16> to vector<32x128xbf16>
    %cst_42 = arith.constant dense<0.000000e+00> : vector<16x128xf32>
    %137 = tpu.matmul %135, %136, %cst_42 {dimension_numbers = #tpu.dot_dimension_numbers<[1], [0], [0], [1], [0, 0, 1, 1], [], []>} : vector<16x32xbf16>, vector<32x128xbf16>, vector<16x128xf32> -> vector<16x128xf32>
    %138 = arith.addf %114, %137 : vector<16x128xf32>
    %c0_43 = arith.constant 0 : index
    %c0_44 = arith.constant 0 : index
    %c0_45 = arith.constant 0 : index
    %139 = vector.load %arg8[%c0_43, %c0_44, %c0_45] : memref<2x1x128xf32, #tpu.memory_space<vmem>>, vector<1x1x128xf32>
    %140 = vector.shape_cast %139 : vector<1x1x128xf32> to vector<1x128xf32>
    %141 = vector.broadcast %140 : vector<1x128xf32> to vector<16x128xf32>
    %142 = arith.addf %138, %141 : vector<16x128xf32>
    %143 = arith.addf %24, %142 : vector<16x128xf32>
    %c0_46 = arith.constant 0 : index
    %c0_47 = arith.constant 0 : index
    %c0_48 = arith.constant 0 : index
    %144 = vector.load %arg9[%c0_46, %c0_47, %c0_48] : memref<2x1x128xf32, #tpu.memory_space<vmem>>, vector<1x1x128xf32>
    %145 = vector.shape_cast %144 : vector<1x1x128xf32> to vector<1x128xf32>
    %c0_49 = arith.constant 0 : index
    %c0_50 = arith.constant 0 : index
    %c0_51 = arith.constant 0 : index
    %146 = vector.load %arg10[%c0_49, %c0_50, %c0_51] : memref<2x1x128xf32, #tpu.memory_space<vmem>>, vector<1x1x128xf32>
    %147 = vector.shape_cast %146 : vector<1x1x128xf32> to vector<1x128xf32>
    %cst_52 = arith.constant dense<0.000000e+00> : vector<16xf32>
    %148 = vector.multi_reduction <add>, %143, %cst_52 [1] : vector<16x128xf32> to vector<16xf32>
    %149 = vector.shape_cast %148 : vector<16xf32> to vector<16x1xf32>
    %cst_53 = arith.constant 1.280000e+02 : f32
    %150 = vector.broadcast %cst_53 : f32 to vector<16x1xf32>
    %151 = arith.divf %149, %150 : vector<16x1xf32>
    %152 = vector.broadcast %151 : vector<16x1xf32> to vector<16x128xf32>
    %153 = arith.subf %143, %152 : vector<16x128xf32>
    %154 = arith.mulf %153, %153 : vector<16x128xf32>
    %cst_54 = arith.constant dense<0.000000e+00> : vector<16xf32>
    %155 = vector.multi_reduction <add>, %154, %cst_54 [1] : vector<16x128xf32> to vector<16xf32>
    %156 = vector.shape_cast %155 : vector<16xf32> to vector<16x1xf32>
    %cst_55 = arith.constant 1.280000e+02 : f32
    %157 = vector.broadcast %cst_55 : f32 to vector<16x1xf32>
    %158 = arith.divf %156, %157 : vector<16x1xf32>
    %159 = vector.broadcast %151 : vector<16x1xf32> to vector<16x128xf32>
    %160 = arith.subf %143, %159 : vector<16x128xf32>
    %cst_56 = arith.constant 9.99999996E-13 : f32
    %161 = vector.broadcast %cst_56 : f32 to vector<16x1xf32>
    %162 = arith.addf %158, %161 : vector<16x1xf32>
    %163 = math.rsqrt %162 : vector<16x1xf32>
    %164 = vector.broadcast %163 : vector<16x1xf32> to vector<16x128xf32>
    %165 = arith.mulf %160, %164 : vector<16x128xf32>
    %166 = vector.broadcast %145 : vector<1x128xf32> to vector<16x128xf32>
    %167 = arith.mulf %165, %166 : vector<16x128xf32>
    %168 = vector.broadcast %147 : vector<1x128xf32> to vector<16x128xf32>
    %169 = arith.addf %167, %168 : vector<16x128xf32>
    %170 = arith.truncf %169 : vector<16x128xf32> to vector<16x128xbf16>
    %c0_57 = arith.constant 0 : index
    %c0_58 = arith.constant 0 : index
    %c0_59 = arith.constant 0 : index
    %171 = vector.load %arg11[%c0_57, %c0_58, %c0_59] : memref<2x128x512xbf16, #tpu.memory_space<vmem>>, vector<1x128x512xbf16>
    %172 = vector.shape_cast %171 : vector<1x128x512xbf16> to vector<128x512xbf16>
    %cst_60 = arith.constant dense<0.000000e+00> : vector<16x512xf32>
    %173 = tpu.matmul %170, %172, %cst_60 {dimension_numbers = #tpu.dot_dimension_numbers<[1], [0], [0], [1], [0, 0, 1, 1], [], []>} : vector<16x128xbf16>, vector<128x512xbf16>, vector<16x512xf32> -> vector<16x512xf32>
    %c0_61 = arith.constant 0 : index
    %c0_62 = arith.constant 0 : index
    %c0_63 = arith.constant 0 : index
    %174 = vector.load %arg12[%c0_61, %c0_62, %c0_63] : memref<2x1x512xf32, #tpu.memory_space<vmem>>, vector<1x1x512xf32>
    %175 = vector.shape_cast %174 : vector<1x1x512xf32> to vector<1x512xf32>
    %176 = vector.broadcast %175 : vector<1x512xf32> to vector<16x512xf32>
    %177 = arith.addf %173, %176 : vector<16x512xf32>
    %cst_64 = arith.constant 5.000000e-01 : f32
    %178 = vector.broadcast %cst_64 : f32 to vector<16x512xf32>
    %179 = arith.mulf %178, %177 : vector<16x512xf32>
    %cst_65 = arith.constant 4.471500e-02 : f32
    %180 = vector.broadcast %cst_65 : f32 to vector<16x512xf32>
    %181 = arith.mulf %180, %177 : vector<16x512xf32>
    %182 = arith.mulf %181, %177 : vector<16x512xf32>
    %183 = arith.mulf %182, %177 : vector<16x512xf32>
    %184 = arith.addf %177, %183 : vector<16x512xf32>
    %cst_66 = arith.constant 0.797884583 : f32
    %185 = vector.broadcast %cst_66 : f32 to vector<16x512xf32>
    %186 = arith.mulf %185, %184 : vector<16x512xf32>
    %187 = math.tanh %186 : vector<16x512xf32>
    %cst_67 = arith.constant 1.000000e+00 : f32
    %188 = vector.broadcast %cst_67 : f32 to vector<16x512xf32>
    %189 = arith.addf %188, %187 : vector<16x512xf32>
    %190 = arith.mulf %179, %189 : vector<16x512xf32>
    %191 = arith.truncf %190 : vector<16x512xf32> to vector<16x512xbf16>
    %c0_68 = arith.constant 0 : index
    %c0_69 = arith.constant 0 : index
    %c0_70 = arith.constant 0 : index
    %192 = vector.load %arg13[%c0_68, %c0_69, %c0_70] : memref<2x512x128xbf16, #tpu.memory_space<vmem>>, vector<1x512x128xbf16>
    %193 = vector.shape_cast %192 : vector<1x512x128xbf16> to vector<512x128xbf16>
    %cst_71 = arith.constant dense<0.000000e+00> : vector<16x128xf32>
    %194 = tpu.matmul %191, %193, %cst_71 {dimension_numbers = #tpu.dot_dimension_numbers<[1], [0], [0], [1], [0, 0, 1, 1], [], []>} : vector<16x512xbf16>, vector<512x128xbf16>, vector<16x128xf32> -> vector<16x128xf32>
    %c0_72 = arith.constant 0 : index
    %c0_73 = arith.constant 0 : index
    %c0_74 = arith.constant 0 : index
    %195 = vector.load %arg14[%c0_72, %c0_73, %c0_74] : memref<2x1x128xf32, #tpu.memory_space<vmem>>, vector<1x1x128xf32>
    %196 = vector.shape_cast %195 : vector<1x1x128xf32> to vector<1x128xf32>
    %197 = vector.broadcast %196 : vector<1x128xf32> to vector<16x128xf32>
    %198 = arith.addf %194, %197 : vector<16x128xf32>
    %199 = arith.addf %169, %198 : vector<16x128xf32>
    %c0_75 = arith.constant 0 : index
    %c0_76 = arith.constant 0 : index
    %c0_77 = arith.constant 0 : index
    %200 = vector.load %arg15[%c0_75, %c0_76, %c0_77] : memref<2x1x128xf32, #tpu.memory_space<vmem>>, vector<1x1x128xf32>
    %201 = vector.shape_cast %200 : vector<1x1x128xf32> to vector<1x128xf32>
    %c0_78 = arith.constant 0 : index
    %c0_79 = arith.constant 0 : index
    %c0_80 = arith.constant 0 : index
    %202 = vector.load %arg16[%c0_78, %c0_79, %c0_80] : memref<2x1x128xf32, #tpu.memory_space<vmem>>, vector<1x1x128xf32>
    %203 = vector.shape_cast %202 : vector<1x1x128xf32> to vector<1x128xf32>
    %cst_81 = arith.constant dense<0.000000e+00> : vector<16xf32>
    %204 = vector.multi_reduction <add>, %199, %cst_81 [1] : vector<16x128xf32> to vector<16xf32>
    %205 = vector.shape_cast %204 : vector<16xf32> to vector<16x1xf32>
    %cst_82 = arith.constant 1.280000e+02 : f32
    %206 = vector.broadcast %cst_82 : f32 to vector<16x1xf32>
    %207 = arith.divf %205, %206 : vector<16x1xf32>
    %208 = vector.broadcast %207 : vector<16x1xf32> to vector<16x128xf32>
    %209 = arith.subf %199, %208 : vector<16x128xf32>
    %210 = arith.mulf %209, %209 : vector<16x128xf32>
    %cst_83 = arith.constant dense<0.000000e+00> : vector<16xf32>
    %211 = vector.multi_reduction <add>, %210, %cst_83 [1] : vector<16x128xf32> to vector<16xf32>
    %212 = vector.shape_cast %211 : vector<16xf32> to vector<16x1xf32>
    %cst_84 = arith.constant 1.280000e+02 : f32
    %213 = vector.broadcast %cst_84 : f32 to vector<16x1xf32>
    %214 = arith.divf %212, %213 : vector<16x1xf32>
    %215 = vector.broadcast %207 : vector<16x1xf32> to vector<16x128xf32>
    %216 = arith.subf %199, %215 : vector<16x128xf32>
    %cst_85 = arith.constant 9.99999996E-13 : f32
    %217 = vector.broadcast %cst_85 : f32 to vector<16x1xf32>
    %218 = arith.addf %214, %217 : vector<16x1xf32>
    %219 = math.rsqrt %218 : vector<16x1xf32>
    %220 = vector.broadcast %219 : vector<16x1xf32> to vector<16x128xf32>
    %221 = arith.mulf %216, %220 : vector<16x128xf32>
    %222 = vector.broadcast %201 : vector<1x128xf32> to vector<16x128xf32>
    %223 = arith.mulf %221, %222 : vector<16x128xf32>
    %224 = vector.broadcast %203 : vector<1x128xf32> to vector<16x128xf32>
    %225 = arith.addf %223, %224 : vector<16x128xf32>
    %226 = arith.truncf %225 : vector<16x128xf32> to vector<16x128xbf16>
    %c1 = arith.constant 1 : index
    %c0_86 = arith.constant 0 : index
    %c0_87 = arith.constant 0 : index
    %227 = vector.load %arg5[%c1, %c0_86, %c0_87] : memref<2x128x384xbf16, #tpu.memory_space<vmem>>, vector<1x128x384xbf16>
    %228 = vector.shape_cast %227 : vector<1x128x384xbf16> to vector<128x384xbf16>
    %cst_88 = arith.constant dense<0.000000e+00> : vector<16x384xf32>
    %229 = tpu.matmul %226, %228, %cst_88 {dimension_numbers = #tpu.dot_dimension_numbers<[1], [0], [0], [1], [0, 0, 1, 1], [], []>} : vector<16x128xbf16>, vector<128x384xbf16>, vector<16x384xf32> -> vector<16x384xf32>
    %c1_89 = arith.constant 1 : index
    %c0_90 = arith.constant 0 : index
    %c0_91 = arith.constant 0 : index
    %230 = vector.load %arg6[%c1_89, %c0_90, %c0_91] : memref<2x1x384xf32, #tpu.memory_space<vmem>>, vector<1x1x384xf32>
    %231 = vector.shape_cast %230 : vector<1x1x384xf32> to vector<1x384xf32>
    %232 = vector.broadcast %231 : vector<1x384xf32> to vector<16x384xf32>
    %233 = arith.addf %229, %232 : vector<16x384xf32>
    %234 = vector.extract_strided_slice %233 {offsets = [0, 0], sizes = [16, 128], strides = [1, 1]} : vector<16x384xf32> to vector<16x128xf32>
    %cst_92 = arith.constant 0.176776692 : f32
    %235 = vector.broadcast %cst_92 : f32 to vector<16x128xf32>
    %236 = arith.mulf %234, %235 : vector<16x128xf32>
    %237 = vector.extract_strided_slice %233 {offsets = [0, 128], sizes = [16, 128], strides = [1, 1]} : vector<16x384xf32> to vector<16x128xf32>
    %238 = vector.extract_strided_slice %233 {offsets = [0, 256], sizes = [16, 128], strides = [1, 1]} : vector<16x384xf32> to vector<16x128xf32>
    %c1_93 = arith.constant 1 : index
    %c0_94 = arith.constant 0 : index
    %c0_95 = arith.constant 0 : index
    %239 = vector.load %arg7[%c1_93, %c0_94, %c0_95] : memref<2x128x128xbf16, #tpu.memory_space<vmem>>, vector<1x128x128xbf16>
    %240 = vector.shape_cast %239 : vector<1x128x128xbf16> to vector<128x128xbf16>
    %cst_96 = arith.constant 0.000000e+00 : f32
    %241 = vector.broadcast %cst_96 : f32 to vector<16x128xf32>
    %242 = vector.extract_strided_slice %236 {offsets = [0, 0], sizes = [16, 32], strides = [1, 1]} : vector<16x128xf32> to vector<16x32xf32>
    %243 = vector.shape_cast %242 : vector<16x32xf32> to vector<2x8x32xf32>
    %244 = vector.extract_strided_slice %237 {offsets = [0, 0], sizes = [16, 32], strides = [1, 1]} : vector<16x128xf32> to vector<16x32xf32>
    %245 = vector.shape_cast %244 : vector<16x32xf32> to vector<2x8x32xf32>
    %246 = vector.extract_strided_slice %238 {offsets = [0, 0], sizes = [16, 32], strides = [1, 1]} : vector<16x128xf32> to vector<16x32xf32>
    %247 = vector.shape_cast %246 : vector<16x32xf32> to vector<2x8x32xf32>
    "tpu.trace_start"() <{level = 10 : i32, message = "bqd,bkd->bqk"}> : () -> ()
    %cst_97 = arith.constant dense<0.000000e+00> : vector<2x8x8xf32>
    %248 = tpu.matmul %243, %245, %cst_97 {dimension_numbers = #tpu.dot_dimension_numbers<[2], [2], [1], [1], [0, 0, 0, 1, 1, 1], [0], [0]>} : vector<2x8x32xf32>, vector<2x8x32xf32>, vector<2x8x8xf32> -> vector<2x8x8xf32>
    "tpu.trace_stop"() : () -> ()
    %249 = vector.broadcast %26 : vector<2x1x8xf32> to vector<2x8x8xf32>
    %250 = arith.addf %248, %249 : vector<2x8x8xf32>
    %cst_98 = arith.constant dense<0xFF800000> : vector<2x8xf32>
    %251 = vector.multi_reduction <maximumf>, %250, %cst_98 [2] : vector<2x8x8xf32> to vector<2x8xf32>
    %252 = vector.shape_cast %251 : vector<2x8xf32> to vector<2x8x1xf32>
    %253 = vector.broadcast %252 : vector<2x8x1xf32> to vector<2x8x8xf32>
    %254 = arith.subf %250, %253 : vector<2x8x8xf32>
    %255 = math.exp %254 : vector<2x8x8xf32>
    %cst_99 = arith.constant dense<0.000000e+00> : vector<2x8xf32>
    %256 = vector.multi_reduction <add>, %255, %cst_99 [2] : vector<2x8x8xf32> to vector<2x8xf32>
    %257 = vector.shape_cast %256 : vector<2x8xf32> to vector<2x8x1xf32>
    %258 = vector.broadcast %257 : vector<2x8x1xf32> to vector<2x8x8xf32>
    %259 = arith.divf %255, %258 : vector<2x8x8xf32>
    "tpu.trace_start"() <{level = 10 : i32, message = "bqk,bkd->bqd"}> : () -> ()
    %cst_100 = arith.constant dense<0.000000e+00> : vector<2x8x32xf32>
    %260 = tpu.matmul %259, %247, %cst_100 {dimension_numbers = #tpu.dot_dimension_numbers<[2], [1], [1], [2], [0, 0, 0, 1, 1, 2], [0], [0]>} : vector<2x8x8xf32>, vector<2x8x32xf32>, vector<2x8x32xf32> -> vector<2x8x32xf32>
    "tpu.trace_stop"() : () -> ()
    %261 = vector.shape_cast %260 : vector<2x8x32xf32> to vector<16x32xf32>
    %262 = arith.truncf %261 : vector<16x32xf32> to vector<16x32xbf16>
    %263 = vector.extract_strided_slice %240 {offsets = [0, 0], sizes = [32, 128], strides = [1, 1]} : vector<128x128xbf16> to vector<32x128xbf16>
    %cst_101 = arith.constant dense<0.000000e+00> : vector<16x128xf32>
    %264 = tpu.matmul %262, %263, %cst_101 {dimension_numbers = #tpu.dot_dimension_numbers<[1], [0], [0], [1], [0, 0, 1, 1], [], []>} : vector<16x32xbf16>, vector<32x128xbf16>, vector<16x128xf32> -> vector<16x128xf32>
    %265 = arith.addf %241, %264 : vector<16x128xf32>
    %266 = vector.extract_strided_slice %236 {offsets = [0, 32], sizes = [16, 32], strides = [1, 1]} : vector<16x128xf32> to vector<16x32xf32>
    %267 = vector.shape_cast %266 : vector<16x32xf32> to vector<2x8x32xf32>
    %268 = vector.extract_strided_slice %237 {offsets = [0, 32], sizes = [16, 32], strides = [1, 1]} : vector<16x128xf32> to vector<16x32xf32>
    %269 = vector.shape_cast %268 : vector<16x32xf32> to vector<2x8x32xf32>
    %270 = vector.extract_strided_slice %238 {offsets = [0, 32], sizes = [16, 32], strides = [1, 1]} : vector<16x128xf32> to vector<16x32xf32>
    %271 = vector.shape_cast %270 : vector<16x32xf32> to vector<2x8x32xf32>
    "tpu.trace_start"() <{level = 10 : i32, message = "bqd,bkd->bqk"}> : () -> ()
    %cst_102 = arith.constant dense<0.000000e+00> : vector<2x8x8xf32>
    %272 = tpu.matmul %267, %269, %cst_102 {dimension_numbers = #tpu.dot_dimension_numbers<[2], [2], [1], [1], [0, 0, 0, 1, 1, 1], [0], [0]>} : vector<2x8x32xf32>, vector<2x8x32xf32>, vector<2x8x8xf32> -> vector<2x8x8xf32>
    "tpu.trace_stop"() : () -> ()
    %273 = vector.broadcast %26 : vector<2x1x8xf32> to vector<2x8x8xf32>
    %274 = arith.addf %272, %273 : vector<2x8x8xf32>
    %cst_103 = arith.constant dense<0xFF800000> : vector<2x8xf32>
    %275 = vector.multi_reduction <maximumf>, %274, %cst_103 [2] : vector<2x8x8xf32> to vector<2x8xf32>
    %276 = vector.shape_cast %275 : vector<2x8xf32> to vector<2x8x1xf32>
    %277 = vector.broadcast %276 : vector<2x8x1xf32> to vector<2x8x8xf32>
    %278 = arith.subf %274, %277 : vector<2x8x8xf32>
    %279 = math.exp %278 : vector<2x8x8xf32>
    %cst_104 = arith.constant dense<0.000000e+00> : vector<2x8xf32>
    %280 = vector.multi_reduction <add>, %279, %cst_104 [2] : vector<2x8x8xf32> to vector<2x8xf32>
    %281 = vector.shape_cast %280 : vector<2x8xf32> to vector<2x8x1xf32>
    %282 = vector.broadcast %281 : vector<2x8x1xf32> to vector<2x8x8xf32>
    %283 = arith.divf %279, %282 : vector<2x8x8xf32>
    "tpu.trace_start"() <{level = 10 : i32, message = "bqk,bkd->bqd"}> : () -> ()
    %cst_105 = arith.constant dense<0.000000e+00> : vector<2x8x32xf32>
    %284 = tpu.matmul %283, %271, %cst_105 {dimension_numbers = #tpu.dot_dimension_numbers<[2], [1], [1], [2], [0, 0, 0, 1, 1, 2], [0], [0]>} : vector<2x8x8xf32>, vector<2x8x32xf32>, vector<2x8x32xf32> -> vector<2x8x32xf32>
    "tpu.trace_stop"() : () -> ()
    %285 = vector.shape_cast %284 : vector<2x8x32xf32> to vector<16x32xf32>
    %286 = arith.truncf %285 : vector<16x32xf32> to vector<16x32xbf16>
    %287 = vector.extract_strided_slice %240 {offsets = [32, 0], sizes = [32, 128], strides = [1, 1]} : vector<128x128xbf16> to vector<32x128xbf16>
    %cst_106 = arith.constant dense<0.000000e+00> : vector<16x128xf32>
    %288 = tpu.matmul %286, %287, %cst_106 {dimension_numbers = #tpu.dot_dimension_numbers<[1], [0], [0], [1], [0, 0, 1, 1], [], []>} : vector<16x32xbf16>, vector<32x128xbf16>, vector<16x128xf32> -> vector<16x128xf32>
    %289 = arith.addf %265, %288 : vector<16x128xf32>
    %290 = vector.extract_strided_slice %236 {offsets = [0, 64], sizes = [16, 32], strides = [1, 1]} : vector<16x128xf32> to vector<16x32xf32>
    %291 = vector.shape_cast %290 : vector<16x32xf32> to vector<2x8x32xf32>
    %292 = vector.extract_strided_slice %237 {offsets = [0, 64], sizes = [16, 32], strides = [1, 1]} : vector<16x128xf32> to vector<16x32xf32>
    %293 = vector.shape_cast %292 : vector<16x32xf32> to vector<2x8x32xf32>
    %294 = vector.extract_strided_slice %238 {offsets = [0, 64], sizes = [16, 32], strides = [1, 1]} : vector<16x128xf32> to vector<16x32xf32>
    %295 = vector.shape_cast %294 : vector<16x32xf32> to vector<2x8x32xf32>
    "tpu.trace_start"() <{level = 10 : i32, message = "bqd,bkd->bqk"}> : () -> ()
    %cst_107 = arith.constant dense<0.000000e+00> : vector<2x8x8xf32>
    %296 = tpu.matmul %291, %293, %cst_107 {dimension_numbers = #tpu.dot_dimension_numbers<[2], [2], [1], [1], [0, 0, 0, 1, 1, 1], [0], [0]>} : vector<2x8x32xf32>, vector<2x8x32xf32>, vector<2x8x8xf32> -> vector<2x8x8xf32>
    "tpu.trace_stop"() : () -> ()
    %297 = vector.broadcast %26 : vector<2x1x8xf32> to vector<2x8x8xf32>
    %298 = arith.addf %296, %297 : vector<2x8x8xf32>
    %cst_108 = arith.constant dense<0xFF800000> : vector<2x8xf32>
    %299 = vector.multi_reduction <maximumf>, %298, %cst_108 [2] : vector<2x8x8xf32> to vector<2x8xf32>
    %300 = vector.shape_cast %299 : vector<2x8xf32> to vector<2x8x1xf32>
    %301 = vector.broadcast %300 : vector<2x8x1xf32> to vector<2x8x8xf32>
    %302 = arith.subf %298, %301 : vector<2x8x8xf32>
    %303 = math.exp %302 : vector<2x8x8xf32>
    %cst_109 = arith.constant dense<0.000000e+00> : vector<2x8xf32>
    %304 = vector.multi_reduction <add>, %303, %cst_109 [2] : vector<2x8x8xf32> to vector<2x8xf32>
    %305 = vector.shape_cast %304 : vector<2x8xf32> to vector<2x8x1xf32>
    %306 = vector.broadcast %305 : vector<2x8x1xf32> to vector<2x8x8xf32>
    %307 = arith.divf %303, %306 : vector<2x8x8xf32>
    "tpu.trace_start"() <{level = 10 : i32, message = "bqk,bkd->bqd"}> : () -> ()
    %cst_110 = arith.constant dense<0.000000e+00> : vector<2x8x32xf32>
    %308 = tpu.matmul %307, %295, %cst_110 {dimension_numbers = #tpu.dot_dimension_numbers<[2], [1], [1], [2], [0, 0, 0, 1, 1, 2], [0], [0]>} : vector<2x8x8xf32>, vector<2x8x32xf32>, vector<2x8x32xf32> -> vector<2x8x32xf32>
    "tpu.trace_stop"() : () -> ()
    %309 = vector.shape_cast %308 : vector<2x8x32xf32> to vector<16x32xf32>
    %310 = arith.truncf %309 : vector<16x32xf32> to vector<16x32xbf16>
    %311 = vector.extract_strided_slice %240 {offsets = [64, 0], sizes = [32, 128], strides = [1, 1]} : vector<128x128xbf16> to vector<32x128xbf16>
    %cst_111 = arith.constant dense<0.000000e+00> : vector<16x128xf32>
    %312 = tpu.matmul %310, %311, %cst_111 {dimension_numbers = #tpu.dot_dimension_numbers<[1], [0], [0], [1], [0, 0, 1, 1], [], []>} : vector<16x32xbf16>, vector<32x128xbf16>, vector<16x128xf32> -> vector<16x128xf32>
    %313 = arith.addf %289, %312 : vector<16x128xf32>
    %314 = vector.extract_strided_slice %236 {offsets = [0, 96], sizes = [16, 32], strides = [1, 1]} : vector<16x128xf32> to vector<16x32xf32>
    %315 = vector.shape_cast %314 : vector<16x32xf32> to vector<2x8x32xf32>
    %316 = vector.extract_strided_slice %237 {offsets = [0, 96], sizes = [16, 32], strides = [1, 1]} : vector<16x128xf32> to vector<16x32xf32>
    %317 = vector.shape_cast %316 : vector<16x32xf32> to vector<2x8x32xf32>
    %318 = vector.extract_strided_slice %238 {offsets = [0, 96], sizes = [16, 32], strides = [1, 1]} : vector<16x128xf32> to vector<16x32xf32>
    %319 = vector.shape_cast %318 : vector<16x32xf32> to vector<2x8x32xf32>
    "tpu.trace_start"() <{level = 10 : i32, message = "bqd,bkd->bqk"}> : () -> ()
    %cst_112 = arith.constant dense<0.000000e+00> : vector<2x8x8xf32>
    %320 = tpu.matmul %315, %317, %cst_112 {dimension_numbers = #tpu.dot_dimension_numbers<[2], [2], [1], [1], [0, 0, 0, 1, 1, 1], [0], [0]>} : vector<2x8x32xf32>, vector<2x8x32xf32>, vector<2x8x8xf32> -> vector<2x8x8xf32>
    "tpu.trace_stop"() : () -> ()
    %321 = vector.broadcast %26 : vector<2x1x8xf32> to vector<2x8x8xf32>
    %322 = arith.addf %320, %321 : vector<2x8x8xf32>
    %cst_113 = arith.constant dense<0xFF800000> : vector<2x8xf32>
    %323 = vector.multi_reduction <maximumf>, %322, %cst_113 [2] : vector<2x8x8xf32> to vector<2x8xf32>
    %324 = vector.shape_cast %323 : vector<2x8xf32> to vector<2x8x1xf32>
    %325 = vector.broadcast %324 : vector<2x8x1xf32> to vector<2x8x8xf32>
    %326 = arith.subf %322, %325 : vector<2x8x8xf32>
    %327 = math.exp %326 : vector<2x8x8xf32>
    %cst_114 = arith.constant dense<0.000000e+00> : vector<2x8xf32>
    %328 = vector.multi_reduction <add>, %327, %cst_114 [2] : vector<2x8x8xf32> to vector<2x8xf32>
    %329 = vector.shape_cast %328 : vector<2x8xf32> to vector<2x8x1xf32>
    %330 = vector.broadcast %329 : vector<2x8x1xf32> to vector<2x8x8xf32>
    %331 = arith.divf %327, %330 : vector<2x8x8xf32>
    "tpu.trace_start"() <{level = 10 : i32, message = "bqk,bkd->bqd"}> : () -> ()
    %cst_115 = arith.constant dense<0.000000e+00> : vector<2x8x32xf32>
    %332 = tpu.matmul %331, %319, %cst_115 {dimension_numbers = #tpu.dot_dimension_numbers<[2], [1], [1], [2], [0, 0, 0, 1, 1, 2], [0], [0]>} : vector<2x8x8xf32>, vector<2x8x32xf32>, vector<2x8x32xf32> -> vector<2x8x32xf32>
    "tpu.trace_stop"() : () -> ()
    %333 = vector.shape_cast %332 : vector<2x8x32xf32> to vector<16x32xf32>
    %334 = arith.truncf %333 : vector<16x32xf32> to vector<16x32xbf16>
    %335 = vector.extract_strided_slice %240 {offsets = [96, 0], sizes = [32, 128], strides = [1, 1]} : vector<128x128xbf16> to vector<32x128xbf16>
    %cst_116 = arith.constant dense<0.000000e+00> : vector<16x128xf32>
    %336 = tpu.matmul %334, %335, %cst_116 {dimension_numbers = #tpu.dot_dimension_numbers<[1], [0], [0], [1], [0, 0, 1, 1], [], []>} : vector<16x32xbf16>, vector<32x128xbf16>, vector<16x128xf32> -> vector<16x128xf32>
    %337 = arith.addf %313, %336 : vector<16x128xf32>
    %c1_117 = arith.constant 1 : index
    %c0_118 = arith.constant 0 : index
    %c0_119 = arith.constant 0 : index
    %338 = vector.load %arg8[%c1_117, %c0_118, %c0_119] : memref<2x1x128xf32, #tpu.memory_space<vmem>>, vector<1x1x128xf32>
    %339 = vector.shape_cast %338 : vector<1x1x128xf32> to vector<1x128xf32>
    %340 = vector.broadcast %339 : vector<1x128xf32> to vector<16x128xf32>
    %341 = arith.addf %337, %340 : vector<16x128xf32>
    %342 = arith.addf %225, %341 : vector<16x128xf32>
    %c1_120 = arith.constant 1 : index
    %c0_121 = arith.constant 0 : index
    %c0_122 = arith.constant 0 : index
    %343 = vector.load %arg9[%c1_120, %c0_121, %c0_122] : memref<2x1x128xf32, #tpu.memory_space<vmem>>, vector<1x1x128xf32>
    %344 = vector.shape_cast %343 : vector<1x1x128xf32> to vector<1x128xf32>
    %c1_123 = arith.constant 1 : index
    %c0_124 = arith.constant 0 : index
    %c0_125 = arith.constant 0 : index
    %345 = vector.load %arg10[%c1_123, %c0_124, %c0_125] : memref<2x1x128xf32, #tpu.memory_space<vmem>>, vector<1x1x128xf32>
    %346 = vector.shape_cast %345 : vector<1x1x128xf32> to vector<1x128xf32>
    %cst_126 = arith.constant dense<0.000000e+00> : vector<16xf32>
    %347 = vector.multi_reduction <add>, %342, %cst_126 [1] : vector<16x128xf32> to vector<16xf32>
    %348 = vector.shape_cast %347 : vector<16xf32> to vector<16x1xf32>
    %cst_127 = arith.constant 1.280000e+02 : f32
    %349 = vector.broadcast %cst_127 : f32 to vector<16x1xf32>
    %350 = arith.divf %348, %349 : vector<16x1xf32>
    %351 = vector.broadcast %350 : vector<16x1xf32> to vector<16x128xf32>
    %352 = arith.subf %342, %351 : vector<16x128xf32>
    %353 = arith.mulf %352, %352 : vector<16x128xf32>
    %cst_128 = arith.constant dense<0.000000e+00> : vector<16xf32>
    %354 = vector.multi_reduction <add>, %353, %cst_128 [1] : vector<16x128xf32> to vector<16xf32>
    %355 = vector.shape_cast %354 : vector<16xf32> to vector<16x1xf32>
    %cst_129 = arith.constant 1.280000e+02 : f32
    %356 = vector.broadcast %cst_129 : f32 to vector<16x1xf32>
    %357 = arith.divf %355, %356 : vector<16x1xf32>
    %358 = vector.broadcast %350 : vector<16x1xf32> to vector<16x128xf32>
    %359 = arith.subf %342, %358 : vector<16x128xf32>
    %cst_130 = arith.constant 9.99999996E-13 : f32
    %360 = vector.broadcast %cst_130 : f32 to vector<16x1xf32>
    %361 = arith.addf %357, %360 : vector<16x1xf32>
    %362 = math.rsqrt %361 : vector<16x1xf32>
    %363 = vector.broadcast %362 : vector<16x1xf32> to vector<16x128xf32>
    %364 = arith.mulf %359, %363 : vector<16x128xf32>
    %365 = vector.broadcast %344 : vector<1x128xf32> to vector<16x128xf32>
    %366 = arith.mulf %364, %365 : vector<16x128xf32>
    %367 = vector.broadcast %346 : vector<1x128xf32> to vector<16x128xf32>
    %368 = arith.addf %366, %367 : vector<16x128xf32>
    %369 = arith.truncf %368 : vector<16x128xf32> to vector<16x128xbf16>
    %c1_131 = arith.constant 1 : index
    %c0_132 = arith.constant 0 : index
    %c0_133 = arith.constant 0 : index
    %370 = vector.load %arg11[%c1_131, %c0_132, %c0_133] : memref<2x128x512xbf16, #tpu.memory_space<vmem>>, vector<1x128x512xbf16>
    %371 = vector.shape_cast %370 : vector<1x128x512xbf16> to vector<128x512xbf16>
    %cst_134 = arith.constant dense<0.000000e+00> : vector<16x512xf32>
    %372 = tpu.matmul %369, %371, %cst_134 {dimension_numbers = #tpu.dot_dimension_numbers<[1], [0], [0], [1], [0, 0, 1, 1], [], []>} : vector<16x128xbf16>, vector<128x512xbf16>, vector<16x512xf32> -> vector<16x512xf32>
    %c1_135 = arith.constant 1 : index
    %c0_136 = arith.constant 0 : index
    %c0_137 = arith.constant 0 : index
    %373 = vector.load %arg12[%c1_135, %c0_136, %c0_137] : memref<2x1x512xf32, #tpu.memory_space<vmem>>, vector<1x1x512xf32>
    %374 = vector.shape_cast %373 : vector<1x1x512xf32> to vector<1x512xf32>
    %375 = vector.broadcast %374 : vector<1x512xf32> to vector<16x512xf32>
    %376 = arith.addf %372, %375 : vector<16x512xf32>
    %cst_138 = arith.constant 5.000000e-01 : f32
    %377 = vector.broadcast %cst_138 : f32 to vector<16x512xf32>
    %378 = arith.mulf %377, %376 : vector<16x512xf32>
    %cst_139 = arith.constant 4.471500e-02 : f32
    %379 = vector.broadcast %cst_139 : f32 to vector<16x512xf32>
    %380 = arith.mulf %379, %376 : vector<16x512xf32>
    %381 = arith.mulf %380, %376 : vector<16x512xf32>
    %382 = arith.mulf %381, %376 : vector<16x512xf32>
    %383 = arith.addf %376, %382 : vector<16x512xf32>
    %cst_140 = arith.constant 0.797884583 : f32
    %384 = vector.broadcast %cst_140 : f32 to vector<16x512xf32>
    %385 = arith.mulf %384, %383 : vector<16x512xf32>
    %386 = math.tanh %385 : vector<16x512xf32>
    %cst_141 = arith.constant 1.000000e+00 : f32
    %387 = vector.broadcast %cst_141 : f32 to vector<16x512xf32>
    %388 = arith.addf %387, %386 : vector<16x512xf32>
    %389 = arith.mulf %378, %388 : vector<16x512xf32>
    %390 = arith.truncf %389 : vector<16x512xf32> to vector<16x512xbf16>
    %c1_142 = arith.constant 1 : index
    %c0_143 = arith.constant 0 : index
    %c0_144 = arith.constant 0 : index
    %391 = vector.load %arg13[%c1_142, %c0_143, %c0_144] : memref<2x512x128xbf16, #tpu.memory_space<vmem>>, vector<1x512x128xbf16>
    %392 = vector.shape_cast %391 : vector<1x512x128xbf16> to vector<512x128xbf16>
    %cst_145 = arith.constant dense<0.000000e+00> : vector<16x128xf32>
    %393 = tpu.matmul %390, %392, %cst_145 {dimension_numbers = #tpu.dot_dimension_numbers<[1], [0], [0], [1], [0, 0, 1, 1], [], []>} : vector<16x512xbf16>, vector<512x128xbf16>, vector<16x128xf32> -> vector<16x128xf32>
    %c1_146 = arith.constant 1 : index
    %c0_147 = arith.constant 0 : index
    %c0_148 = arith.constant 0 : index
    %394 = vector.load %arg14[%c1_146, %c0_147, %c0_148] : memref<2x1x128xf32, #tpu.memory_space<vmem>>, vector<1x1x128xf32>
    %395 = vector.shape_cast %394 : vector<1x1x128xf32> to vector<1x128xf32>
    %396 = vector.broadcast %395 : vector<1x128xf32> to vector<16x128xf32>
    %397 = arith.addf %393, %396 : vector<16x128xf32>
    %398 = arith.addf %368, %397 : vector<16x128xf32>
    %c1_149 = arith.constant 1 : index
    %c0_150 = arith.constant 0 : index
    %c0_151 = arith.constant 0 : index
    %399 = vector.load %arg15[%c1_149, %c0_150, %c0_151] : memref<2x1x128xf32, #tpu.memory_space<vmem>>, vector<1x1x128xf32>
    %400 = vector.shape_cast %399 : vector<1x1x128xf32> to vector<1x128xf32>
    %c1_152 = arith.constant 1 : index
    %c0_153 = arith.constant 0 : index
    %c0_154 = arith.constant 0 : index
    %401 = vector.load %arg16[%c1_152, %c0_153, %c0_154] : memref<2x1x128xf32, #tpu.memory_space<vmem>>, vector<1x1x128xf32>
    %402 = vector.shape_cast %401 : vector<1x1x128xf32> to vector<1x128xf32>
    %cst_155 = arith.constant dense<0.000000e+00> : vector<16xf32>
    %403 = vector.multi_reduction <add>, %398, %cst_155 [1] : vector<16x128xf32> to vector<16xf32>
    %404 = vector.shape_cast %403 : vector<16xf32> to vector<16x1xf32>
    %cst_156 = arith.constant 1.280000e+02 : f32
    %405 = vector.broadcast %cst_156 : f32 to vector<16x1xf32>
    %406 = arith.divf %404, %405 : vector<16x1xf32>
    %407 = vector.broadcast %406 : vector<16x1xf32> to vector<16x128xf32>
    %408 = arith.subf %398, %407 : vector<16x128xf32>
    %409 = arith.mulf %408, %408 : vector<16x128xf32>
    %cst_157 = arith.constant dense<0.000000e+00> : vector<16xf32>
    %410 = vector.multi_reduction <add>, %409, %cst_157 [1] : vector<16x128xf32> to vector<16xf32>
    %411 = vector.shape_cast %410 : vector<16xf32> to vector<16x1xf32>
    %cst_158 = arith.constant 1.280000e+02 : f32
    %412 = vector.broadcast %cst_158 : f32 to vector<16x1xf32>
    %413 = arith.divf %411, %412 : vector<16x1xf32>
    %414 = vector.broadcast %406 : vector<16x1xf32> to vector<16x128xf32>
    %415 = arith.subf %398, %414 : vector<16x128xf32>
    %cst_159 = arith.constant 9.99999996E-13 : f32
    %416 = vector.broadcast %cst_159 : f32 to vector<16x1xf32>
    %417 = arith.addf %413, %416 : vector<16x1xf32>
    %418 = math.rsqrt %417 : vector<16x1xf32>
    %419 = vector.broadcast %418 : vector<16x1xf32> to vector<16x128xf32>
    %420 = arith.mulf %415, %419 : vector<16x128xf32>
    %421 = vector.broadcast %400 : vector<1x128xf32> to vector<16x128xf32>
    %422 = arith.mulf %420, %421 : vector<16x128xf32>
    %423 = vector.broadcast %402 : vector<1x128xf32> to vector<16x128xf32>
    %424 = arith.addf %422, %423 : vector<16x128xf32>
    %425 = vector.shape_cast %424 : vector<16x128xf32> to vector<2x8x128xf32>
    %426 = vector.extract_strided_slice %425 {offsets = [0, 0, 0], sizes = [2, 1, 128], strides = [1, 1, 1]} : vector<2x8x128xf32> to vector<2x1x128xf32>
    %427 = vector.shape_cast %426 : vector<2x1x128xf32> to vector<2x128xf32>
    %428 = arith.truncf %427 : vector<2x128xf32> to vector<2x128xbf16>
    %c0_160 = arith.constant 0 : index
    %c0_161 = arith.constant 0 : index
    %429 = vector.load %arg17[%c0_160, %c0_161] : memref<128x128xbf16, #tpu.memory_space<vmem>>, vector<128x128xbf16>
    %cst_162 = arith.constant dense<0.000000e+00> : vector<2x128xf32>
    %430 = tpu.matmul %428, %429, %cst_162 {dimension_numbers = #tpu.dot_dimension_numbers<[1], [0], [0], [1], [0, 0, 1, 1], [], []>} : vector<2x128xbf16>, vector<128x128xbf16>, vector<2x128xf32> -> vector<2x128xf32>
    %c0_163 = arith.constant 0 : index
    %c0_164 = arith.constant 0 : index
    %431 = vector.load %arg18[%c0_163, %c0_164] : memref<1x128xf32, #tpu.memory_space<vmem>>, vector<1x128xf32>
    %432 = vector.broadcast %431 : vector<1x128xf32> to vector<2x128xf32>
    %433 = arith.addf %430, %432 : vector<2x128xf32>
    %434 = math.tanh %433 : vector<2x128xf32>
    %c0_165 = arith.constant 0 : index
    %c0_166 = arith.constant 0 : index
    %435 = vector.load %arg2[%c0_165, %c0_166] : memref<2x128xf32, #tpu.memory_space<vmem>>, vector<2x128xf32>
    %436 = arith.mulf %434, %435 : vector<2x128xf32>
    %437 = arith.truncf %436 : vector<2x128xf32> to vector<2x128xbf16>
    %c0_167 = arith.constant 0 : index
    %c0_168 = arith.constant 0 : index
    %438 = vector.load %arg19[%c0_167, %c0_168] : memref<128x128xbf16, #tpu.memory_space<vmem>>, vector<128x128xbf16>
    %cst_169 = arith.constant dense<0.000000e+00> : vector<2x128xf32>
    %439 = tpu.matmul %437, %438, %cst_169 {dimension_numbers = #tpu.dot_dimension_numbers<[1], [0], [0], [1], [0, 0, 1, 1], [], []>} : vector<2x128xbf16>, vector<128x128xbf16>, vector<2x128xf32> -> vector<2x128xf32>
    %c0_170 = arith.constant 0 : index
    %c0_171 = arith.constant 0 : index
    %440 = vector.load %arg20[%c0_170, %c0_171] : memref<1x128xf32, #tpu.memory_space<vmem>>, vector<1x128xf32>
    %441 = vector.broadcast %440 : vector<1x128xf32> to vector<2x128xf32>
    %442 = arith.addf %439, %441 : vector<2x128xf32>
    %c0_172 = arith.constant 0 : index
    %c0_173 = arith.constant 0 : index
    %443 = vector.load %arg21[%c0_172, %c0_173] : memref<2x128xf32, #tpu.memory_space<vmem>>, vector<2x128xf32>
    tpu.vector_store %arg21[%c0_172, %c0_173], %442 {strides = array<i32>} : memref<2x128xf32, #tpu.memory_space<vmem>>, vector<2x128xf32>,
    return
  }
}

</mosaic_0001>

<bundles_post_ra>
// kernel: tpu_custom_call.1
= control target key start
LH: loop header
LB: loop body
LE: loop exit
PB: predicated region body
PF: predicated region fallthrough
CT: control target
= control target key end

     0   :  { %s8625_s0 = inlined_call_operand.hbm [shape: f32[16,128], index: 0, kind: input, shape index: {}]   ;;  %s8626_s1 = inlined_call_operand.hbm [shape: f32[2,8], index: 1, kind: input, shape index: {}]   ;;  %s8627_s2 = inlined_call_operand.hbm [shape: f32[2,128], index: 2, kind: input, shape index: {}]   ;;  %s8628_s3 = inlined_call_operand.hbm [shape: f32[1,128], index: 3, kind: input, shape index: {}]   ;;  %s8629_s4 = inlined_call_operand.hbm [shape: f32[1,128], index: 4, kind: input, shape index: {}]   ;;  %s8630_s5 = inlined_call_operand.hbm [shape: bf16[2,128,384], index: 5, kind: input, shape index: {}]   ;;  %s8631_s6 = inlined_call_operand.hbm [shape: f32[2,1,384], index: 6, kind: input, shape index: {}]   ;;  %s8632_s7 = inlined_call_operand.hbm [shape: bf16[2,128,128], index: 7, kind: input, shape index: {}]   ;;  %s8633_s8 = inlined_call_operand.hbm [shape: f32[2,1,128], index: 8, kind: input, shape index: {}]   ;;  %s8634_s9 = inlined_call_operand.hbm [shape: f32[2,1,128], index: 9, kind: input, shape index: {}]   ;;  %s8635_s10 = inlined_call_operand.hbm [shape: f32[2,1,128], index: 10, kind: input, shape index: {}]   ;;  %s8636_s11 = inlined_call_operand.hbm [shape: bf16[2,128,512], index: 11, kind: input, shape index: {}]   ;;  %s8637_s12 = inlined_call_operand.hbm [shape: f32[2,1,512], index: 12, kind: input, shape index: {}]   ;;  %s8638_s13 = inlined_call_operand.hbm [shape: bf16[2,512,128], index: 13, kind: input, shape index: {}]   ;;  %s8639_s14 = inlined_call_operand.hbm [shape: f32[2,1,128], index: 14, kind: input, shape index: {}]   ;;  %s8640_s15 = inlined_call_operand.hbm [shape: f32[2,1,128], index: 15, kind: input, shape index: {}]   ;;  %s8641_s16 = inlined_call_operand.hbm [shape: f32[2,1,128], index: 16, kind: input, shape index: {}]   ;;  %s8642_s17 = inlined_call_operand.vmem [shape: bf16[128,128], index: 17, kind: input, shape index: {}]   ;;  %s8643_s18 = inlined_call_operand.vmem [shape: f32[1,128], index: 18, kind: input, shape index: {}]   ;;  %s8644_s19 = inlined_call_operand.hbm [shape: bf16[128,128], index: 19, kind: input, shape index: {}]   ;;  %s8645_s20 = inlined_call_operand.vmem [shape: f32[1,128], index: 20, kind: input, shape index: {}]   ;;  %s8646_s21 = inlined_call_operand.hbm [shape: f32[2,128], index: 21, kind: output, shape index: {}]  }
   0x1   :  { %8658 = sst [smem:[#allocation43_spill]] %s8625_s0 }
   0x2   :  { %8659 = sst [smem:[#allocation44_spill]] %s8626_s1 }
   0x3   :  { %8660 = sst [smem:[#allocation45_spill]] %s8627_s2 }
   0x4   :  { %8661 = sst [smem:[#allocation46_spill]] %s8628_s3 }
   0x5   :  { %8662 = sst [smem:[#allocation47_spill]] %s8629_s4 }
   0x6   :  { %8663 = sst [smem:[#allocation48_spill]] %s8630_s5 }
   0x7   :  { %8664 = sst [smem:[#allocation49_spill]] %s8646_s21 }
   0x8   :  { %26 = vsyncpa [#allocation3], 0 }
   0x9   :  { %27 = vsyncpa [#allocation6], 0 }
   0xa   :  { %28 = vsyncpa [#allocation9], 0 }
   0xb   :  { %29 = vsyncpa [#allocation12], 0 }
   0xc   :  { %30 = vsyncpa [#allocation15], 0 }
   0xd   :  { %31 = vsyncpa [#allocation18], 0 }
   0xe   :  { %32 = vsyncpa [#allocation21], 0 }
   0xf   :  { %33 = vsyncpa [#allocation24], 0 }
  0x10   :  { %34 = vsyncpa [#allocation27], 0 }
  0x11   :  { %35 = vsyncpa [#allocation30], 0 }
  0x12   :  { %36 = vsyncpa [#allocation4], 0  ;;  %s7584_s2 = smov [#allocation5]   ;;  %s7585_s26 = smov [#allocation8]  }
  0x13   :  { %s55_s25 = sshll.u32 %s7584_s2, 4  ;;  %s75_s27 = sshll.u32 %s7585_s26, 4  ;;  %s56_s25 = int_to_ptr.vmem [resolvable:$true] %s55_s25  ;;  %s76_s27 = int_to_ptr.vmem [resolvable:$true] %s75_s27 }
  0x14   :  { %s8665_s29 = sld [smem:[#allocation44_spill]] }
  0x1a   :  { %s7144_s0 = scalar_lea.hbm %s8665_s29, 32 }
  0x1b   :  { %p7145_p0 = scmp.ne.s32.totalorder %s8665_s29, %s7144_s0  ;;  %p7148_p1 = scmp.lt.u32.totalorder %s7144_s0, %s8665_s29 }
  0x1d   :  { %p7150_p2 = pnand %p7148_p1, %p7145_p0 }
  0x1f   :  { %7153 = shalt.err (!%p7150_p2)
}
  0x20   :  { %s7154_s23 = scalar_lea.vmem %s56_s25, 32  ;;  %p7159_p4 = scmp.lt.s32.totalorder %s56_s25, %s56_s25 }
  0x21   :  { %p7155_p3 = scmp.ne.s32.totalorder %s56_s25, %s7154_s23  ;;  %p7160_p5 = scmp.lt.s32.totalorder %s7154_s23, %s7154_s23 }
  0x23   :  { %p7161_p6 = por %p7160_p5, %p7159_p4 }
  0x25   :  { %p7162_p7 = pnand %p7161_p6, %p7155_p3 }
  0x27   :  { %7165 = shalt.err (!%p7162_p7)
}
  0x28   :  { %58 = dma.hbm_to_vmem [thread:$0]  %s8665_s29, 32, %s56_s25, [#allocation6]  }
  0x29   :  { %s8666_s3 = sld [smem:[#allocation46_spill]] }
  0x2f   :  { %s7166_s28 = scalar_lea.hbm %s8666_s3, 16 }
  0x30   :  { %p7167_p8 = scmp.ne.s32.totalorder %s8666_s3, %s7166_s28  ;;  %p7170_p9 = scmp.lt.u32.totalorder %s7166_s28, %s8666_s3 }
  0x32   :  { %p7172_p10 = pnand %p7170_p9, %p7167_p8 }
  0x34   :  { %7175 = shalt.err (!%p7172_p10)
}
  0x35   :  { %s7176_s22 = scalar_lea.vmem %s76_s27, 16  ;;  %s7180_s23 = scalar_lea.vmem %s76_s27, 32 }
  0x36   :  { %p7177_p11 = scmp.ne.s32.totalorder %s76_s27, %s7176_s22  ;;  %p7181_p12 = scmp.lt.s32.totalorder %s76_s27, %s76_s27 }
  0x37   :  { %p7182_p13 = scmp.lt.s32.totalorder %s7180_s23, %s7176_s22 }
  0x39   :  { %p7183_p0 = por %p7182_p13, %p7181_p12 }
  0x3b   :  { %p7184_p1 = pnand %p7183_p0, %p7177_p11 }
  0x3d   :  { %7187 = shalt.err (!%p7184_p1)
}
  0x3e   :  { %78 = dma.hbm_to_vmem [thread:$0]  %s8666_s3, 16, %s76_s27, [#allocation9]  }
  0x3f   :  { %s7586_s1 = smov [#allocation11]   ;;  %s8667_s28 = sld [smem:[#allocation48_spill]] }
  0x40   :  { %s94_s24 = sshll.u32 %s7586_s1, 4  ;;  %s95_s24 = int_to_ptr.vmem [resolvable:$true] %s94_s24 }
  0x45   :  { %s7188_s4 = scalar_lea.hbm %s8667_s28, 6144 }
  0x46   :  { %p7189_p2 = scmp.ne.s32.totalorder %s8667_s28, %s7188_s4  ;;  %p7192_p3 = scmp.lt.u32.totalorder %s7188_s4, %s8667_s28 }
  0x48   :  { %p7194_p4 = pnand %p7192_p3, %p7189_p2 }
  0x4a   :  { %7197 = shalt.err (!%p7194_p4)
}
  0x4b   :  { %s7198_s23 = scalar_lea.vmem %s95_s24, 6144  ;;  %p7203_p6 = scmp.lt.s32.totalorder %s95_s24, %s95_s24 }
  0x4c   :  { %p7199_p5 = scmp.ne.s32.totalorder %s95_s24, %s7198_s23  ;;  %p7204_p7 = scmp.lt.s32.totalorder %s7198_s23, %s7198_s23 }
  0x4e   :  { %p7205_p8 = por %p7204_p7, %p7203_p6 }
  0x50   :  { %p7206_p9 = pnand %p7205_p8, %p7199_p5 }
  0x52   :  { %7209 = shalt.err (!%p7206_p9)
}
  0x53   :  { %s7587_s27 = smov 192   ;;  %s7588_s3 = smov 12  }
  0x54   :  { %100 = dma.hbm_to_vmem [thread:$0]  %s8667_s28, 6144, %s95_s24, [#allocation12], %s7587_s27, %s7587_s27, %s7588_s3  }
  0x55   :  { %s7589_s1 = smov [#allocation14]   ;;  %s7210_s30 = scalar_lea.hbm %s8632_s7, 2048 }
  0x56   :  { %s118_s2 = sshll.u32 %s7589_s1, 4  ;;  %p7211_p10 = scmp.ne.s32.totalorder %s8632_s7, %s7210_s30  ;;  %s119_s2 = int_to_ptr.vmem [resolvable:$true] %s118_s2 }
  0x57   :  { %p7214_p11 = scmp.lt.u32.totalorder %s7210_s30, %s8632_s7 }
  0x59   :  { %p7216_p12 = pnand %p7214_p11, %p7211_p10 }
  0x5b   :  { %7219 = shalt.err (!%p7216_p12)
}
  0x5c   :  { %s7220_s21 = scalar_lea.vmem %s119_s2, 2048  ;;  %p7225_p0 = scmp.lt.s32.totalorder %s119_s2, %s119_s2 }
  0x5d   :  { %p7221_p13 = scmp.ne.s32.totalorder %s119_s2, %s7220_s21  ;;  %p7226_p1 = scmp.lt.s32.totalorder %s7220_s21, %s7220_s21 }
  0x5f   :  { %p7227_p2 = por %p7226_p1, %p7225_p0 }
  0x61   :  { %p7228_p3 = pnand %p7227_p2, %p7221_p13 }
  0x63   :  { %7231 = shalt.err (!%p7228_p3)
}
  0x64   :  { %s8656_s24 = smov 64   ;;  %s7591_s28 = smov 4  }
  0x65   :  { %124 = dma.hbm_to_vmem [thread:$0]  %s8632_s7, 2048, %s119_s2, [#allocation15], %s8656_s24, %s8656_s24, %s7591_s28  }
  0x66   :  { %s7592_s25 = smov [#allocation17]   ;;  %s7593_s1 = smov [#allocation20]  }
  0x67   :  { %s142_s29 = sshll.u32 %s7592_s25, 4  ;;  %s166_s26 = sshll.u32 %s7593_s1, 4  ;;  %s143_s29 = int_to_ptr.vmem [resolvable:$true] %s142_s29  ;;  %s7781_s26 = int_to_ptr.vmem [resolvable:$true] %s166_s26 }
  0x68   :  { %s7232_s30 = scalar_lea.hbm %s8634_s9, 32 }
  0x69   :  { %p7233_p4 = scmp.ne.s32.totalorder %s8634_s9, %s7232_s30  ;;  %p7236_p5 = scmp.lt.u32.totalorder %s7232_s30, %s8634_s9 }
  0x6b   :  { %p7238_p6 = pnand %p7236_p5, %p7233_p4 }
  0x6d   :  { %7241 = shalt.err (!%p7238_p6)
}
  0x6e   :  { %s7242_s7 = scalar_lea.vmem %s143_s29, 32  ;;  %p7247_p8 = scmp.lt.s32.totalorder %s143_s29, %s143_s29 }
  0x6f   :  { %p7243_p7 = scmp.ne.s32.totalorder %s143_s29, %s7242_s7  ;;  %p7248_p9 = scmp.lt.s32.totalorder %s7242_s7, %s7242_s7 }
  0x71   :  { %p7249_p10 = por %p7248_p9, %p7247_p8 }
  0x73   :  { %p7250_p11 = pnand %p7249_p10, %p7243_p7 }
  0x75   :  { %7253 = shalt.err (!%p7250_p11)
}
  0x76   :  { %s7594_s2 = smov 16   ;;  %s8654_s27 = smov 1  }
  0x77   :  { %148 = dma.hbm_to_vmem [thread:$0]  %s8634_s9, 32, %s143_s29, [#allocation18], %s7594_s2, %s7594_s2, %s8654_s27  }
  0x78   :  { %s7254_s4 = scalar_lea.hbm %s8636_s11, 8192 }
  0x79   :  { %p7255_p12 = scmp.ne.s32.totalorder %s8636_s11, %s7254_s4  ;;  %p7258_p13 = scmp.lt.u32.totalorder %s7254_s4, %s8636_s11 }
  0x7b   :  { %p7260_p0 = pnand %p7258_p13, %p7255_p12 }
  0x7d   :  { %7263 = shalt.err (!%p7260_p0)
}
  0x7e   :  { %s7264_s23 = scalar_lea.vmem %s7781_s26, 8192  ;;  %p7269_p2 = scmp.lt.s32.totalorder %s7781_s26, %s7781_s26 }
  0x7f   :  { %p7265_p1 = scmp.ne.s32.totalorder %s7781_s26, %s7264_s23  ;;  %p7270_p3 = scmp.lt.s32.totalorder %s7264_s23, %s7264_s23 }
  0x81   :  { %p7271_p4 = por %p7270_p3, %p7269_p2 }
  0x83   :  { %p7272_p5 = pnand %p7271_p4, %p7265_p1 }
  0x85   :  { %7275 = shalt.err (!%p7272_p5)
}
  0x86   :  { %s7596_s9 = smov 256   ;;  %s7597_s3 = smov [#allocation23]  }
  0x87   :  { %172 = dma.hbm_to_vmem [thread:$0]  %s8636_s11, 8192, %s7781_s26, [#allocation21], %s7596_s9, %s7596_s9, %s7594_s2  }
  0x88   :  { %s190_s25 = sshll.u32 %s7597_s3, 4  ;;  %s7598_s1 = smov [#allocation26]   ;;  %s191_s25 = int_to_ptr.vmem [resolvable:$true] %s190_s25 }
  0x89   :  { %s214_s21 = sshll.u32 %s7598_s1, 4  ;;  %s7276_s0 = scalar_lea.hbm %s8638_s13, 8192  ;;  %s215_s21 = int_to_ptr.vmem [resolvable:$true] %s214_s21 }
  0x8a   :  { %p7277_p6 = scmp.ne.s32.totalorder %s8638_s13, %s7276_s0  ;;  %p7280_p7 = scmp.lt.u32.totalorder %s7276_s0, %s8638_s13 }
  0x8c   :  { %p7282_p8 = pnand %p7280_p7, %p7277_p6 }
  0x8e   :  { %7285 = shalt.err (!%p7282_p8)
}
  0x8f   :  { %s7286_s11 = scalar_lea.vmem %s191_s25, 8192  ;;  %p7291_p10 = scmp.lt.s32.totalorder %s191_s25, %s191_s25 }
  0x90   :  { %p7287_p9 = scmp.ne.s32.totalorder %s191_s25, %s7286_s11  ;;  %p7292_p11 = scmp.lt.s32.totalorder %s7286_s11, %s7286_s11 }
  0x92   :  { %p7293_p12 = por %p7292_p11, %p7291_p10 }
  0x94   :  { %p7294_p13 = pnand %p7293_p12, %p7287_p9 }
  0x96   :  { %7297 = shalt.err (!%p7294_p13)
}
  0x97   :  { %196 = dma.hbm_to_vmem [thread:$0]  %s8638_s13, 8192, %s191_s25, [#allocation24], %s8656_s24, %s8656_s24, %s7591_s28  }
  0x98   :  { %s7298_s7 = scalar_lea.hbm %s8640_s15, 32 }
  0x99   :  { %p7299_p0 = scmp.ne.s32.totalorder %s8640_s15, %s7298_s7  ;;  %p7302_p1 = scmp.lt.u32.totalorder %s7298_s7, %s8640_s15 }
  0x9b   :  { %p7304_p2 = pnand %p7302_p1, %p7299_p0 }
  0x9d   :  { %7307 = shalt.err (!%p7304_p2)
}
  0x9e   :  { %s7308_s0 = scalar_lea.vmem %s215_s21, 32  ;;  %p7313_p4 = scmp.lt.s32.totalorder %s215_s21, %s215_s21 }
  0x9f   :  { %p7309_p3 = scmp.ne.s32.totalorder %s215_s21, %s7308_s0  ;;  %p7314_p5 = scmp.lt.s32.totalorder %s7308_s0, %s7308_s0 }
  0xa1   :  { %p7315_p6 = por %p7314_p5, %p7313_p4 }
  0xa3   :  { %p7316_p7 = pnand %p7315_p6, %p7309_p3 }
  0xa5   :  { %7319 = shalt.err (!%p7316_p7)
}
  0xa6   :  { %s8668_s13 = smov 1   ;;  %s7599_s22 = smov [#allocation2]  }
  0xa7   :  { %220 = dma.hbm_to_vmem [thread:$0]  %s8640_s15, 32, %s215_s21, [#allocation27], %s7594_s2, %s7594_s2, %s8668_s13  }
  0xa8   :  { %s42_s23 = sshll.u32 %s7599_s22, 4  ;;  %s8669_s9 = sld [smem:[#allocation43_spill]]  ;;  %s43_s23 = int_to_ptr.vmem [resolvable:$true] %s42_s23 }
  0xae   :  { %s7320_s29 = scalar_lea.hbm %s8669_s9, 256 }
  0xaf   :  { %p7321_p8 = scmp.ne.s32.totalorder %s8669_s9, %s7320_s29  ;;  %p7324_p9 = scmp.lt.u32.totalorder %s7320_s29, %s8669_s9 }
  0xb1   :  { %p7326_p10 = pnand %p7324_p9, %p7321_p8 }
  0xb3   :  { %7329 = shalt.err (!%p7326_p10)
}
  0xb4   :  { %s7330_s4 = scalar_lea.vmem %s43_s23, 256  ;;  %p7335_p12 = scmp.lt.s32.totalorder %s43_s23, %s43_s23 }
  0xb5   :  { %p7331_p11 = scmp.ne.s32.totalorder %s43_s23, %s7330_s4  ;;  %p7336_p13 = scmp.lt.s32.totalorder %s7330_s4, %s7330_s4 }
  0xb7   :  { %p7337_p0 = por %p7336_p13, %p7335_p12 }
  0xb9   :  { %p7338_p1 = pnand %p7337_p0, %p7331_p11 }
  0xbb   :  { %7341 = shalt.err (!%p7338_p1)
}
  0xbc   :  { %s7600_s15 = smov 128   ;;  %s7601_s21 = smov 8  }
  0xbd   :  { %48 = dma.hbm_to_vmem [thread:$0]  %s8669_s9, 256, %s43_s23, [#allocation3], %s7600_s15, %s7600_s15, %s7601_s21  }
  0xbe   :  { %s7602_s25 = smov [#allocation7]   ;;  %s7603_s22 = smov [#allocation10]  }
  0xbf   :  { %s65_s5 = sshll.u32 %s7602_s25, 4  ;;  %s85_s11 = sshll.u32 %s7603_s22, 4  ;;  %s66_s5 = int_to_ptr.vmem [resolvable:$true] %s65_s5  ;;  %s86_s11 = int_to_ptr.vmem [resolvable:$true] %s85_s11 }
  0xc0   :  { %s8670_s27 = sld [smem:[#allocation45_spill]] }
  0xc6   :  { %s7342_s7 = scalar_lea.hbm %s8670_s27, 32 }
  0xc7   :  { %p7343_p2 = scmp.ne.s32.totalorder %s8670_s27, %s7342_s7  ;;  %p7346_p3 = scmp.lt.u32.totalorder %s7342_s7, %s8670_s27 }
  0xc9   :  { %p7348_p4 = pnand %p7346_p3, %p7343_p2 }
  0xcb   :  { %7351 = shalt.err (!%p7348_p4)
}
  0xcc   :  { %s7352_s23 = scalar_lea.vmem %s66_s5, 32  ;;  %p7357_p6 = scmp.lt.s32.totalorder %s66_s5, %s66_s5 }
  0xcd   :  { %p7353_p5 = scmp.ne.s32.totalorder %s66_s5, %s7352_s23  ;;  %p7358_p7 = scmp.lt.s32.totalorder %s7352_s23, %s7352_s23 }
  0xcf   :  { %p7359_p8 = por %p7358_p7, %p7357_p6 }
  0xd1   :  { %p7360_p9 = pnand %p7359_p8, %p7353_p5 }
  0xd3   :  { %7363 = shalt.err (!%p7360_p9)
}
  0xd4   :  { %68 = dma.hbm_to_vmem [thread:$0]  %s8670_s27, 32, %s66_s5, [#allocation6]  }
  0xd5   :  { %s8671_s0 = sld [smem:[#allocation47_spill]] }
  0xdb   :  { %s7364_s25 = scalar_lea.hbm %s8671_s0, 16 }
  0xdc   :  { %p7365_p10 = scmp.ne.s32.totalorder %s8671_s0, %s7364_s25  ;;  %p7368_p11 = scmp.lt.u32.totalorder %s7364_s25, %s8671_s0 }
  0xde   :  { %p7370_p12 = pnand %p7368_p11, %p7365_p10 }
  0xe0   :  { %7373 = shalt.err (!%p7370_p12)
}
  0xe1   :  { %s7374_s7 = scalar_lea.vmem %s86_s11, 16  ;;  %s7378_s3 = scalar_lea.vmem %s86_s11, 32 }
  0xe2   :  { %p7375_p13 = scmp.ne.s32.totalorder %s86_s11, %s7374_s7  ;;  %p7379_p0 = scmp.lt.s32.totalorder %s86_s11, %s86_s11 }
  0xe3   :  { %p7380_p1 = scmp.lt.s32.totalorder %s7378_s3, %s7374_s7 }
  0xe5   :  { %p7381_p2 = por %p7380_p1, %p7379_p0 }
  0xe7   :  { %p7382_p3 = pnand %p7381_p2, %p7375_p13 }
  0xe9   :  { %7385 = shalt.err (!%p7382_p3)
}
  0xea   :  { %88 = dma.hbm_to_vmem [thread:$0]  %s8671_s0, 16, %s86_s11, [#allocation9]  }
  0xeb   :  { %s7604_s1 = smov [#allocation13]   ;;  %s7386_s15 = scalar_lea.hbm %s8631_s6, 96 }
  0xec   :  { %s106_s4 = sshll.u32 %s7604_s1, 4  ;;  %p7387_p4 = scmp.ne.s32.totalorder %s8631_s6, %s7386_s15  ;;  %s107_s4 = int_to_ptr.vmem [resolvable:$true] %s106_s4 }
  0xed   :  { %p7390_p5 = scmp.lt.u32.totalorder %s7386_s15, %s8631_s6 }
  0xef   :  { %p7392_p6 = pnand %p7390_p5, %p7387_p4 }
  0xf1   :  { %7395 = shalt.err (!%p7392_p6)
}
  0xf2   :  { %s7396_s24 = scalar_lea.vmem %s107_s4, 96  ;;  %p7401_p8 = scmp.lt.s32.totalorder %s107_s4, %s107_s4 }
  0xf3   :  { %p7397_p7 = scmp.ne.s32.totalorder %s107_s4, %s7396_s24  ;;  %p7402_p9 = scmp.lt.s32.totalorder %s7396_s24, %s7396_s24 }
  0xf5   :  { %p7403_p10 = por %p7402_p9, %p7401_p8 }
  0xf7   :  { %p7404_p11 = pnand %p7403_p10, %p7397_p7 }
  0xf9   :  { %7407 = shalt.err (!%p7404_p11)
}
  0xfa   :  { %s7605_s11 = smov 48   ;;  %s7606_s0 = smov 3  }
  0xfb   :  { %112 = dma.hbm_to_vmem [thread:$0]  %s8631_s6, 96, %s107_s4, [#allocation12], %s7605_s11, %s7605_s11, %s7606_s0  }
  0xfc   :  { %s7607_s7 = smov [#allocation16]   ;;  %s7608_s5 = smov [#allocation19]  }
  0xfd   :  { %s130_s3 = sshll.u32 %s7607_s7, 4  ;;  %s154_s27 = sshll.u32 %s7608_s5, 4  ;;  %s131_s3 = int_to_ptr.vmem [resolvable:$true] %s130_s3  ;;  %s155_s27 = int_to_ptr.vmem [resolvable:$true] %s154_s27 }
  0xfe   :  { %s7408_s9 = scalar_lea.hbm %s8633_s8, 32 }
  0xff   :  { %p7409_p12 = scmp.ne.s32.totalorder %s8633_s8, %s7408_s9  ;;  %p7412_p13 = scmp.lt.u32.totalorder %s7408_s9, %s8633_s8 }
 0x101   :  { %p7414_p0 = pnand %p7412_p13, %p7409_p12 }
 0x103   :  { %7417 = shalt.err (!%p7414_p0)
}
 0x104   :  { %s7418_s6 = scalar_lea.vmem %s131_s3, 32  ;;  %p7423_p2 = scmp.lt.s32.totalorder %s131_s3, %s131_s3 }
 0x105   :  { %p7419_p1 = scmp.ne.s32.totalorder %s131_s3, %s7418_s6  ;;  %p7424_p3 = scmp.lt.s32.totalorder %s7418_s6, %s7418_s6 }
 0x107   :  { %p7425_p4 = por %p7424_p3, %p7423_p2 }
 0x109   :  { %p7426_p5 = pnand %p7425_p4, %p7419_p1 }
 0x10b   :  { %7429 = shalt.err (!%p7426_p5)
}
 0x10c   :  { %136 = dma.hbm_to_vmem [thread:$0]  %s8633_s8, 32, %s131_s3, [#allocation15], %s7594_s2, %s7594_s2, %s8668_s13  }
 0x10d   :  { %s7430_s0 = scalar_lea.hbm %s8635_s10, 32 }
 0x10e   :  { %p7431_p6 = scmp.ne.s32.totalorder %s8635_s10, %s7430_s0  ;;  %p7434_p7 = scmp.lt.u32.totalorder %s7430_s0, %s8635_s10 }
 0x110   :  { %p7436_p8 = pnand %p7434_p7, %p7431_p6 }
 0x112   :  { %7439 = shalt.err (!%p7436_p8)
}
 0x113   :  { %s7440_s1 = scalar_lea.vmem %s155_s27, 32  ;;  %p7445_p10 = scmp.lt.s32.totalorder %s155_s27, %s155_s27 }
 0x114   :  { %p7441_p9 = scmp.ne.s32.totalorder %s155_s27, %s7440_s1  ;;  %p7446_p11 = scmp.lt.s32.totalorder %s7440_s1, %s7440_s1 }
 0x116   :  { %p7447_p12 = por %p7446_p11, %p7445_p10 }
 0x118   :  { %p7448_p13 = pnand %p7447_p12, %p7441_p9 }
 0x11a   :  { %7451 = shalt.err (!%p7448_p13)
}
 0x11b   :  { %160 = dma.hbm_to_vmem [thread:$0]  %s8635_s10, 32, %s155_s27, [#allocation18], %s7594_s2, %s7594_s2, %s8668_s13  }
 0x11c   :  { %s7609_s23 = smov [#allocation22]   ;;  %s7610_s15 = smov [#allocation25]  }
 0x11d   :  { %s178_s9 = sshll.u32 %s7609_s23, 4  ;;  %s202_s21 = sshll.u32 %s7610_s15, 4  ;;  %s179_s9 = int_to_ptr.vmem [resolvable:$true] %s178_s9  ;;  %s203_s21 = int_to_ptr.vmem [resolvable:$true] %s202_s21 }
 0x11e   :  { %s7452_s6 = scalar_lea.hbm %s8637_s12, 128 }
 0x11f   :  { %p7453_p0 = scmp.ne.s32.totalorder %s8637_s12, %s7452_s6  ;;  %p7456_p1 = scmp.lt.u32.totalorder %s7452_s6, %s8637_s12 }
 0x121   :  { %p7458_p2 = pnand %p7456_p1, %p7453_p0 }
 0x123   :  { %7461 = shalt.err (!%p7458_p2)
}
 0x124   :  { %s7462_s10 = scalar_lea.vmem %s179_s9, 128  ;;  %p7467_p4 = scmp.lt.s32.totalorder %s179_s9, %s179_s9 }
 0x125   :  { %p7463_p3 = scmp.ne.s32.totalorder %s179_s9, %s7462_s10  ;;  %p7468_p5 = scmp.lt.s32.totalorder %s7462_s10, %s7462_s10 }
 0x127   :  { %p7469_p6 = por %p7468_p5, %p7467_p4 }
 0x129   :  { %p7470_p7 = pnand %p7469_p6, %p7463_p3 }
 0x12b   :  { %7473 = shalt.err (!%p7470_p7)
}
 0x12c   :  { %s8672_s27 = smov 64   ;;  %s7474_s5 = scalar_lea.hbm %s8639_s14, 32 }
 0x12d   :  { %184 = dma.hbm_to_vmem [thread:$0]  %s8637_s12, 128, %s179_s9, [#allocation21], %s8672_s27, %s8672_s27, %s7591_s28  }
 0x12e   :  { %p7475_p8 = scmp.ne.s32.totalorder %s8639_s14, %s7474_s5  ;;  %p7478_p9 = scmp.lt.u32.totalorder %s7474_s5, %s8639_s14 }
 0x130   :  { %p7480_p10 = pnand %p7478_p9, %p7475_p8 }
 0x132   :  { %7483 = shalt.err (!%p7480_p10)
}
 0x133   :  { %s7484_s15 = scalar_lea.vmem %s203_s21, 32  ;;  %p7489_p12 = scmp.lt.s32.totalorder %s203_s21, %s203_s21 }
 0x134   :  { %p7485_p11 = scmp.ne.s32.totalorder %s203_s21, %s7484_s15  ;;  %p7490_p13 = scmp.lt.s32.totalorder %s7484_s15, %s7484_s15 }
 0x136   :  { %p7491_p0 = por %p7490_p13, %p7489_p12 }
 0x138   :  { %p7492_p1 = pnand %p7491_p0, %p7485_p11 }
 0x13a   :  { %7495 = shalt.err (!%p7492_p1)
}
 0x13b   :  { %208 = dma.hbm_to_vmem [thread:$0]  %s8639_s14, 32, %s203_s21, [#allocation24], %s7594_s2, %s7594_s2, %s8668_s13  }
 0x13c   :  { %s7611_s30 = smov [#allocation28]   ;;  %s7612_s6 = smov [#allocation29]  }
 0x13d   :  { %s226_s25 = sshll.u32 %s7611_s30, 4  ;;  %s242_s4 = sshll.u32 %s7612_s6, 4  ;;  %s227_s25 = int_to_ptr.vmem [resolvable:$true] %s226_s25  ;;  %s243_s4 = int_to_ptr.vmem [resolvable:$true] %s242_s4 }
 0x13e   :  { %s7496_s11 = scalar_lea.hbm %s8641_s16, 32 }
 0x13f   :  { %p7497_p2 = scmp.ne.s32.totalorder %s8641_s16, %s7496_s11  ;;  %p7500_p3 = scmp.lt.u32.totalorder %s7496_s11, %s8641_s16 }
 0x141   :  { %p7502_p4 = pnand %p7500_p3, %p7497_p2 }
 0x143   :  { %7505 = shalt.err (!%p7502_p4)
}
 0x144   :  { %s7506_s14 = scalar_lea.vmem %s227_s25, 32  ;;  %p7511_p6 = scmp.lt.s32.totalorder %s227_s25, %s227_s25 }
 0x145   :  { %p7507_p5 = scmp.ne.s32.totalorder %s227_s25, %s7506_s14  ;;  %p7512_p7 = scmp.lt.s32.totalorder %s7506_s14, %s7506_s14 }
 0x147   :  { %p7513_p8 = por %p7512_p7, %p7511_p6 }
 0x149   :  { %p7514_p9 = pnand %p7513_p8, %p7507_p5 }
 0x14b   :  { %7517 = shalt.err (!%p7514_p9)
}
 0x14c   :  { %232 = dma.hbm_to_vmem [thread:$0]  %s8641_s16, 32, %s227_s25, [#allocation27], %s7594_s2, %s7594_s2, %s8668_s13  }
 0x14d   :  { %s7518_s8 = scalar_lea.hbm %s8644_s19, 1024 }
 0x14e   :  { %p7519_p10 = scmp.ne.s32.totalorder %s8644_s19, %s7518_s8  ;;  %p7522_p11 = scmp.lt.u32.totalorder %s7518_s8, %s8644_s19 }
 0x150   :  { %p7524_p12 = pnand %p7522_p11, %p7519_p10 }
 0x152   :  { %7527 = shalt.err (!%p7524_p12)
}
 0x153   :  { %s7528_s9 = scalar_lea.vmem %s243_s4, 1024  ;;  %p7533_p0 = scmp.lt.s32.totalorder %s243_s4, %s243_s4 }
 0x154   :  { %p7529_p13 = scmp.ne.s32.totalorder %s243_s4, %s7528_s9  ;;  %p7534_p1 = scmp.lt.s32.totalorder %s7528_s9, %s7528_s9 }
 0x156   :  { %p7535_p2 = por %p7534_p1, %p7533_p0 }
 0x158   :  { %p7536_p3 = pnand %p7535_p2, %p7529_p13 }
 0x15a   :  { %7539 = shalt.err (!%p7536_p3)
}
 0x15b   :  { %248 = dma.hbm_to_vmem [thread:$0]  %s8644_s19, 1024, %s243_s4, [#allocation30], %s8672_s27, %s8672_s27, %s7591_s28  }
 0x15c   :  { %7562 = dma.done.wait [#allocation3], 256  }
 0x15d   :  { %7563 = vsyncadd [#allocation3], 4294967040 }
 0x15e   :  { %7564 = dma.done.wait [#allocation6], 64  }
 0x15f   :  { %7565 = vsyncadd [#allocation6], 4294967232 }
 0x160   :  { %7566 = dma.done.wait [#allocation9], 32  }
 0x161   :  { %7567 = vsyncadd [#allocation9], 4294967264 }
 0x162   :  { %7568 = dma.done.wait [#allocation12], 6240  }
 0x163   :  { %7569 = vsyncadd [#allocation12], 4294961056 }
 0x164   :  { %7570 = dma.done.wait [#allocation15], 2080  }
 0x165   :  { %7571 = vsyncadd [#allocation15], 4294965216 }
 0x166   :  { %7572 = dma.done.wait [#allocation18], 64  }
 0x167   :  { %7573 = vsyncadd [#allocation18], 4294967232 }
 0x168   :  { %7574 = dma.done.wait [#allocation21], 8320  }
 0x169   :  { %7575 = vsyncadd [#allocation21], 4294958976 }
 0x16a   :  { %7576 = dma.done.wait [#allocation24], 8224  }
 0x16b   :  { %7577 = vsyncadd [#allocation24], 4294959072 }
 0x16c   :  { %7578 = dma.done.wait [#allocation27], 64  }
 0x16d   :  { %7579 = vsyncadd [#allocation27], 4294967232 }
 0x16e   :  { %7580 = dma.done.wait [#allocation30], 1024  }
 0x16f   :  { %7581 = vsyncadd [#allocation30], 4294966272  ;;  %v306_v0 = vld [vmem:[#allocation2] sm:$0xff]  ;;  %v307_v1 = vld [vmem:[#allocation2 + $0x8] sm:$0xff]  ;;  %v7613_v4 = vmov 0.0   ;;  %v7614_v30 = vmov 0   ;;  %v362_v53 = vlaneseq }
 0x170   :  { %310 = vadd.xlane.f32.xlu0 %v306_v0  ;;  %v6770_v2 = vld [vmem:[#allocation11 + $0x4] ss:$12 sps:$4 sm:$0xff]   ;;  %v6772_v3 = vld [vmem:[#allocation11] ss:$12 sps:$4 sm:$0xff]   ;;  %6430 = vmatprep.subr.bf16.mxu1 %v7613_v4  ;;  %v6773_v5 = vld [vmem:[#allocation11 + $0x8] ss:$12 sps:$4 sm:$0xff]  }
 0x171   :  { %v6774_v6 = vld [vmem:[#allocation11 + $0x1c] ss:$12 sps:$4 sm:$0xff]   ;;  %551 = vmatprep.subr.bf16.mxu0 %v6770_v2  ;;  %6431 = vmatpush3.bf16.msra.mxu1 %v6773_v5  ;;  %v6776_v15 = vld [vmem:[#allocation11 + $0x18] ss:$12 sps:$4 sm:$0xff]   ;;  %v6777_v16 = vld [vmem:[#allocation11 + $0x20] ss:$12 sps:$4 sm:$0xff]  }
 0x172   :  { %552 = vmatpush1.bf16.msra.mxu0 %v6772_v3  ;;  %6432 = vmatprep.subr.bf16.mxu1 %v7613_v4  ;;  %v6778_v17 = vld [vmem:[#allocation11 + $0x34] ss:$12 sps:$4 sm:$0xff]   ;;  %v6780_v18 = vld [vmem:[#allocation11 + $0x30] ss:$12 sps:$4 sm:$0xff]   ;;  %v6781_v19 = vld [vmem:[#allocation11 + $0x38] ss:$12 sps:$4 sm:$0xff]  }
 0x173   :  { %553 = vmatprep.subr.bf16.mxu0 %v6774_v6  ;;  %v6782_v20 = vld [vmem:[#allocation11 + $0x4c] ss:$12 sps:$4 sm:$0xff]   ;;  %v6784_v21 = vld [vmem:[#allocation11 + $0x48] ss:$12 sps:$4 sm:$0xff]   ;;  %v6785_v22 = vld [vmem:[#allocation11 + $0x50] ss:$12 sps:$4 sm:$0xff]   ;;  %583 = vmatprep.mubr.bf16.mxu0 %v7614_v30 }
 0x174   :  { %312 = vadd.xlane.f32.xlu0 %v307_v1  ;;  %v6786_v23 = vld [vmem:[#allocation11 + $0x64] ss:$12 sps:$4 sm:$0xff]   ;;  %v6788_v24 = vld [vmem:[#allocation11 + $0x60] ss:$12 sps:$4 sm:$0xff]   ;;  %v6789_v25 = vld [vmem:[#allocation11 + $0x68] ss:$12 sps:$4 sm:$0xff]  }
 0x175   :  { %6433 = vmatpush3.bf16.msra.mxu1 %v6777_v16  ;;  %v6790_v26 = vld [vmem:[#allocation11 + $0x7c] ss:$12 sps:$4 sm:$0xff]   ;;  %v6792_v27 = vld [vmem:[#allocation11 + $0x78] ss:$12 sps:$4 sm:$0xff]   ;;  %v6793_v28 = vld [vmem:[#allocation11 + $0x80] ss:$12 sps:$4 sm:$0xff]  }
 0x176   :  { %554 = vmatpush1.bf16.msra.mxu0 %v6776_v15  ;;  %6434 = vmatprep.subr.bf16.mxu1 %v7613_v4  ;;  %v6794_v29 = vld [vmem:[#allocation11 + $0x94] ss:$12 sps:$4 sm:$0xff]   ;;  %vm7615_vm0 = vmmov 0   ;;  %v6796_v31 = vld [vmem:[#allocation11 + $0x90] ss:$12 sps:$4 sm:$0xff]   ;;  %v8017_v54 = vshrl.u32 %v362_v53, 7 }
 0x177   :  { %555 = vmatprep.subr.bf16.mxu0 %v6778_v17  ;;  %6446 = vmatprep.mubr.msk.bf16.mxu1 %vm7615_vm0, %v7613_v4  ;;  %v6797_v32 = vld [vmem:[#allocation11 + $0x98] ss:$12 sps:$4 sm:$0xff]   ;;  %v6800_v34 = vld [vmem:[#allocation11 + $0xa8] ss:$12 sps:$4 sm:$0xff]   ;;  %v6801_v35 = vld [vmem:[#allocation11 + $0xb0] ss:$12 sps:$4 sm:$0xff]  }
 0x178   :  { %v6798_v33 = vld [vmem:[#allocation11 + $0xac] ss:$12 sps:$4 sm:$0xff]   ;;  %v5937_v44 = vld [vmem:[#allocation8] ss:$0 sm:$0xff]  ;;  %v5938_v48 = vld [vmem:[#allocation10] ss:$0 sm:$0xff] }
 0x179   :  { %6435 = vmatpush3.bf16.msra.mxu1 %v6781_v19  ;;  %v8020_v55 = vsub.s32 0, %v8017_v54  ;;  %v8023_v56 = vsub.s32 2, %v8017_v54  ;;  %v406_v57 = vld [vmem:[#allocation13] sm:$0x7]  ;;  %v8026_v58 = vsub.s32 1, %v8017_v54  ;;  %vm663_vm1 = vcmask 261120  }
 0x17a   :  { %556 = vmatpush1.bf16.msra.mxu0 %v6780_v18  ;;  %6436 = vmatprep.subr.bf16.mxu1 %v7613_v4  ;;  %v7616_v15 = vmov 1966171168   ;;  %v5939_v19 = vld.sshfl [vmem:[#allocation5] sm:$0x11 pattern:$0x75316420] }
 0x17b   :  { %557 = vmatprep.subr.bf16.mxu0 %v6782_v20  ;;  %v411_v59 = vrot.slane %v406_v57, %v8020_v55  ;;  %v419_v60 = vrot.slane %v406_v57, %v8023_v56  ;;  %v415_v61 = vrot.slane %v406_v57, %v8026_v58  ;;  %v360_v16 = vunpack.c.l.s4 %v7616_v15  ;;  %s7617_s19 = smov 96   ;;  %s7618_s28 = smov 32  }
 0x17c   :  { %vm816_vm2 = vcmask 64512   ;;  %vm5705_vm3 = vcmask 1041409   ;;  %s7619_s3 = smov [#allocation31]  }
 0x17d   :  { %6437 = vmatpush3.bf16.msra.mxu1 %v6785_v22  ;;  %v361_v17 = vunpack.c.0.s8 %v360_v16  ;;  %s5919_s23 = sshll.u32 %s7619_s3, 4  ;;  %s5920_s23 = int_to_ptr.vmem [resolvable:$true] %s5919_s23 }
 0x17e   :  { %558 = vmatpush1.bf16.msra.mxu0 %v6784_v21  ;;  %6438 = vmatprep.subr.bf16.mxu1 %v7613_v4  ;;  %v358_v21 = vcombine.high %v5939_v19, %v5939_v19  ;;  %p7545_p5 = scmp.lt.s32.totalorder %s5920_s23, %s5920_s23 }
 0x17f   :  { %559 = vmatprep.subr.bf16.mxu0 %v6786_v23  ;;  %v364_v18 = vsub.s32 %v361_v17, %v8017_v54 }
 0x181   :  { %6439 = vmatpush3.bf16.msra.mxu1 %v6789_v25  ;;  %v365_v20 = vrot.slane %v5939_v19, %v364_v18  ;;  %v372_v23 = vrot.slane %v358_v21, %v364_v18 }
 0x182   :  { %560 = vmatpush1.bf16.msra.mxu0 %v6788_v24  ;;  %6440 = vmatprep.subr.bf16.mxu1 %v7613_v4 }
 0x183   :  { %561 = vmatprep.subr.bf16.mxu0 %v6790_v26  ;;  %v8063_v22 = vrot.slane %v365_v20, %v8020_v55 }
 0x185   :  { %6441 = vmatpush3.bf16.msra.mxu1 %v6793_v28 }
 0x186   :  { %562 = vmatpush1.bf16.msra.mxu0 %v6792_v27  ;;  %6442 = vmatprep.subr.bf16.mxu1 %v7613_v4  ;;  %v8067_v27 = vrot.slane %v372_v23, %v8020_v55 }
 0x187   :  { %563 = vmatprep.subr.bf16.mxu0 %v6794_v29 }
 0x189   :  { %6443 = vmatpush3.bf16.msra.mxu1 %v6797_v32 }
 0x18a   :  { %564 = vmatpush1.bf16.msra.mxu0 %v6796_v31  ;;  %6444 = vmatprep.subr.bf16.mxu1 %v7613_v4 }
 0x18b   :  { %565 = vmatprep.subr.bf16.mxu0 %v6798_v33 }
 0x18d   :  { %6445 = vmatpush3.bf16.msra.mxu1 %v6801_v35 }
 0x18e   :  { %566 = vmatpush1.bf16.msra.mxu0 %v6800_v34  ;;  %6450 = vmatprep.subr.mxu1 %v7613_v4 }
 0x18f   :  { %6460 = vmatprep.subr.mxu0 %v7613_v4 }
 0x1fd   :  { %v311_v7 = vpop.xlane.xlu0 %310 }
 0x1fe   :  { %v315_v8 = vmul.f32 0.0078125, %v311_v7 }
 0x200   :  { %v7986_v9 = vsub.f32 %v306_v0, %v315_v8 }
 0x201   :  { %v313_v10 = vpop.xlane.xlu0 %312 }
 0x202   :  { %v316_v11 = vmul.f32 0.0078125, %v313_v10  ;;  %v319_v12 = vmul.f32 %v7986_v9, %v7986_v9 }
 0x204   :  { %v7990_v13 = vsub.f32 %v307_v1, %v316_v11  ;;  %321 = vadd.xlane.f32.xlu1 %v319_v12 }
 0x206   :  { %v320_v14 = vmul.f32 %v7990_v13, %v7990_v13 }
 0x208   :  { %323 = vadd.xlane.f32.xlu1 %v320_v14 }
 0x291   :  { %v322_v36 = vpop.xlane.xlu1 %321 }
 0x292   :  { %v325_v37 = vmul.f32 0.0078125, %v322_v36 }
 0x294   :  { %v327_v38 = vadd.f32 1e-12, %v325_v37 }
 0x295   :  { %v324_v39 = vpop.xlane.xlu1 %323 }
 0x296   :  { %7026 = vrsqrt.f32 %v327_v38  ;;  %v326_v40 = vmul.f32 0.0078125, %v324_v39 }
 0x298   :  { %v328_v41 = vadd.f32 1e-12, %v326_v40 }
 0x29a   :  { %7028 = vrsqrt.f32 %v328_v41 }
 0x2a0   :  { %v7027_v42 = vpop.eup %7026 }
 0x2a1   :  { %v331_v43 = vmul.f32 %v7027_v42, %v7986_v9 }
 0x2a3   :  { %v339_v47 = vmul.f32 %v5937_v44, %v331_v43 }
 0x2a4   :  { %v7029_v45 = vpop.eup %7028 }
 0x2a5   :  { %v332_v46 = vmul.f32 %v7029_v45, %v7990_v13  ;;  %v8007_v50 = vadd.f32 %v5938_v48, %v339_v47 }
 0x2a7   :  { %v340_v49 = vmul.f32 %v5937_v44, %v332_v46 }
 0x2a9   :  { %v8009_v51 = vadd.f32 %v5938_v48, %v340_v49 }
 0x2ab   :  { %v373_v52 = vpack.c.bf16 %v8009_v51, %v8007_v50 }
 0x2ad   :  { %584 = vmatmul.mubr.bf16.vlgmr.msra.gmra.mrb[0].mxu0 %v373_v52  ;;  %6447 = vmatmul.mubr.bf16.vlgmr.msra.gmra.mrb[0].mxu1 %v373_v52 }
 0x2ae   :  { %6452 = vmatprep.mubr.msk.f32.mxu1 %vm7615_vm0, %v7613_v4  ;;  %6462 = vmatprep.mubr.msk.f32.mxu0 %vm7615_vm0, %v7613_v4 }
 0x380   :  { %v585_v62 = vpop.f32.mrb[0].mxu0  ;;  %v628_v63 = vpop.f32.mrb[0].mxu1 }
 0x381   :  { %v586_v0 = vadd.f32 %v585_v62, %v411_v59  ;;  %v8031_v1 = vadd.f32 %v628_v63, %v419_v60  ;;  %v587_v2 = vpop.f32.mrb[1].mxu0  ;;  %v6448_v3 = vpop.f32.mrb[1].mxu1 }
 0x382   :  { %v8033_v5 = vadd.f32 %v587_v2, %v415_v61  ;;  %v589_v6 = vpop.f32.mrb[2].mxu0  ;;  %v631_v7 = vpop.f32.mrb[2].mxu1 }
 0x383   :  { %v591_v8 = vpop.f32.mrb[3].mxu0  ;;  %v6449_v9 = vpop.f32.mrb[3].mxu1  ;;  %6461 = vmatpush3.msra.mxu0 %v8031_v1  ;;  %v8039_v10 = vmul.f32 0.17677669, %v586_v0  ;;  %v590_v11 = vadd.f32 %v589_v6, %v411_v59  ;;  %v8053_v14 = vadd.f32 %v631_v7, %v419_v60 }
 0x384   :  { %6451 = vmatpush3.xpose.msk.msra.mxu1 %vm663_vm1, %v8033_v5  ;;  %6470 = vmatprep.subr.mxu0 %v7613_v4  ;;  %v8042_v12 = vadd.f32 %v591_v8, %v415_v61 }
 0x385   :  { %6455 = vmatprep.subr.mxu1 %v7613_v4  ;;  %v8050_v13 = vmul.f32 0.17677669, %v590_v11 }
 0x387   :  { %6453 = vmatmul.mubr.msk.f32.vlgmr.msra.gmra.mrb[4].mxu1 %vm663_vm1, %v8039_v10 }
 0x388   :  { %6456 = vmatpush3.xpose.msk.msra.mxu1 %vm663_vm1, %v8042_v12  ;;  %6457 = vmatprep.mubr.msk.f32.mxu1 %vm7615_vm0, %v7613_v4 }
 0x389   :  { %6465 = vmatprep.subr.mxu1 %v7613_v4 }
 0x38b   :  { %6458 = vmatmul.mubr.msk.f32.vlgmr.msra.gmra.mrb[6].mxu1 %vm663_vm1, %v8050_v13 }
 0x38c   :  { %6466 = vmatpush3.msra.mxu1 %v8053_v14  ;;  %6467 = vmatprep.mubr.msk.f32.mxu1 %vm7615_vm0, %v7613_v4 }
 0x38d   :  { %6475 = vmatprep.subr.mxu1 %v7613_v4 }
 0x45a   :  { %v736_v24 = vpop.f32.mrb[4].mxu1 }
 0x45b   :  { %v737_v25 = vadd.f32 %v736_v24, %v8063_v22  ;;  %v6454_v26 = vpop.f32.mrb[5].mxu1 }
 0x45d   :  { %v817_v28 = vsel %vm816_vm2, %v737_v25, -inf }
 0x45e   :  { %818 = vmax.xlane.f32.xlu0 %v817_v28  ;;  %v812_v29 = vpop.f32.mrb[6].mxu1 }
 0x45f   :  { %v813_v31 = vadd.f32 %v812_v29, %v8067_v27  ;;  %v6459_v32 = vpop.f32.mrb[7].mxu1 }
 0x461   :  { %v820_v33 = vsel %vm816_vm2, %v813_v31, -inf }
 0x462   :  { %821 = vmax.xlane.f32.xlu1 %v820_v33 }
 0x473   :  { %1066 = vrot.lane.b32.xlu1 %v8042_v12, %s7617_s19 }
 0x477   :  { %986 = vrot.lane.b32.xlu1 %v8039_v10, %s7617_s19 }
 0x4eb   :  { %v819_v34 = vpop.xlane.xlu0 %818 }
 0x4ec   :  { %v823_v35 = vsub.f32 %v737_v25, %v819_v34  ;;  %v6804_v34 = vld [vmem:[#allocation14 + $0x10] sm:$0xff]  }
 0x4ee   :  { %v825_v36 = vmul.f32 1.442695, %v823_v35 }
 0x4ef   :  { %v822_v37 = vpop.xlane.xlu1 %821 }
 0x4f0   :  { %7030 = vpow2.f32 %v825_v36  ;;  %v824_v38 = vsub.f32 %v813_v31, %v822_v37  ;;  %v6802_v37 = vld [vmem:[#allocation14] sm:$0xff]  }
 0x4f2   :  { %v827_v39 = vmul.f32 1.442695, %v824_v38  ;;  %v6805_v38 = vld [vmem:[#allocation14 + $0x18] sm:$0xff]  }
 0x4f3   :  { %v1067_v44 = vpop.permute.xlu1 %1066 }
 0x4f4   :  { %7032 = vpow2.f32 %v827_v39  ;;  %v6803_v39 = vld [vmem:[#allocation14 + $0x8] sm:$0xff]  }
 0x4f7   :  { %v987_v45 = vpop.permute.xlu1 %986 }
 0x4fa   :  { %v7031_v40 = vpop.eup %7030 }
 0x4fb   :  { %v829_v41 = vsel %vm816_vm2, %v7031_v40, 0.0 }
 0x4fc   :  { %830 = vadd.xlane.f32.xlu0 %v829_v41 }
 0x4fe   :  { %v7033_v42 = vpop.eup %7032 }
 0x4ff   :  { %v832_v43 = vsel %vm816_vm2, %v7033_v42, 0.0 }
 0x500   :  { %833 = vadd.xlane.f32.xlu1 %v832_v43 }
 0x511   :  { %1064 = vrot.lane.b32.xlu1 %v8050_v13, %s7617_s19 }
 0x512   :  { %988 = vrot.lane.b32.xlu0 %v8033_v5, %s7617_s19 }
 0x589   :  { %v831_v46 = vpop.xlane.xlu0 %830 }
 0x58a   :  { %7034 = vrcp.f32 %v831_v46 }
 0x58d   :  { %v834_v47 = vpop.xlane.xlu1 %833  ;;  %v989_v52 = vpop.permute.xlu0 %988 }
 0x58e   :  { %7036 = vrcp.f32 %v834_v47 }
 0x591   :  { %v1065_v59 = vpop.permute.xlu1 %1064 }
 0x594   :  { %v7035_v48 = vpop.eup %7034 }
 0x595   :  { %v836_v49 = vmul.f32 %v7035_v48, %v7031_v40 }
 0x597   :  { %6463 = vmatmul.mubr.msk.f32.vlgmr.msra.gmra.mrb[4].mxu0 %vm816_vm2, %v836_v49 }
 0x598   :  { %v7037_v53 = vpop.eup %7036  ;;  %6471 = vmatpush3.xpose.msk.msra.mxu0 %vm663_vm1, %v989_v52  ;;  %6472 = vmatprep.mubr.msk.f32.mxu0 %vm7615_vm0, %v7613_v4 }
 0x599   :  { %v838_v57 = vmul.f32 %v7037_v53, %v7033_v42  ;;  %6480 = vmatprep.subr.mxu0 %v7613_v4 }
 0x59b   :  { %6468 = vmatmul.mubr.msk.f32.vlgmr.msra.gmra.mrb[8].mxu1 %vm816_vm2, %v838_v57  ;;  %6473 = vmatmul.mubr.msk.f32.vlgmr.msra.gmra.mrb[6].mxu0 %vm663_vm1, %v987_v45 }
 0x59c   :  { %6476 = vmatpush3.xpose.msk.msra.mxu1 %vm663_vm1, %v1067_v44  ;;  %6477 = vmatprep.mubr.msk.f32.mxu1 %vm7615_vm0, %v7613_v4 }
 0x59d   :  { %6485 = vmatprep.subr.mxu1 %v7613_v4  ;;  %6482 = vmatprep.mubr.msk.f32.mxu0 %vm7615_vm0, %v7613_v4 }
 0x59f   :  { %6478 = vmatmul.mubr.msk.f32.vlgmr.msra.gmra.mrb[10].mxu1 %vm663_vm1, %v1065_v59 }
 0x5a0   :  { %6487 = vmatprep.mubr.msk.f32.mxu1 %vm7615_vm0, %v7613_v4 }
 0x66a   :  { %v8098_v60 = vpop.f32.mrb[4].mxu0 }
 0x66b   :  { %v6464_v61 = vpop.f32.mrb[5].mxu0 }
 0x66e   :  { %v8100_v62 = vpop.f32.mrb[8].mxu1  ;;  %v1060_v63 = vpop.f32.mrb[6].mxu0 }
 0x66f   :  { %v985_v0 = vpack.c.bf16 %v8100_v62, %v8098_v60  ;;  %v1061_v2 = vadd.f32 %v1060_v63, %v8063_v22  ;;  %v6469_v3 = vpop.f32.mrb[9].mxu1  ;;  %v6474_v6 = vpop.f32.mrb[7].mxu0 }
 0x671   :  { %v1142_v7 = vsel %vm816_vm2, %v1061_v2, -inf }
 0x672   :  { %1143 = vmax.xlane.f32.xlu0 %v1142_v7  ;;  %v1138_v8 = vpop.f32.mrb[10].mxu1 }
 0x673   :  { %v1139_v9 = vadd.f32 %v1138_v8, %v8067_v27  ;;  %v6479_v11 = vpop.f32.mrb[11].mxu1 }
 0x675   :  { %v1145_v15 = vsel %vm816_vm2, %v1139_v9, -inf }
 0x676   :  { %1146 = vmax.xlane.f32.xlu1 %v1145_v15 }
 0x687   :  { %1242 = vrot.lane.b32.xlu1 %v8053_v14, %s7617_s19 }
 0x68b   :  { %1511 = vrot.lane.b32.xlu1 %v8042_v12, %s8672_s27 }
 0x68f   :  { %1509 = vrot.lane.b32.xlu1 %v8050_v13, %s8672_s27 }
 0x693   :  { %1431 = vrot.lane.b32.xlu1 %v8039_v10, %s8672_s27 }
 0x697   :  { %1822 = vrot.lane.b32.xlu1 %v8033_v5, %s7618_s28 }
 0x6ff   :  { %v1144_v16 = vpop.xlane.xlu0 %1143 }
 0x700   :  { %v1148_v17 = vsub.f32 %v1061_v2, %v1144_v16 }
 0x702   :  { %v1150_v18 = vmul.f32 1.442695, %v1148_v17 }
 0x703   :  { %v1147_v19 = vpop.xlane.xlu1 %1146 }
 0x704   :  { %7038 = vpow2.f32 %v1150_v18  ;;  %v1149_v20 = vsub.f32 %v1139_v9, %v1147_v19 }
 0x706   :  { %v1152_v21 = vmul.f32 1.442695, %v1149_v20 }
 0x707   :  { %v1243_v23 = vpop.permute.xlu1 %1242 }
 0x708   :  { %7040 = vpow2.f32 %v1152_v21  ;;  %6486 = vmatpush3.msra.mxu1 %v1243_v23 }
 0x709   :  { %6498 = vmatprep.subr.bf16.mxu1 %v7613_v4 }
 0x70b   :  { %v1512_v40 = vpop.permute.xlu1 %1511 }
 0x70e   :  { %v7039_v24 = vpop.eup %7038 }
 0x70f   :  { %v1154_v25 = vsel %vm816_vm2, %v7039_v24, 0.0  ;;  %v1510_v41 = vpop.permute.xlu1 %1509 }
 0x710   :  { %1155 = vadd.xlane.f32.xlu0 %v1154_v25 }
 0x712   :  { %v7041_v26 = vpop.eup %7040 }
 0x713   :  { %v1157_v28 = vsel %vm816_vm2, %v7041_v26, 0.0  ;;  %v1432_v52 = vpop.permute.xlu1 %1431 }
 0x714   :  { %1158 = vadd.xlane.f32.xlu0 %v1157_v28 }
 0x717   :  { %v1823_v20 = vpop.permute.xlu1 %1822 }
 0x72a   :  { %1165 = vrot.lane.b32.xlu0 %v8031_v1, %s7617_s19 }
 0x72e   :  { %1433 = vrot.lane.b32.xlu0 %v8033_v5, %s8672_s27 }
 0x79d   :  { %v1156_v29 = vpop.xlane.xlu0 %1155 }
 0x79e   :  { %7042 = vrcp.f32 %v1156_v29 }
 0x7a1   :  { %v1159_v31 = vpop.xlane.xlu0 %1158 }
 0x7a2   :  { %7044 = vrcp.f32 %v1159_v31 }
 0x7a5   :  { %v1166_v32 = vpop.permute.xlu0 %1165 }
 0x7a6   :  { %6481 = vmatpush3.msra.mxu0 %v1166_v32 }
 0x7a7   :  { %6490 = vmatprep.subr.bf16.mxu0 %v7613_v4 }
 0x7a8   :  { %v7043_v33 = vpop.eup %7042 }
 0x7a9   :  { %v1161_v35 = vmul.f32 %v7043_v33, %v7039_v24  ;;  %v1434_v47 = vpop.permute.xlu0 %1433 }
 0x7ab   :  { %6483 = vmatmul.mubr.msk.f32.vlgmr.msra.gmra.mrb[8].mxu0 %vm816_vm2, %v1161_v35 }
 0x7ac   :  { %v7045_v36 = vpop.eup %7044  ;;  %6491 = vmatpush3.bf16.msra.mxu0 %v6804_v34  ;;  %6494 = vmatprep.mubr.msk.bf16.mxu0 %vm7615_vm0, %v7613_v4 }
 0x7ad   :  { %v1163_v5 = vmul.f32 %v7045_v36, %v7041_v26  ;;  %6492 = vmatprep.subr.bf16.mxu0 %v7613_v4 }
 0x7af   :  { %6488 = vmatmul.mubr.msk.f32.vlgmr.msra.gmra.mrb[12].mxu1 %vm816_vm2, %v1163_v5 }
 0x7b0   :  { %6499 = vmatpush3.bf16.msra.mxu1 %v6802_v37  ;;  %6502 = vmatprep.mubr.msk.bf16.mxu1 %vm7615_vm0, %v7613_v4 }
 0x7b1   :  { %6500 = vmatprep.subr.bf16.mxu1 %v7613_v4  ;;  %6493 = vmatpush3.bf16.msra.mxu0 %v6805_v38 }
 0x7b2   :  { %6506 = vmatprep.subr.mxu0 %v7613_v4 }
 0x7b4   :  { %6501 = vmatpush3.bf16.msra.mxu1 %v6803_v39 }
 0x7b5   :  { %6511 = vmatprep.subr.mxu1 %v7613_v4 }
 0x7b7   :  { %6503 = vmatmul.mubr.msk.bf16.vlgmr.msra.gmra.mrb[16].mxu1 %vm663_vm1, %v985_v0 }
 0x7b8   :  { %6513 = vmatprep.mubr.msk.f32.mxu1 %vm7615_vm0, %v7613_v4 }
 0x7bd   :  { %6512 = vmatpush3.xpose.msk.msra.mxu1 %vm663_vm1, %v1512_v40 }
 0x7be   :  { %6521 = vmatprep.subr.mxu1 %v7613_v4 }
 0x7c0   :  { %6514 = vmatmul.mubr.msk.f32.vlgmr.msra.gmra.mrb[14].mxu1 %vm663_vm1, %v1510_v41 }
 0x7c1   :  { %6523 = vmatprep.mubr.msk.f32.mxu1 %vm7615_vm0, %v7613_v4 }
 0x87e   :  { %v1237_v42 = vpop.f32.mrb[8].mxu0 }
 0x87f   :  { %v6484_v43 = vpop.f32.mrb[9].mxu0 }
 0x882   :  { %v1314_v44 = vpop.f32.mrb[12].mxu1 }
 0x883   :  { %v1318_v45 = vpack.c.bf16 %v1314_v44, %v1237_v42  ;;  %v6489_v46 = vpop.f32.mrb[13].mxu1 }
 0x884   :  { %v6806_v46 = vld [vmem:[#allocation14 + $0x20] sm:$0xff]  }
 0x885   :  { %6495 = vmatmul.mubr.msk.bf16.vlgmr.msra.gmra.mrb[12].mxu0 %vm663_vm1, %v1318_v45 }
 0x886   :  { %6507 = vmatpush3.xpose.msk.msra.mxu0 %vm663_vm1, %v1434_v47  ;;  %6508 = vmatprep.mubr.msk.f32.mxu0 %vm7615_vm0, %v7613_v4  ;;  %v6807_v47 = vld [vmem:[#allocation14 + $0x28] sm:$0xff]  }
 0x887   :  { %6516 = vmatprep.subr.mxu0 %v7613_v4 }
 0x88a   :  { %v1424_v48 = vpop.f32.mrb[16].mxu1 }
 0x88b   :  { %v6504_v49 = vpop.f32.mrb[17].mxu1 }
 0x88c   :  { %v1427_v53 = vpop.f32.mrb[18].mxu1 }
 0x88d   :  { %v6505_v57 = vpop.f32.mrb[19].mxu1  ;;  %6509 = vmatmul.mubr.msk.f32.vlgmr.msra.gmra.mrb[10].mxu0 %vm663_vm1, %v1432_v52 }
 0x88e   :  { %6518 = vmatprep.mubr.msk.f32.mxu0 %vm7615_vm0, %v7613_v4 }
 0x893   :  { %v1583_v59 = vpop.f32.mrb[14].mxu1 }
 0x894   :  { %v1584_v60 = vadd.f32 %v1583_v59, %v8067_v27  ;;  %v6515_v61 = vpop.f32.mrb[15].mxu1 }
 0x896   :  { %v1590_v62 = vsel %vm816_vm2, %v1584_v60, -inf }
 0x897   :  { %1591 = vmax.xlane.f32.xlu0 %v1590_v62 }
 0x8ad   :  { %1685 = vrot.lane.b32.xlu0 %v8053_v14, %s8672_s27 }
 0x8b1   :  { %1820 = vrot.lane.b32.xlu0 %v8039_v10, %s7618_s28 }
 0x8b5   :  { %1898 = vrot.lane.b32.xlu0 %v8050_v13, %s7618_s28 }
 0x924   :  { %v1592_v63 = vpop.xlane.xlu0 %1591 }
 0x925   :  { %v1594_v0 = vsub.f32 %v1584_v60, %v1592_v63 }
 0x927   :  { %v1597_v2 = vmul.f32 1.442695, %v1594_v0 }
 0x928   :  { %v1686_v3 = vpop.permute.xlu0 %1685 }
 0x929   :  { %7046 = vpow2.f32 %v1597_v2  ;;  %6522 = vmatpush3.msra.mxu1 %v1686_v3 }
 0x92a   :  { %6534 = vmatprep.subr.mxu1 %v7613_v4 }
 0x92c   :  { %v1821_v24 = vpop.permute.xlu0 %1820 }
 0x930   :  { %v1899_v26 = vpop.permute.xlu0 %1898 }
 0x933   :  { %v7047_v6 = vpop.eup %7046 }
 0x934   :  { %v1602_v7 = vsel %vm816_vm2, %v7047_v6, 0.0 }
 0x935   :  { %1603 = vadd.xlane.f32.xlu1 %v1602_v7 }
 0x946   :  { %1900 = vrot.lane.b32.xlu1 %v8042_v12, %s7618_s28 }
 0x958   :  { %v1368_v8 = vpop.f32.mrb[12].mxu0 }
 0x959   :  { %v8167_v10 = vadd.f32 %v1424_v48, %v1368_v8  ;;  %v6496_v9 = vpop.f32.mrb[13].mxu0 }
 0x95a   :  { %v1371_v13 = vpop.f32.mrb[14].mxu0 }
 0x95b   :  { %v8169_v11 = vadd.f32 %v1427_v53, %v1371_v13  ;;  %v6497_v15 = vpop.f32.mrb[15].mxu0 }
 0x960   :  { %v1505_v16 = vpop.f32.mrb[10].mxu0 }
 0x961   :  { %v6510_v17 = vpop.f32.mrb[11].mxu0  ;;  %v1506_v18 = vadd.f32 %v1505_v16, %v8063_v22 }
 0x962   :  { %v6808_v17 = vld [vmem:[#allocation14 + $0x30] sm:$0xff]  }
 0x963   :  { %v1587_v19 = vsel %vm816_vm2, %v1506_v18, -inf }
 0x96a   :  { %1588 = vmax.xlane.f32.xlu1 %v1587_v19 }
 0x9c2   :  { %v1604_v21 = vpop.xlane.xlu1 %1603 }
 0x9c3   :  { %7048 = vrcp.f32 %v1604_v21 }
 0x9c6   :  { %v1901_v25 = vpop.permute.xlu1 %1900 }
 0x9cd   :  { %v7049_v23 = vpop.eup %7048 }
 0x9ce   :  { %v1608_v12 = vmul.f32 %v7049_v23, %v7047_v6 }
 0x9d0   :  { %6524 = vmatmul.mubr.msk.f32.vlgmr.msra.gmra.mrb[20].mxu1 %vm816_vm2, %v1608_v12 }
 0x9d1   :  { %6535 = vmatpush3.xpose.msk.msra.mxu1 %vm663_vm1, %v1823_v20  ;;  %6536 = vmatprep.mubr.msk.f32.mxu1 %vm7615_vm0, %v7613_v4 }
 0x9d2   :  { %6539 = vmatprep.subr.mxu1 %v7613_v4 }
 0x9d4   :  { %6537 = vmatmul.mubr.msk.f32.vlgmr.msra.gmra.mrb[22].mxu1 %vm663_vm1, %v1821_v24 }
 0x9d5   :  { %6540 = vmatpush3.xpose.msk.msra.mxu1 %vm663_vm1, %v1901_v25  ;;  %6541 = vmatprep.mubr.msk.f32.mxu1 %vm7615_vm0, %v7613_v4 }
 0x9d6   :  { %6544 = vmatprep.subr.mxu1 %v7613_v4 }
 0x9d8   :  { %6542 = vmatmul.mubr.msk.f32.vlgmr.msra.gmra.mrb[24].mxu1 %vm663_vm1, %v1899_v26 }
 0x9d9   :  { %6546 = vmatprep.mubr.msk.f32.mxu1 %vm7615_vm0, %v7613_v4 }
 0x9f7   :  { %v1589_v28 = vpop.xlane.xlu1 %1588 }
 0x9f8   :  { %v1593_v29 = vsub.f32 %v1506_v18, %v1589_v28  ;;  %v6809_v18 = vld [vmem:[#allocation14 + $0x38] sm:$0xff]  }
 0x9fa   :  { %v1595_v31 = vmul.f32 1.442695, %v1593_v29 }
 0x9fc   :  { %7050 = vpow2.f32 %v1595_v31 }
 0xa06   :  { %v7051_v32 = vpop.eup %7050 }
 0xa07   :  { %v1599_v33 = vsel %vm816_vm2, %v7051_v32, 0.0 }
 0xa08   :  { %1600 = vadd.xlane.f32.xlu0 %v1599_v33  ;;  %v6000_v33 = vld [vmem:[#allocation16] ss:$0 sm:$0xff] }
 0xa1e   :  { %1609 = vrot.lane.b32.xlu0 %v8031_v1, %s8672_s27 }
 0xa22   :  { %2074 = vrot.lane.b32.xlu0 %v8053_v14, %s7618_s28 }
 0xa95   :  { %v1601_v34 = vpop.xlane.xlu0 %1600 }
 0xa96   :  { %7052 = vrcp.f32 %v1601_v34 }
 0xa99   :  { %v1610_v35 = vpop.permute.xlu0 %1609 }
 0xa9a   :  { %6517 = vmatpush3.msra.mxu0 %v1610_v35 }
 0xa9b   :  { %6526 = vmatprep.subr.bf16.mxu0 %v7613_v4 }
 0xa9d   :  { %v2075_v6 = vpop.permute.xlu0 %2074 }
 0xaa0   :  { %v7053_v36 = vpop.eup %7052 }
 0xaa1   :  { %v1606_v37 = vmul.f32 %v7053_v36, %v7051_v32 }
 0xaa3   :  { %6519 = vmatmul.mubr.msk.f32.vlgmr.msra.gmra.mrb[16].mxu0 %vm816_vm2, %v1606_v37  ;;  %v1757_v5 = vpop.f32.mrb[20].mxu1 }
 0xaa4   :  { %v6525_v38 = vpop.f32.mrb[21].mxu1  ;;  %6530 = vmatprep.mubr.msk.bf16.mxu0 %vm7615_vm0, %v7613_v4  ;;  %6527 = vmatpush3.bf16.msra.mxu0 %v6806_v46  ;;  %v6819_v46 = vld [vmem:[#allocation20 + $0x28] ss:$16 sps:$4 sm:$0xff]  }
 0xaa5   :  { %6528 = vmatprep.subr.bf16.mxu0 %v7613_v4 }
 0xaa7   :  { %v1894_v39 = vpop.f32.mrb[22].mxu1 }
 0xaa8   :  { %v1895_v40 = vadd.f32 %v1894_v39, %v8063_v22  ;;  %v6538_v41 = vpop.f32.mrb[23].mxu1  ;;  %6529 = vmatpush3.bf16.msra.mxu0 %v6807_v47 }
 0xaa9   :  { %6549 = vmatprep.subr.mxu0 %v7613_v4  ;;  %v6812_v41 = vld [vmem:[#allocation20 + $0x4] ss:$16 sps:$4 sm:$0xff]  }
 0xaaa   :  { %v1976_v14 = vsel %vm816_vm2, %v1895_v40, -inf }
 0xaab   :  { %1977 = vmax.xlane.f32.xlu1 %v1976_v14  ;;  %v1972_v42 = vpop.f32.mrb[24].mxu1  ;;  %v6813_v14 = vld [vmem:[#allocation20 + $0x8] ss:$16 sps:$4 sm:$0xff]  }
 0xaac   :  { %v1973_v43 = vadd.f32 %v1972_v42, %v8067_v27  ;;  %v6543_v44 = vpop.f32.mrb[25].mxu1  ;;  %v6815_v42 = vld [vmem:[#allocation20 + $0xc] ss:$16 sps:$4 sm:$0xff]  }
 0xaad   :  { %v6821_v44 = vld [vmem:[#allocation20 + $0x2c] ss:$16 sps:$4 sm:$0xff]  }
 0xaae   :  { %v1979_v45 = vsel %vm816_vm2, %v1973_v43, -inf }
 0xaaf   :  { %1980 = vmax.xlane.f32.xlu1 %v1979_v45  ;;  %v6816_v45 = vld [vmem:[#allocation20 + $0x20] ss:$16 sps:$4 sm:$0xff]  }
 0xb38   :  { %v1978_v48 = vpop.xlane.xlu1 %1977 }
 0xb39   :  { %v1982_v49 = vsub.f32 %v1895_v40, %v1978_v48  ;;  %v6810_v40 = vld [vmem:[#allocation20] ss:$16 sps:$4 sm:$0xff]  }
 0xb3b   :  { %v1984_v52 = vmul.f32 1.442695, %v1982_v49 }
 0xb3c   :  { %v1981_v53 = vpop.xlane.xlu1 %1980 }
 0xb3d   :  { %7054 = vpow2.f32 %v1984_v52  ;;  %v1983_v57 = vsub.f32 %v1973_v43, %v1981_v53  ;;  %v6818_v43 = vld [vmem:[#allocation20 + $0x24] ss:$16 sps:$4 sm:$0xff]  }
 0xb3f   :  { %v1986_v59 = vmul.f32 1.442695, %v1983_v57 }
 0xb41   :  { %7056 = vpow2.f32 %v1986_v59  ;;  %v6824_v59 = vld [vmem:[#allocation20 + $0x44] ss:$16 sps:$4 sm:$0xff]  }
 0xb47   :  { %v7055_v60 = vpop.eup %7054 }
 0xb48   :  { %v1988_v61 = vsel %vm816_vm2, %v7055_v60, 0.0 }
 0xb49   :  { %1989 = vadd.xlane.f32.xlu1 %v1988_v61  ;;  %v6822_v61 = vld [vmem:[#allocation20 + $0x40] ss:$16 sps:$4 sm:$0xff]  }
 0xb4b   :  { %v7057_v62 = vpop.eup %7056 }
 0xb4c   :  { %v1991_v63 = vsel %vm816_vm2, %v7057_v62, 0.0 }
 0xb4d   :  { %1992 = vadd.xlane.f32.xlu1 %v1991_v63  ;;  %v6830_v63 = vld [vmem:[#allocation20 + $0x64] ss:$16 sps:$4 sm:$0xff]  }
 0xb5e   :  { %1998 = vrot.lane.b32.xlu1 %v8031_v1, %s7618_s28 }
 0xb76   :  { %v1681_v0 = vpop.f32.mrb[16].mxu0 }
 0xb77   :  { %v1761_v2 = vpack.c.bf16 %v1757_v5, %v1681_v0  ;;  %v6520_v3 = vpop.f32.mrb[17].mxu0  ;;  %v6833_v0 = vld [vmem:[#allocation20 + $0x6c] ss:$16 sps:$4 sm:$0xff]  }
 0xb78   :  { %v6831_v3 = vld [vmem:[#allocation20 + $0x68] ss:$16 sps:$4 sm:$0xff]  }
 0xb79   :  { %6531 = vmatmul.mubr.msk.bf16.vlgmr.msra.gmra.mrb[20].mxu0 %vm663_vm1, %v1761_v2  ;;  %v6828_v2 = vld [vmem:[#allocation20 + $0x60] ss:$16 sps:$4 sm:$0xff]  }
 0xb7a   :  { %6550 = vmatpush3.msra.mxu0 %v2075_v6  ;;  %6551 = vmatprep.mubr.msk.f32.mxu0 %vm7615_vm0, %v7613_v4  ;;  %v6836_v6 = vld [vmem:[#allocation20 + $0x84] ss:$16 sps:$4 sm:$0xff]  }
 0xb7b   :  { %2475 = vmatprep.subr.bf16.mxu0 %v6812_v41  ;;  %v6858_v41 = vld [vmem:[#allocation23 + $0x40] sm:$0xff]  }
 0xbd6   :  { %v1990_v7 = vpop.xlane.xlu1 %1989 }
 0xbd7   :  { %7058 = vrcp.f32 %v1990_v7  ;;  %v6839_v7 = vld [vmem:[#allocation20 + $0x8c] ss:$16 sps:$4 sm:$0xff]  }
 0xbda   :  { %v1993_v8 = vpop.xlane.xlu1 %1992 }
 0xbdb   :  { %7060 = vrcp.f32 %v1993_v8  ;;  %v6834_v8 = vld [vmem:[#allocation20 + $0x80] ss:$16 sps:$4 sm:$0xff]  }
 0xbde   :  { %v1999_v9 = vpop.permute.xlu1 %1998 }
 0xbdf   :  { %6545 = vmatpush3.msra.mxu1 %v1999_v9  ;;  %v6837_v9 = vld [vmem:[#allocation20 + $0x88] ss:$16 sps:$4 sm:$0xff]  }
 0xbe0   :  { %6554 = vmatprep.subr.bf16.mxu1 %v7613_v4 }
 0xbe1   :  { %v7059_v13 = vpop.eup %7058 }
 0xbe2   :  { %v1995_v1 = vmul.f32 %v7059_v13, %v7055_v60  ;;  %v6827_v60 = vld [vmem:[#allocation20 + $0x4c] ss:$16 sps:$4 sm:$0xff]   ;;  %v6842_v13 = vld [vmem:[#allocation20 + $0xa4] ss:$16 sps:$4 sm:$0xff]  }
 0xbe4   :  { %6547 = vmatmul.mubr.msk.f32.vlgmr.msra.gmra.mrb[26].mxu1 %vm816_vm2, %v1995_v1  ;;  %v6845_v1 = vld [vmem:[#allocation20 + $0xac] ss:$16 sps:$4 sm:$0xff]  }
 0xbe5   :  { %v7061_v15 = vpop.eup %7060  ;;  %6558 = vmatprep.mubr.msk.bf16.mxu1 %vm7615_vm0, %v7613_v4  ;;  %6555 = vmatpush3.bf16.msra.mxu1 %v6808_v17  ;;  %v6848_v17 = vld [vmem:[#allocation20 + $0xc4] ss:$16 sps:$4 sm:$0xff]  }
 0xbe6   :  { %v1997_v16 = vmul.f32 %v7061_v15, %v7057_v62  ;;  %6556 = vmatprep.subr.bf16.mxu1 %v7613_v4  ;;  %v6825_v62 = vld [vmem:[#allocation20 + $0x48] ss:$16 sps:$4 sm:$0xff]   ;;  %v6840_v15 = vld [vmem:[#allocation20 + $0xa0] ss:$16 sps:$4 sm:$0xff]  }
 0xbe8   :  { %6552 = vmatmul.mubr.msk.f32.vlgmr.msra.gmra.mrb[18].mxu0 %vm816_vm2, %v1997_v16  ;;  %v6843_v16 = vld [vmem:[#allocation20 + $0xa8] ss:$16 sps:$4 sm:$0xff]  }
 0xbe9   :  { %2507 = vmatprep.mubr.bf16.mxu0 %v7614_v30  ;;  %6557 = vmatpush3.bf16.msra.mxu1 %v6809_v18  ;;  %v6851_v18 = vld [vmem:[#allocation20 + $0xcc] ss:$16 sps:$4 sm:$0xff]  }
 0xbea   :  { %2518 = vmatprep.subr.bf16.mxu1 %v6815_v42  ;;  %2476 = vmatpush1.bf16.msra.mxu0 %v6810_v40  ;;  %v6860_v42 = vld [vmem:[#allocation23] sm:$0xff]  }
 0xbeb   :  { %2477 = vmatprep.subr.bf16.mxu0 %v6818_v43  ;;  %v6861_v43 = vld [vmem:[#allocation23 + $0x80] sm:$0xff]  }
 0xbee   :  { %2478 = vmatpush1.bf16.msra.mxu0 %v6816_v45  ;;  %v6863_v45 = vld [vmem:[#allocation23 + $0xc8] sm:$0xff]  }
 0xbef   :  { %2479 = vmatprep.subr.bf16.mxu0 %v6824_v59  ;;  %v6873_v59 = vld [vmem:[#allocation23 + $0x98] sm:$0xff]  }
 0xbf2   :  { %2480 = vmatpush1.bf16.msra.mxu0 %v6822_v61  ;;  %v6875_v61 = vld [vmem:[#allocation23 + $0xe0] sm:$0xff]  }
 0xbf3   :  { %2481 = vmatprep.subr.bf16.mxu0 %v6830_v63  ;;  %v6877_v63 = vld [vmem:[#allocation23 + $0xa0] sm:$0xff]  }
 0xbf6   :  { %2482 = vmatpush1.bf16.msra.mxu0 %v6828_v2  ;;  %v6879_v2 = vld [vmem:[#allocation23 + $0xe8] sm:$0xff]  }
 0xbf7   :  { %2483 = vmatprep.subr.bf16.mxu0 %v6836_v6  ;;  %v6881_v6 = vld [vmem:[#allocation23 + $0xa8] sm:$0xff]  }
 0xbfa   :  { %2484 = vmatpush1.bf16.msra.mxu0 %v6834_v8  ;;  %v6883_v8 = vld [vmem:[#allocation23 + $0xf0] sm:$0xff]  }
 0xbfb   :  { %2485 = vmatprep.subr.bf16.mxu0 %v6842_v13  ;;  %v6885_v13 = vld [vmem:[#allocation23 + $0xb0] sm:$0xff]  }
 0xbfe   :  { %2486 = vmatpush1.bf16.msra.mxu0 %v6840_v15  ;;  %v6887_v15 = vld [vmem:[#allocation23 + $0xf8] sm:$0xff]  }
 0xbff   :  { %2487 = vmatprep.subr.bf16.mxu0 %v6848_v17  ;;  %v6889_v17 = vld [vmem:[#allocation23 + $0xb8] sm:$0xff]  }
 0xc4c   :  { %v1811_v19 = vpop.f32.mrb[20].mxu0 }
 0xc4d   :  { %v1818_v20 = vadd.f32 %v1811_v19, %v8167_v10  ;;  %v6532_v21 = vpop.f32.mrb[21].mxu0  ;;  %v6846_v19 = vld [vmem:[#allocation20 + $0xc0] ss:$16 sps:$4 sm:$0xff]  }
 0xc4e   :  { %v1814_v23 = vpop.f32.mrb[22].mxu0  ;;  %v6854_v21 = vld [vmem:[#allocation20 + $0xe4] ss:$16 sps:$4 sm:$0xff]   ;;  %2488 = vmatpush1.bf16.msra.mxu0 %v6846_v19  ;;  %v2309_v19 = vsub.s32 3, %v8017_v54 }
 0xc4f   :  { %v1819_v12 = vadd.f32 %v1814_v23, %v8169_v11  ;;  %v6533_v24 = vpop.f32.mrb[23].mxu0  ;;  %v6857_v23 = vld [vmem:[#allocation20 + $0xec] ss:$16 sps:$4 sm:$0xff]   ;;  %2489 = vmatprep.subr.bf16.mxu0 %v6854_v21 }
 0xc50   :  { %v6855_v24 = vld [vmem:[#allocation20 + $0xe8] ss:$16 sps:$4 sm:$0xff]  }
 0xcb7   :  { %v2070_v25 = vpop.f32.mrb[26].mxu1 }
 0xcb8   :  { %v6548_v26 = vpop.f32.mrb[27].mxu1 }
 0xcbb   :  { %v2146_v28 = vpop.f32.mrb[18].mxu0 }
 0xcbc   :  { %v2150_v29 = vpack.c.bf16 %v2146_v28, %v2070_v25  ;;  %v6553_v31 = vpop.f32.mrb[19].mxu0 }
 0xcbe   :  { %6559 = vmatmul.mubr.msk.bf16.vlgmr.msra.gmra.mrb[28].mxu1 %vm663_vm1, %v2150_v29 }
 0xcbf   :  { %2550 = vmatprep.mubr.bf16.mxu1 %v7614_v30  ;;  %2519 = vmatpush1.bf16.msra.mxu1 %v6813_v14  ;;  %v6859_v14 = vld [vmem:[#allocation23 + $0xc0] sm:$0xff]  }
 0xcc0   :  { %2520 = vmatprep.subr.bf16.mxu1 %v6821_v44  ;;  %v6862_v44 = vld [vmem:[#allocation23 + $0x48] sm:$0xff]  }
 0xcc3   :  { %2521 = vmatpush1.bf16.msra.mxu1 %v6819_v46  ;;  %v6864_v46 = vld [vmem:[#allocation23 + $0x8] sm:$0xff]  }
 0xcc4   :  { %2522 = vmatprep.subr.bf16.mxu1 %v6827_v60  ;;  %v6874_v60 = vld [vmem:[#allocation23 + $0x60] sm:$0xff]  }
 0xcc7   :  { %2523 = vmatpush1.bf16.msra.mxu1 %v6825_v62  ;;  %v6876_v62 = vld [vmem:[#allocation23 + $0x20] sm:$0xff]  }
 0xcc8   :  { %2524 = vmatprep.subr.bf16.mxu1 %v6833_v0  ;;  %v6878_v0 = vld [vmem:[#allocation23 + $0x68] sm:$0xff]  }
 0xccb   :  { %2525 = vmatpush1.bf16.msra.mxu1 %v6831_v3  ;;  %v6880_v3 = vld [vmem:[#allocation23 + $0x28] sm:$0xff]  }
 0xccc   :  { %2526 = vmatprep.subr.bf16.mxu1 %v6839_v7  ;;  %v6882_v7 = vld [vmem:[#allocation23 + $0x70] sm:$0xff]  }
 0xccf   :  { %2527 = vmatpush1.bf16.msra.mxu1 %v6837_v9  ;;  %v6884_v9 = vld [vmem:[#allocation23 + $0x30] sm:$0xff]  }
 0xcd0   :  { %2528 = vmatprep.subr.bf16.mxu1 %v6845_v1  ;;  %v6886_v1 = vld [vmem:[#allocation23 + $0x78] sm:$0xff]  }
 0xcd3   :  { %2529 = vmatpush1.bf16.msra.mxu1 %v6843_v16  ;;  %v6888_v16 = vld [vmem:[#allocation23 + $0x38] sm:$0xff]  }
 0xcd4   :  { %2530 = vmatprep.subr.bf16.mxu1 %v6851_v18  ;;  %v2293_v18 = vld [vmem:[#allocation22] sm:$0xf] }
 0xcd5   :  { %v2306_v21 = vrot.slane %v2293_v18, %v8023_v56 }
 0xd91   :  { %v2200_v32 = vpop.f32.mrb[28].mxu1 }
 0xd92   :  { %v2207_v34 = vadd.f32 %v2200_v32, %v1818_v20  ;;  %v6560_v35 = vpop.f32.mrb[29].mxu1  ;;  %v6849_v20 = vld [vmem:[#allocation20 + $0xc8] ss:$16 sps:$4 sm:$0xff]  }
 0xd93   :  { %v2203_v36 = vpop.f32.mrb[30].mxu1  ;;  %2531 = vmatpush1.bf16.msra.mxu1 %v6849_v20  ;;  %v6001_v35 = vld [vmem:[#allocation17] ss:$0 sm:$0xff]  ;;  %v2298_v20 = vrot.slane %v2293_v18, %v8020_v55 }
 0xd94   :  { %v2216_v10 = vadd.f32 %v6000_v33, %v2207_v34  ;;  %v2208_v37 = vadd.f32 %v2203_v36, %v1819_v12  ;;  %v6561_v5 = vpop.f32.mrb[31].mxu1  ;;  %v6852_v12 = vld [vmem:[#allocation20 + $0xe0] ss:$16 sps:$4 sm:$0xff]   ;;  %2532 = vmatprep.subr.bf16.mxu1 %v6857_v23  ;;  %v2302_v23 = vrot.slane %v2293_v18, %v8026_v58 }
 0xd95   :  { %2490 = vmatpush1.bf16.msra.mxu0 %v6852_v12  ;;  %v6002_v5 = vld [vmem:[#allocation19] ss:$0 sm:$0xff]  ;;  %v2310_v12 = vrot.slane %v2293_v18, %v2309_v19 }
 0xd96   :  { %v2217_v38 = vadd.f32 %v6000_v33, %v2208_v37  ;;  %v2218_v11 = vadd.f32 %v2216_v10, %v8007_v50  ;;  %6271 = vmatprep.subr.bf16.mxu0 %v6858_v41 }
 0xd97   :  { %2533 = vmatpush1.bf16.msra.mxu1 %v6855_v24 }
 0xd98   :  { %2222 = vadd.xlane.f32.xlu0 %v2218_v11  ;;  %v2219_v39 = vadd.f32 %v2217_v38, %v8009_v51  ;;  %6293 = vmatprep.subr.bf16.mxu1 %v6859_v14 }
 0xd9a   :  { %2224 = vadd.xlane.f32.xlu1 %v2219_v39 }
 0xe25   :  { %v2223_v50 = vpop.xlane.xlu0 %2222 }
 0xe26   :  { %v2226_v47 = vmul.f32 0.0078125, %v2223_v50  ;;  %v6865_v50 = vld [vmem:[#allocation23 + $0x88] sm:$0xff]  }
 0xe27   :  { %v2225_v51 = vpop.xlane.xlu1 %2224 }
 0xe28   :  { %v8221_v48 = vsub.f32 %v2218_v11, %v2226_v47  ;;  %v2227_v49 = vmul.f32 0.0078125, %v2225_v51  ;;  %v6866_v47 = vld [vmem:[#allocation23 + $0x50] sm:$0xff]  }
 0xe29   :  { %v6867_v51 = vld [vmem:[#allocation23 + $0xd0] sm:$0xff]  }
 0xe2a   :  { %v8223_v52 = vsub.f32 %v2219_v39, %v2227_v49  ;;  %v2230_v53 = vmul.f32 %v8221_v48, %v8221_v48  ;;  %v6869_v49 = vld [vmem:[#allocation23 + $0x90] sm:$0xff]  }
 0xe2c   :  { %2232 = vadd.xlane.f32.xlu0 %v2230_v53  ;;  %v2231_v57 = vmul.f32 %v8223_v52, %v8223_v52  ;;  %v6871_v53 = vld [vmem:[#allocation23 + $0xd8] sm:$0xff]  }
 0xe30   :  { %2234 = vadd.xlane.f32.xlu0 %v2231_v57  ;;  %v6872_v57 = vld [vmem:[#allocation23 + $0x18] sm:$0xff]  }
 0xeb9   :  { %v2233_v25 = vpop.xlane.xlu0 %2232 }
 0xeba   :  { %v2236_v26 = vmul.f32 0.0078125, %v2233_v25 }
 0xebc   :  { %v2238_v28 = vadd.f32 1e-12, %v2236_v26 }
 0xebd   :  { %v2235_v29 = vpop.xlane.xlu0 %2234 }
 0xebe   :  { %7062 = vrsqrt.f32 %v2238_v28  ;;  %v2237_v31 = vmul.f32 0.0078125, %v2235_v29 }
 0xec0   :  { %v2239_v32 = vadd.f32 1e-12, %v2237_v31 }
 0xec2   :  { %7064 = vrsqrt.f32 %v2239_v32 }
 0xec8   :  { %v7063_v33 = vpop.eup %7062 }
 0xec9   :  { %v2242_v34 = vmul.f32 %v7063_v33, %v8221_v48  ;;  %v6868_v48 = vld [vmem:[#allocation23 + $0x10] sm:$0xff]  }
 0xecb   :  { %v2250_v37 = vmul.f32 %v6001_v35, %v2242_v34 }
 0xecc   :  { %v7065_v36 = vpop.eup %7064 }
 0xecd   :  { %v2243_v10 = vmul.f32 %v7065_v36, %v8223_v52  ;;  %v8231_v11 = vadd.f32 %v6002_v5, %v2250_v37  ;;  %v6870_v52 = vld [vmem:[#allocation23 + $0x58] sm:$0xff]  }
 0xecf   :  { %v2251_v38 = vmul.f32 %v6001_v35, %v2243_v10 }
 0xed1   :  { %v8233_v39 = vadd.f32 %v6002_v5, %v2251_v38 }
 0xed3   :  { %v2260_v40 = vpack.c.bf16 %v8233_v39, %v8231_v11 }
 0xed5   :  { %2508 = vmatmul.mubr.bf16.vlgmr.msra.gmra.mrb[24].mxu0 %v2260_v40  ;;  %2551 = vmatmul.mubr.bf16.vlgmr.msra.gmra.mrb[32].mxu1 %v2260_v40 }
 0xed6   :  { %6272 = vmatpush3.bf16.msra.mxu0 %v6860_v42  ;;  %6294 = vmatpush3.bf16.msra.mxu1 %v6861_v43 }
 0xed7   :  { %6273 = vmatprep.subr.bf16.mxu0 %v6862_v44  ;;  %6295 = vmatprep.subr.bf16.mxu1 %v6863_v45 }
 0xeda   :  { %6274 = vmatpush3.bf16.msra.mxu0 %v6864_v46  ;;  %6296 = vmatpush3.bf16.msra.mxu1 %v6865_v50 }
 0xedb   :  { %6275 = vmatprep.subr.bf16.mxu0 %v6866_v47  ;;  %6297 = vmatprep.subr.bf16.mxu1 %v6867_v51 }
 0xede   :  { %6276 = vmatpush3.bf16.msra.mxu0 %v6868_v48  ;;  %6298 = vmatpush3.bf16.msra.mxu1 %v6869_v49 }
 0xedf   :  { %6277 = vmatprep.subr.bf16.mxu0 %v6870_v52  ;;  %6299 = vmatprep.subr.bf16.mxu1 %v6871_v53 }
 0xee2   :  { %6278 = vmatpush3.bf16.msra.mxu0 %v6872_v57  ;;  %6300 = vmatpush3.bf16.msra.mxu1 %v6873_v59 }
 0xee3   :  { %6279 = vmatprep.subr.bf16.mxu0 %v6874_v60  ;;  %6301 = vmatprep.subr.bf16.mxu1 %v6875_v61 }
 0xee6   :  { %6280 = vmatpush3.bf16.msra.mxu0 %v6876_v62  ;;  %6302 = vmatpush3.bf16.msra.mxu1 %v6877_v63 }
 0xee7   :  { %6281 = vmatprep.subr.bf16.mxu0 %v6878_v0  ;;  %6303 = vmatprep.subr.bf16.mxu1 %v6879_v2 }
 0xeea   :  { %6282 = vmatpush3.bf16.msra.mxu0 %v6880_v3  ;;  %6304 = vmatpush3.bf16.msra.mxu1 %v6881_v6 }
 0xeeb   :  { %6283 = vmatprep.subr.bf16.mxu0 %v6882_v7  ;;  %6305 = vmatprep.subr.bf16.mxu1 %v6883_v8 }
 0xeee   :  { %6284 = vmatpush3.bf16.msra.mxu0 %v6884_v9  ;;  %6306 = vmatpush3.bf16.msra.mxu1 %v6885_v13 }
 0xeef   :  { %6285 = vmatprep.subr.bf16.mxu0 %v6886_v1  ;;  %6307 = vmatprep.subr.bf16.mxu1 %v6887_v15 }
 0xef2   :  { %6286 = vmatpush3.bf16.msra.mxu0 %v6888_v16  ;;  %6308 = vmatpush3.bf16.msra.mxu1 %v6889_v17 }
 0xef3   :  { %6562 = vmatprep.subr.bf16.mxu1 %v7613_v4 }
 0xfa8   :  { %v2509_v24 = vpop.f32.mrb[24].mxu0  ;;  %v2552_v25 = vpop.f32.mrb[32].mxu1 }
 0xfa9   :  { %v8244_v26 = vadd.f32 %v2509_v24, %v2298_v20  ;;  %v8246_v28 = vadd.f32 %v2552_v25, %v2306_v21  ;;  %v2511_v29 = vpop.f32.mrb[25].mxu0  ;;  %v2554_v31 = vpop.f32.mrb[33].mxu1 }
 0xfaa   :  { %v8248_v32 = vadd.f32 %v2511_v29, %v2302_v23  ;;  %v8250_v33 = vadd.f32 %v2554_v31, %v2310_v12  ;;  %v2513_v34 = vpop.f32.mrb[26].mxu0  ;;  %v2556_v35 = vpop.f32.mrb[34].mxu1 }
 0xfab   :  { %v2569_v36 = vmul.f32 0.044715, %v8244_v26  ;;  %v2571_v10 = vmul.f32 0.044715, %v8246_v28  ;;  %v2514_v37 = vadd.f32 %v2513_v34, %v2298_v20  ;;  %v2557_v5 = vadd.f32 %v2556_v35, %v2306_v21  ;;  %v2515_v38 = vpop.f32.mrb[27].mxu0  ;;  %v2558_v40 = vpop.f32.mrb[35].mxu1 }
 0xfac   :  { %v2570_v41 = vmul.f32 0.044715, %v8248_v32  ;;  %v2572_v14 = vmul.f32 0.044715, %v8250_v33  ;;  %v8256_v42 = vadd.f32 %v2515_v38, %v2302_v23  ;;  %v8258_v43 = vadd.f32 %v2558_v40, %v2310_v12 }
 0xfad   :  { %v2577_v44 = vmul.f32 %v2569_v36, %v8244_v26  ;;  %v2579_v45 = vmul.f32 %v2571_v10, %v8246_v28  ;;  %v2573_v46 = vmul.f32 0.044715, %v2514_v37  ;;  %v2575_v50 = vmul.f32 0.044715, %v2557_v5 }
 0xfae   :  { %v2578_v47 = vmul.f32 %v2570_v41, %v8248_v32  ;;  %v2580_v51 = vmul.f32 %v2572_v14, %v8250_v33  ;;  %v2574_v48 = vmul.f32 0.044715, %v8256_v42  ;;  %v2576_v49 = vmul.f32 0.044715, %v8258_v43 }
 0xfaf   :  { %v2585_v52 = vmul.f32 %v2577_v44, %v8244_v26  ;;  %v2587_v53 = vmul.f32 %v2579_v45, %v8246_v28  ;;  %v2581_v57 = vmul.f32 %v2573_v46, %v2514_v37  ;;  %v2583_v59 = vmul.f32 %v2575_v50, %v2557_v5 }
 0xfb0   :  { %v2586_v60 = vmul.f32 %v2578_v47, %v8248_v32  ;;  %v2588_v61 = vmul.f32 %v2580_v51, %v8250_v33  ;;  %v2582_v62 = vmul.f32 %v2574_v48, %v8256_v42  ;;  %v2584_v63 = vmul.f32 %v2576_v49, %v8258_v43 }
 0xfb1   :  { %v2593_v0 = vadd.f32 %v2585_v52, %v8244_v26  ;;  %v2595_v2 = vadd.f32 %v2587_v53, %v8246_v28  ;;  %v2589_v3 = vmul.f32 %v2581_v57, %v2514_v37  ;;  %v2591_v6 = vmul.f32 %v2583_v59, %v2557_v5 }
 0xfb2   :  { %v2590_v7 = vmul.f32 %v2582_v62, %v8256_v42  ;;  %v2592_v8 = vmul.f32 %v2584_v63, %v8258_v43  ;;  %v2594_v16 = vadd.f32 %v2586_v60, %v8248_v32  ;;  %v2596_v21 = vadd.f32 %v2588_v61, %v8250_v33 }
 0xfb3   :  { %v2601_v9 = vmul.f32 0.7978846, %v2593_v0  ;;  %v2603_v13 = vmul.f32 0.7978846, %v2595_v2  ;;  %v2597_v1 = vadd.f32 %v2589_v3, %v2514_v37  ;;  %v2599_v15 = vadd.f32 %v2591_v6, %v2557_v5 }
 0xfb4   :  { %v2598_v17 = vadd.f32 %v2590_v7, %v8256_v42  ;;  %v2602_v23 = vmul.f32 0.7978846, %v2594_v16  ;;  %v2600_v24 = vadd.f32 %v2592_v8, %v8258_v43  ;;  %v2604_v25 = vmul.f32 0.7978846, %v2596_v21 }
 0xfb5   :  { %7066 = vtanh.f32 %v2601_v9  ;;  %v2605_v18 = vmul.f32 0.7978846, %v2597_v1  ;;  %v2607_v20 = vmul.f32 0.7978846, %v2599_v15  ;;  %v2561_v40 = vmul.f32 0.5, %v8244_v26 }
 0xfb6   :  { %7068 = vtanh.f32 %v2603_v13  ;;  %v2606_v12 = vmul.f32 0.7978846, %v2598_v17  ;;  %v2608_v29 = vmul.f32 0.7978846, %v2600_v24  ;;  %v2565_v41 = vmul.f32 0.5, %v2514_v37 }
 0xfb7   :  { %7070 = vtanh.f32 %v2605_v18  ;;  %v2563_v45 = vmul.f32 0.5, %v8246_v28  ;;  %v2567_v46 = vmul.f32 0.5, %v2557_v5  ;;  %v2562_v51 = vmul.f32 0.5, %v8248_v32 }
 0xfb8   :  { %7072 = vtanh.f32 %v2607_v20  ;;  %v2566_v57 = vmul.f32 0.5, %v8256_v42  ;;  %v2564_v37 = vmul.f32 0.5, %v8250_v33  ;;  %v2568_v62 = vmul.f32 0.5, %v8258_v43  ;;  %v6035_v42 = vld [vmem:[#allocation25] ss:$0 sm:$0xff] }
 0xfb9   :  { %7074 = vtanh.f32 %v2602_v23 }
 0xfba   :  { %7076 = vtanh.f32 %v2606_v12 }
 0xfbb   :  { %7078 = vtanh.f32 %v2604_v25 }
 0xfbc   :  { %7080 = vtanh.f32 %v2608_v29 }
 0xfbf   :  { %v7067_v31 = vpop.eup %7066 }
 0xfc0   :  { %v7069_v34 = vpop.eup %7068  ;;  %v2617_v35 = vadd.f32 1.0, %v7067_v31 }
 0xfc1   :  { %v7071_v36 = vpop.eup %7070  ;;  %v2619_v10 = vadd.f32 1.0, %v7069_v34 }
 0xfc2   :  { %v7073_v38 = vpop.eup %7072  ;;  %v2621_v14 = vadd.f32 1.0, %v7071_v36  ;;  %v2625_v49 = vmul.f32 %v2617_v35, %v2561_v40  ;;  %v6890_v35 = vld [vmem:[#allocation11 + $0xc0] ss:$12 sps:$4 sm:$0xff]   ;;  %v6892_v36 = vld [vmem:[#allocation11 + $0xc4] ss:$12 sps:$4 sm:$0xff]  }
 0xfc3   :  { %v7075_v44 = vpop.eup %7074  ;;  %v2623_v50 = vadd.f32 1.0, %v7073_v38  ;;  %v2627_v60 = vmul.f32 %v2619_v10, %v2563_v45  ;;  %v6893_v10 = vld [vmem:[#allocation11 + $0xc8] ss:$12 sps:$4 sm:$0xff]   ;;  %3204 = vmatprep.subr.bf16.mxu0 %v6892_v36  ;;  %v6894_v40 = vld [vmem:[#allocation11 + $0xd8] ss:$12 sps:$4 sm:$0xff]  }
 0xfc4   :  { %v7077_v47 = vpop.eup %7076  ;;  %v2618_v48 = vadd.f32 1.0, %v7075_v44  ;;  %v2629_v52 = vmul.f32 %v2621_v14, %v2565_v41  ;;  %v6896_v38 = vld [vmem:[#allocation11 + $0xdc] ss:$12 sps:$4 sm:$0xff]  }
 0xfc5   :  { %v7079_v53 = vpop.eup %7078  ;;  %v2622_v59 = vadd.f32 1.0, %v7077_v47  ;;  %v2631_v61 = vmul.f32 %v2623_v50, %v2567_v46  ;;  %v6897_v47 = vld [vmem:[#allocation11 + $0xe0] ss:$12 sps:$4 sm:$0xff]  }
 0xfc6   :  { %v7081_v26 = vpop.eup %7080  ;;  %v2620_v28 = vadd.f32 1.0, %v7079_v53  ;;  %v2633_v5 = vpack.c.bf16 %v2629_v52, %v2625_v49  ;;  %v2626_v63 = vmul.f32 %v2618_v48, %v2562_v51  ;;  %v6900_v51 = vld [vmem:[#allocation11 + $0xf4] ss:$12 sps:$4 sm:$0xff]   ;;  %v6898_v48 = vld [vmem:[#allocation11 + $0xf0] ss:$12 sps:$4 sm:$0xff]  }
 0xfc7   :  { %v2630_v0 = vmul.f32 %v2622_v59, %v2566_v57  ;;  %v2624_v2 = vadd.f32 1.0, %v7081_v26  ;;  %v2635_v32 = vpack.c.bf16 %v2631_v61, %v2627_v60  ;;  %v6901_v49 = vld [vmem:[#allocation11 + $0xf8] ss:$12 sps:$4 sm:$0xff]   ;;  %v6902_v53 = vld [vmem:[#allocation11 + $0x108] ss:$12 sps:$4 sm:$0xff]  }
 0xfc8   :  { %v2628_v6 = vmul.f32 %v2620_v28, %v2564_v37  ;;  %v6904_v52 = vld [vmem:[#allocation11 + $0x10c] ss:$12 sps:$4 sm:$0xff]   ;;  %v6905_v57 = vld [vmem:[#allocation11 + $0x110] ss:$12 sps:$4 sm:$0xff]   ;;  %v6909_v61 = vld [vmem:[#allocation11 + $0x128] ss:$12 sps:$4 sm:$0xff]  }
 0xfc9   :  { %v2634_v3 = vpack.c.bf16 %v2630_v0, %v2626_v63  ;;  %v2632_v7 = vmul.f32 %v2624_v2, %v2568_v62  ;;  %v6906_v59 = vld [vmem:[#allocation11 + $0x120] ss:$12 sps:$4 sm:$0xff]   ;;  %v6908_v60 = vld [vmem:[#allocation11 + $0x124] ss:$12 sps:$4 sm:$0xff]   ;;  %v6912_v26 = vld [vmem:[#allocation11 + $0x13c] ss:$12 sps:$4 sm:$0xff]  }
 0xfca   :  { %v6910_v37 = vld [vmem:[#allocation11 + $0x138] ss:$12 sps:$4 sm:$0xff]   ;;  %v6913_v62 = vld [vmem:[#allocation11 + $0x140] ss:$12 sps:$4 sm:$0xff]   ;;  %v6918_v2 = vld [vmem:[#allocation11 + $0x168] ss:$12 sps:$4 sm:$0xff]  }
 0xfcb   :  { %2932 = vmatprep.mubr.bf16.mxu0 %v2634_v3  ;;  %v2636_v8 = vpack.c.bf16 %v2632_v7, %v2628_v6  ;;  %v6916_v28 = vld [vmem:[#allocation11 + $0x154] ss:$12 sps:$4 sm:$0xff]   ;;  %v6917_v63 = vld [vmem:[#allocation11 + $0x158] ss:$12 sps:$4 sm:$0xff]  }
 0xfcc   :  { %2933 = vmatmul.mubr.bf16.vlgmr.msra.gmra.mrb[28].mxu0 %v2633_v5  ;;  %v6914_v5 = vld [vmem:[#allocation11 + $0x150] ss:$12 sps:$4 sm:$0xff]   ;;  %v6920_v0 = vld [vmem:[#allocation11 + $0x16c] ss:$12 sps:$4 sm:$0xff]  }
 0xfcd   :  { %2973 = vmatprep.mubr.bf16.mxu1 %v2636_v8  ;;  %3236 = vmatprep.mubr.bf16.mxu0 %v7614_v30 }
 0xfce   :  { %2974 = vmatmul.mubr.bf16.vlgmr.msra.gmra.mrb[36].mxu1 %v2635_v32  ;;  %3205 = vmatpush1.bf16.msra.mxu0 %v6890_v35  ;;  %v6921_v32 = vld [vmem:[#allocation11 + $0x170] ss:$12 sps:$4 sm:$0xff]  }
 0xfcf   :  { %6578 = vmatprep.mubr.msk.bf16.mxu1 %vm7615_vm0, %v7613_v4  ;;  %6563 = vmatpush3.bf16.msra.mxu1 %v6893_v10 }
 0xfd0   :  { %6564 = vmatprep.subr.bf16.mxu1 %v7613_v4  ;;  %3206 = vmatprep.subr.bf16.mxu0 %v6896_v38 }
 0xfd2   :  { %3207 = vmatpush1.bf16.msra.mxu0 %v6894_v40 }
 0xfd3   :  { %6565 = vmatpush3.bf16.msra.mxu1 %v6897_v47  ;;  %3208 = vmatprep.subr.bf16.mxu0 %v6900_v51 }
 0xfd4   :  { %6566 = vmatprep.subr.bf16.mxu1 %v7613_v4 }
 0xfd6   :  { %3209 = vmatpush1.bf16.msra.mxu0 %v6898_v48 }
 0xfd7   :  { %6567 = vmatpush3.bf16.msra.mxu1 %v6901_v49  ;;  %3210 = vmatprep.subr.bf16.mxu0 %v6904_v52 }
 0xfd8   :  { %6568 = vmatprep.subr.bf16.mxu1 %v7613_v4 }
 0xfda   :  { %3211 = vmatpush1.bf16.msra.mxu0 %v6902_v53 }
 0xfdb   :  { %6569 = vmatpush3.bf16.msra.mxu1 %v6905_v57  ;;  %3212 = vmatprep.subr.bf16.mxu0 %v6908_v60 }
 0xfdc   :  { %6570 = vmatprep.subr.bf16.mxu1 %v7613_v4 }
 0xfde   :  { %3213 = vmatpush1.bf16.msra.mxu0 %v6906_v59 }
 0xfdf   :  { %6571 = vmatpush3.bf16.msra.mxu1 %v6909_v61  ;;  %3214 = vmatprep.subr.bf16.mxu0 %v6912_v26 }
 0xfe0   :  { %6572 = vmatprep.subr.bf16.mxu1 %v7613_v4 }
 0xfe2   :  { %3215 = vmatpush1.bf16.msra.mxu0 %v6910_v37 }
 0xfe3   :  { %6573 = vmatpush3.bf16.msra.mxu1 %v6913_v62  ;;  %3216 = vmatprep.subr.bf16.mxu0 %v6916_v28 }
 0xfe4   :  { %6574 = vmatprep.subr.bf16.mxu1 %v7613_v4 }
 0xfe6   :  { %3217 = vmatpush1.bf16.msra.mxu0 %v6914_v5 }
 0xfe7   :  { %6575 = vmatpush3.bf16.msra.mxu1 %v6917_v63  ;;  %3218 = vmatprep.subr.bf16.mxu0 %v6920_v0 }
 0xfe8   :  { %6576 = vmatprep.subr.bf16.mxu1 %v7613_v4 }
 0xfea   :  { %3219 = vmatpush1.bf16.msra.mxu0 %v6918_v2 }
 0xfeb   :  { %6577 = vmatpush3.bf16.msra.mxu1 %v6921_v32  ;;  %6582 = vmatprep.subr.mxu0 %v7613_v4 }
 0xfec   :  { %6592 = vmatprep.subr.mxu1 %v7613_v4 }
0x109f   :  { %v6287_v33 = vpop.f32.mrb[28].mxu0 }
0x10a0   :  { %v6288_v43 = vpop.f32.mrb[29].mxu0 }
0x10a1   :  { %v6309_v9 = vpop.f32.mrb[36].mxu1  ;;  %v6289_v13 = vadd.f32 %v6288_v43, %v6287_v33  ;;  %v6290_v1 = vpop.f32.mrb[30].mxu0 }
0x10a2   :  { %v6310_v15 = vpop.f32.mrb[37].mxu1  ;;  %v6291_v16 = vpop.f32.mrb[31].mxu0 }
0x10a3   :  { %v2935_v17 = vadd.f32 %v6289_v13, %v6035_v42  ;;  %v6311_v18 = vadd.f32 %v6310_v15, %v6309_v9  ;;  %v6312_v20 = vpop.f32.mrb[38].mxu1  ;;  %v6292_v21 = vadd.f32 %v6291_v16, %v6290_v1  ;;  %v6068_v13 = vld [vmem:[#allocation26] ss:$0 sm:$0xff] }
0x10a4   :  { %v6313_v23 = vpop.f32.mrb[39].mxu1 }
0x10a5   :  { %v2976_v12 = vadd.f32 %v6311_v18, %v2935_v17  ;;  %v2938_v24 = vadd.f32 %v6292_v21, %v6035_v42  ;;  %v6314_v25 = vadd.f32 %v6313_v23, %v6312_v20  ;;  %v6069_v17 = vld [vmem:[#allocation28] ss:$0 sm:$0xff] }
0x10a7   :  { %v2979_v29 = vadd.f32 %v6314_v25, %v2938_v24  ;;  %v2982_v31 = vadd.f32 %v2976_v12, %v8231_v11  ;;  %v3059_v12 = vld [vmem:[#allocation13 + $0x3] sm:$0x7] }
0x10a8   :  { %v3064_v24 = vrot.slane %v3059_v12, %v8020_v55  ;;  %v3072_v25 = vrot.slane %v3059_v12, %v8023_v56 }
0x10a9   :  { %2986 = vadd.xlane.f32.xlu0 %v2982_v31  ;;  %v2983_v34 = vadd.f32 %v2979_v29, %v8233_v39  ;;  %v3068_v29 = vrot.slane %v3059_v12, %v8026_v58 }
0x10ad   :  { %2988 = vadd.xlane.f32.xlu0 %v2983_v34 }
0x1136   :  { %v2987_v41 = vpop.xlane.xlu0 %2986 }
0x1137   :  { %v2990_v14 = vmul.f32 0.0078125, %v2987_v41 }
0x1139   :  { %v8292_v44 = vsub.f32 %v2982_v31, %v2990_v14 }
0x113a   :  { %v2989_v11 = vpop.xlane.xlu0 %2988 }
0x113b   :  { %v2991_v45 = vmul.f32 0.0078125, %v2989_v11  ;;  %v2994_v39 = vmul.f32 %v8292_v44, %v8292_v44 }
0x113d   :  { %v2993_v46 = vsub.f32 %v2983_v34, %v2991_v45  ;;  %2996 = vadd.xlane.f32.xlu0 %v2994_v39 }
0x113f   :  { %v2995_v50 = vmul.f32 %v2993_v46, %v2993_v46 }
0x1141   :  { %2998 = vadd.xlane.f32.xlu1 %v2995_v50 }
0x11ca   :  { %v2997_v3 = vpop.xlane.xlu0 %2996 }
0x11cb   :  { %v3000_v6 = vmul.f32 0.0078125, %v2997_v3 }
0x11cd   :  { %v3002_v7 = vadd.f32 1e-12, %v3000_v6 }
0x11ce   :  { %v2999_v8 = vpop.xlane.xlu1 %2998 }
0x11cf   :  { %7082 = vrsqrt.f32 %v3002_v7  ;;  %v3001_v33 = vmul.f32 0.0078125, %v2999_v8 }
0x11d1   :  { %v3003_v42 = vadd.f32 1e-12, %v3001_v33 }
0x11d3   :  { %7084 = vrsqrt.f32 %v3003_v42 }
0x11d9   :  { %v7083_v43 = vpop.eup %7082 }
0x11da   :  { %v3006_v9 = vmul.f32 %v7083_v43, %v8292_v44 }
0x11dc   :  { %v3014_v16 = vmul.f32 %v6068_v13, %v3006_v9 }
0x11dd   :  { %v7085_v1 = vpop.eup %7084 }
0x11de   :  { %v3007_v15 = vmul.f32 %v7085_v1, %v2993_v46  ;;  %v8305_v20 = vadd.f32 %v6069_v17, %v3014_v16 }
0x11e0   :  { %v3015_v18 = vmul.f32 %v6068_v13, %v3007_v15 }
0x11e2   :  { %v8307_v21 = vadd.f32 %v6069_v17, %v3015_v18 }
0x11e4   :  { %v3024_v23 = vpack.c.bf16 %v8307_v21, %v8305_v20 }
0x11e6   :  { %3237 = vmatmul.mubr.bf16.vlgmr.msra.gmra.mrb[32].mxu0 %v3024_v23  ;;  %6579 = vmatmul.mubr.bf16.vlgmr.msra.gmra.mrb[40].mxu1 %v3024_v23 }
0x11e7   :  { %6584 = vmatprep.mubr.msk.f32.mxu0 %vm7615_vm0, %v7613_v4  ;;  %6594 = vmatprep.mubr.msk.f32.mxu1 %vm7615_vm0, %v7613_v4 }
0x12b9   :  { %v3238_v31 = vpop.f32.mrb[32].mxu0  ;;  %v3281_v34 = vpop.f32.mrb[40].mxu1 }
0x12ba   :  { %v3239_v35 = vadd.f32 %v3238_v31, %v3064_v24  ;;  %v8318_v36 = vadd.f32 %v3281_v34, %v3072_v25  ;;  %v3240_v10 = vpop.f32.mrb[33].mxu0  ;;  %v6580_v38 = vpop.f32.mrb[41].mxu1 }
0x12bb   :  { %v8320_v40 = vadd.f32 %v3240_v10, %v3068_v29  ;;  %v3242_v41 = vpop.f32.mrb[34].mxu0  ;;  %v3284_v14 = vpop.f32.mrb[42].mxu1 }
0x12bc   :  { %v3244_v44 = vpop.f32.mrb[35].mxu0  ;;  %v6581_v11 = vpop.f32.mrb[43].mxu1  ;;  %6593 = vmatpush3.msra.mxu1 %v8318_v36  ;;  %v8326_v45 = vmul.f32 0.17677669, %v3239_v35  ;;  %v3243_v39 = vadd.f32 %v3242_v41, %v3064_v24  ;;  %v8340_v47 = vadd.f32 %v3284_v14, %v3072_v25 }
0x12bd   :  { %6583 = vmatpush3.xpose.msk.msra.mxu0 %vm663_vm1, %v8320_v40  ;;  %6602 = vmatprep.subr.mxu1 %v7613_v4  ;;  %v8329_v46 = vadd.f32 %v3244_v44, %v3068_v29 }
0x12be   :  { %6587 = vmatprep.subr.mxu0 %v7613_v4  ;;  %v8337_v50 = vmul.f32 0.17677669, %v3243_v39 }
0x12c0   :  { %6585 = vmatmul.mubr.msk.f32.vlgmr.msra.gmra.mrb[36].mxu0 %vm663_vm1, %v8326_v45 }
0x12c1   :  { %6588 = vmatpush3.xpose.msk.msra.mxu0 %vm663_vm1, %v8329_v46  ;;  %6589 = vmatprep.mubr.msk.f32.mxu0 %vm7615_vm0, %v7613_v4 }
0x12c2   :  { %6597 = vmatprep.subr.mxu0 %v7613_v4 }
0x12c4   :  { %6590 = vmatmul.mubr.msk.f32.vlgmr.msra.gmra.mrb[38].mxu0 %vm663_vm1, %v8337_v50 }
0x12c5   :  { %6598 = vmatpush3.msra.mxu0 %v8340_v47  ;;  %6599 = vmatprep.mubr.msk.f32.mxu0 %vm7615_vm0, %v7613_v4 }
0x12c6   :  { %6607 = vmatprep.subr.mxu0 %v7613_v4 }
0x1393   :  { %v3379_v51 = vpop.f32.mrb[36].mxu0 }
0x1394   :  { %v3380_v48 = vadd.f32 %v3379_v51, %v8063_v22  ;;  %v6586_v49 = vpop.f32.mrb[37].mxu0 }
0x1396   :  { %v3459_v52 = vsel %vm816_vm2, %v3380_v48, -inf }
0x1397   :  { %3460 = vmax.xlane.f32.xlu0 %v3459_v52  ;;  %v3455_v53 = vpop.f32.mrb[38].mxu0 }
0x1398   :  { %v3456_v57 = vadd.f32 %v3455_v53, %v8067_v27  ;;  %v6591_v59 = vpop.f32.mrb[39].mxu0 }
0x139a   :  { %v3462_v60 = vsel %vm816_vm2, %v3456_v57, -inf }
0x139b   :  { %3463 = vmax.xlane.f32.xlu1 %v3462_v60 }
0x13ac   :  { %3708 = vrot.lane.b32.xlu1 %v8329_v46, %s7617_s19 }
0x13b0   :  { %3628 = vrot.lane.b32.xlu1 %v8326_v45, %s7617_s19 }
0x1424   :  { %v3461_v61 = vpop.xlane.xlu0 %3460 }
0x1425   :  { %v3465_v26 = vsub.f32 %v3380_v48, %v3461_v61 }
0x1427   :  { %v3467_v37 = vmul.f32 1.442695, %v3465_v26  ;;  %v6924_v26 = vld [vmem:[#allocation14 + $0x50] sm:$0xff]  }
0x1428   :  { %v3464_v62 = vpop.xlane.xlu1 %3463 }
0x1429   :  { %7086 = vpow2.f32 %v3467_v37  ;;  %v3466_v28 = vsub.f32 %v3456_v57, %v3464_v62 }
0x142b   :  { %v3469_v5 = vmul.f32 1.442695, %v3466_v28  ;;  %v6922_v28 = vld [vmem:[#allocation14 + $0x40] sm:$0xff]  }
0x142c   :  { %v3709_v3 = vpop.permute.xlu1 %3708 }
0x142d   :  { %7088 = vpow2.f32 %v3469_v5  ;;  %v6925_v5 = vld [vmem:[#allocation14 + $0x58] sm:$0xff]  }
0x1430   :  { %v3629_v6 = vpop.permute.xlu1 %3628 }
0x1433   :  { %v7087_v63 = vpop.eup %7086 }
0x1434   :  { %v3471_v0 = vsel %vm816_vm2, %v7087_v63, 0.0 }
0x1435   :  { %3472 = vadd.xlane.f32.xlu0 %v3471_v0 }
0x1437   :  { %v7089_v2 = vpop.eup %7088 }
0x1438   :  { %v3474_v32 = vsel %vm816_vm2, %v7089_v2, 0.0 }
0x1439   :  { %3475 = vadd.xlane.f32.xlu1 %v3474_v32 }
0x144a   :  { %3706 = vrot.lane.b32.xlu1 %v8337_v50, %s7617_s19 }
0x144b   :  { %3630 = vrot.lane.b32.xlu0 %v8320_v40, %s7617_s19 }
0x14c2   :  { %v3473_v7 = vpop.xlane.xlu0 %3472 }
0x14c3   :  { %7090 = vrcp.f32 %v3473_v7 }
0x14c6   :  { %v3476_v8 = vpop.xlane.xlu1 %3475  ;;  %v3631_v43 = vpop.permute.xlu0 %3630 }
0x14c7   :  { %7092 = vrcp.f32 %v3476_v8 }
0x14ca   :  { %v3707_v1 = vpop.permute.xlu1 %3706 }
0x14cd   :  { %v7091_v33 = vpop.eup %7090 }
0x14ce   :  { %v3478_v42 = vmul.f32 %v7091_v33, %v7087_v63  ;;  %v6923_v63 = vld [vmem:[#allocation14 + $0x48] sm:$0xff]  }
0x14d0   :  { %6595 = vmatmul.mubr.msk.f32.vlgmr.msra.gmra.mrb[44].mxu1 %vm816_vm2, %v3478_v42 }
0x14d1   :  { %v7093_v9 = vpop.eup %7092  ;;  %6603 = vmatpush3.xpose.msk.msra.mxu1 %vm663_vm1, %v3631_v43  ;;  %6604 = vmatprep.mubr.msk.f32.mxu1 %vm7615_vm0, %v7613_v4 }
0x14d2   :  { %v3480_v13 = vmul.f32 %v7093_v9, %v7089_v2  ;;  %6612 = vmatprep.subr.mxu1 %v7613_v4 }
0x14d4   :  { %6600 = vmatmul.mubr.msk.f32.vlgmr.msra.gmra.mrb[40].mxu0 %vm816_vm2, %v3480_v13  ;;  %6605 = vmatmul.mubr.msk.f32.vlgmr.msra.gmra.mrb[46].mxu1 %vm663_vm1, %v3629_v6 }
0x14d5   :  { %6608 = vmatpush3.xpose.msk.msra.mxu0 %vm663_vm1, %v3709_v3  ;;  %6609 = vmatprep.mubr.msk.f32.mxu0 %vm7615_vm0, %v7613_v4 }
0x14d6   :  { %6617 = vmatprep.subr.mxu0 %v7613_v4  ;;  %6614 = vmatprep.mubr.msk.f32.mxu1 %vm7615_vm0, %v7613_v4 }
0x14d8   :  { %6610 = vmatmul.mubr.msk.f32.vlgmr.msra.gmra.mrb[42].mxu0 %vm663_vm1, %v3707_v1 }
0x14d9   :  { %6619 = vmatprep.mubr.msk.f32.mxu0 %vm7615_vm0, %v7613_v4 }
0x15a3   :  { %v8378_v15 = vpop.f32.mrb[44].mxu1 }
0x15a4   :  { %v6596_v16 = vpop.f32.mrb[45].mxu1 }
0x15a7   :  { %v8380_v17 = vpop.f32.mrb[40].mxu0  ;;  %v3702_v18 = vpop.f32.mrb[46].mxu1 }
0x15a8   :  { %v3627_v23 = vpack.c.bf16 %v8380_v17, %v8378_v15  ;;  %v3703_v12 = vadd.f32 %v3702_v18, %v8063_v22  ;;  %v6601_v24 = vpop.f32.mrb[41].mxu0  ;;  %v6606_v25 = vpop.f32.mrb[47].mxu1 }
0x15aa   :  { %v3784_v29 = vsel %vm816_vm2, %v3703_v12, -inf }
0x15ab   :  { %3785 = vmax.xlane.f32.xlu0 %v3784_v29  ;;  %v3780_v31 = vpop.f32.mrb[42].mxu0 }
0x15ac   :  { %v3781_v34 = vadd.f32 %v3780_v31, %v8067_v27  ;;  %v6611_v35 = vpop.f32.mrb[43].mxu0 }
0x15ae   :  { %v3787_v10 = vsel %vm816_vm2, %v3781_v34, -inf }
0x15af   :  { %3788 = vmax.xlane.f32.xlu1 %v3787_v10 }
0x15c0   :  { %3884 = vrot.lane.b32.xlu1 %v8340_v47, %s7617_s19 }
0x15c4   :  { %4153 = vrot.lane.b32.xlu1 %v8329_v46, %s8672_s27 }
0x15c8   :  { %4151 = vrot.lane.b32.xlu1 %v8337_v50, %s8672_s27 }
0x15cc   :  { %4073 = vrot.lane.b32.xlu1 %v8326_v45, %s8672_s27 }
0x15d0   :  { %4464 = vrot.lane.b32.xlu1 %v8320_v40, %s7618_s28 }
0x1638   :  { %v3786_v38 = vpop.xlane.xlu0 %3785 }
0x1639   :  { %v3790_v41 = vsub.f32 %v3703_v12, %v3786_v38 }
0x163b   :  { %v3792_v14 = vmul.f32 1.442695, %v3790_v41 }
0x163c   :  { %v3789_v44 = vpop.xlane.xlu1 %3788 }
0x163d   :  { %7094 = vpow2.f32 %v3792_v14  ;;  %v3791_v11 = vsub.f32 %v3781_v34, %v3789_v44 }
0x163f   :  { %v3794_v39 = vmul.f32 1.442695, %v3791_v11 }
0x1640   :  { %v3885_v51 = vpop.permute.xlu1 %3884 }
0x1641   :  { %7096 = vpow2.f32 %v3794_v39  ;;  %6618 = vmatpush3.msra.mxu0 %v3885_v51 }
0x1642   :  { %6630 = vmatprep.subr.bf16.mxu0 %v7613_v4 }
0x1644   :  { %v4154_v0 = vpop.permute.xlu1 %4153 }
0x1647   :  { %v7095_v48 = vpop.eup %7094 }
0x1648   :  { %v3796_v49 = vsel %vm816_vm2, %v7095_v48, 0.0  ;;  %v4152_v2 = vpop.permute.xlu1 %4151 }
0x1649   :  { %3797 = vadd.xlane.f32.xlu0 %v3796_v49 }
0x164b   :  { %v7097_v52 = vpop.eup %7096 }
0x164c   :  { %v3799_v53 = vsel %vm816_vm2, %v7097_v52, 0.0  ;;  %v4074_v9 = vpop.permute.xlu1 %4073 }
0x164d   :  { %3800 = vadd.xlane.f32.xlu0 %v3799_v53 }
0x1650   :  { %v4465_v39 = vpop.permute.xlu1 %4464 }
0x1663   :  { %3807 = vrot.lane.b32.xlu0 %v8318_v36, %s7617_s19 }
0x1667   :  { %4075 = vrot.lane.b32.xlu0 %v8320_v40, %s8672_s27 }
0x16d6   :  { %v3798_v57 = vpop.xlane.xlu0 %3797 }
0x16d7   :  { %7098 = vrcp.f32 %v3798_v57 }
0x16da   :  { %v3801_v59 = vpop.xlane.xlu0 %3800 }
0x16db   :  { %7100 = vrcp.f32 %v3801_v59 }
0x16de   :  { %v3808_v60 = vpop.permute.xlu0 %3807 }
0x16df   :  { %6613 = vmatpush3.msra.mxu1 %v3808_v60 }
0x16e0   :  { %6622 = vmatprep.subr.bf16.mxu1 %v7613_v4 }
0x16e1   :  { %v7099_v61 = vpop.eup %7098 }
0x16e2   :  { %v3803_v37 = vmul.f32 %v7099_v61, %v7095_v48  ;;  %v4076_v33 = vpop.permute.xlu0 %4075 }
0x16e4   :  { %6615 = vmatmul.mubr.msk.f32.vlgmr.msra.gmra.mrb[48].mxu1 %vm816_vm2, %v3803_v37 }
0x16e5   :  { %v7101_v62 = vpop.eup %7100  ;;  %6623 = vmatpush3.bf16.msra.mxu1 %v6924_v26  ;;  %6626 = vmatprep.mubr.msk.bf16.mxu1 %vm7615_vm0, %v7613_v4 }
0x16e6   :  { %v3805_v40 = vmul.f32 %v7101_v62, %v7097_v52  ;;  %6624 = vmatprep.subr.bf16.mxu1 %v7613_v4 }
0x16e8   :  { %6620 = vmatmul.mubr.msk.f32.vlgmr.msra.gmra.mrb[44].mxu0 %vm816_vm2, %v3805_v40 }
0x16e9   :  { %6631 = vmatpush3.bf16.msra.mxu0 %v6922_v28  ;;  %6634 = vmatprep.mubr.msk.bf16.mxu0 %vm7615_vm0, %v7613_v4 }
0x16ea   :  { %6632 = vmatprep.subr.bf16.mxu0 %v7613_v4  ;;  %6625 = vmatpush3.bf16.msra.mxu1 %v6925_v5 }
0x16eb   :  { %6638 = vmatprep.subr.mxu1 %v7613_v4 }
0x16ed   :  { %6633 = vmatpush3.bf16.msra.mxu0 %v6923_v63 }
0x16ee   :  { %6643 = vmatprep.subr.mxu0 %v7613_v4 }
0x16f0   :  { %6635 = vmatmul.mubr.msk.bf16.vlgmr.msra.gmra.mrb[48].mxu0 %vm663_vm1, %v3627_v23 }
0x16f1   :  { %6645 = vmatprep.mubr.msk.f32.mxu0 %vm7615_vm0, %v7613_v4 }
0x16f6   :  { %6644 = vmatpush3.xpose.msk.msra.mxu0 %vm663_vm1, %v4154_v0 }
0x16f7   :  { %6653 = vmatprep.subr.mxu0 %v7613_v4 }
0x16f9   :  { %6646 = vmatmul.mubr.msk.f32.vlgmr.msra.gmra.mrb[46].mxu0 %vm663_vm1, %v4152_v2 }
0x16fa   :  { %6655 = vmatprep.mubr.msk.f32.mxu0 %vm7615_vm0, %v7613_v4 }
0x17b7   :  { %v3879_v32 = vpop.f32.mrb[48].mxu1 }
0x17b8   :  { %v6616_v3 = vpop.f32.mrb[49].mxu1 }
0x17bb   :  { %v3956_v6 = vpop.f32.mrb[44].mxu0 }
0x17bc   :  { %v3960_v7 = vpack.c.bf16 %v3956_v6, %v3879_v32  ;;  %v6621_v8 = vpop.f32.mrb[45].mxu0 }
0x17be   :  { %6627 = vmatmul.mubr.msk.bf16.vlgmr.msra.gmra.mrb[52].mxu1 %vm663_vm1, %v3960_v7 }
0x17bf   :  { %6639 = vmatpush3.xpose.msk.msra.mxu1 %vm663_vm1, %v4076_v33  ;;  %6640 = vmatprep.mubr.msk.f32.mxu1 %vm7615_vm0, %v7613_v4  ;;  %v6926_v33 = vld [vmem:[#allocation14 + $0x60] sm:$0xff]  }
0x17c0   :  { %6648 = vmatprep.subr.mxu1 %v7613_v4 }
0x17c3   :  { %v4066_v42 = vpop.f32.mrb[48].mxu0 }
0x17c4   :  { %v6636_v43 = vpop.f32.mrb[49].mxu0 }
0x17c5   :  { %v4069_v13 = vpop.f32.mrb[50].mxu0 }
0x17c6   :  { %v6637_v1 = vpop.f32.mrb[51].mxu0  ;;  %6641 = vmatmul.mubr.msk.f32.vlgmr.msra.gmra.mrb[50].mxu1 %vm663_vm1, %v4074_v9 }
0x17c7   :  { %6650 = vmatprep.mubr.msk.f32.mxu1 %vm7615_vm0, %v7613_v4 }
0x17cc   :  { %v4225_v15 = vpop.f32.mrb[46].mxu0 }
0x17cd   :  { %v4226_v16 = vadd.f32 %v4225_v15, %v8067_v27  ;;  %v6647_v17 = vpop.f32.mrb[47].mxu0 }
0x17cf   :  { %v4232_v18 = vsel %vm816_vm2, %v4226_v16, -inf }
0x17d0   :  { %4233 = vmax.xlane.f32.xlu0 %v4232_v18 }
0x17e6   :  { %4327 = vrot.lane.b32.xlu0 %v8340_v47, %s8672_s27 }
0x17ea   :  { %4462 = vrot.lane.b32.xlu0 %v8326_v45, %s7618_s28 }
0x17ee   :  { %4540 = vrot.lane.b32.xlu0 %v8337_v50, %s7618_s28 }
0x185d   :  { %v4234_v23 = vpop.xlane.xlu0 %4233 }
0x185e   :  { %v4236_v12 = vsub.f32 %v4226_v16, %v4234_v23 }
0x1860   :  { %v4239_v24 = vmul.f32 1.442695, %v4236_v12 }
0x1861   :  { %v4328_v25 = vpop.permute.xlu0 %4327 }
0x1862   :  { %7102 = vpow2.f32 %v4239_v24  ;;  %6654 = vmatpush3.msra.mxu0 %v4328_v25 }
0x1863   :  { %6666 = vmatprep.subr.mxu0 %v7613_v4 }
0x1865   :  { %v4463_v49 = vpop.permute.xlu0 %4462 }
0x1869   :  { %v4541_v53 = vpop.permute.xlu0 %4540 }
0x186c   :  { %v7103_v29 = vpop.eup %7102 }
0x186d   :  { %v4244_v31 = vsel %vm816_vm2, %v7103_v29, 0.0 }
0x186e   :  { %4245 = vadd.xlane.f32.xlu1 %v4244_v31 }
0x187f   :  { %4542 = vrot.lane.b32.xlu1 %v8329_v46, %s7618_s28 }
0x1891   :  { %v4010_v34 = vpop.f32.mrb[52].mxu1 }
0x1892   :  { %v8444_v45 = vadd.f32 %v4066_v42, %v4010_v34  ;;  %v6628_v35 = vpop.f32.mrb[53].mxu1  ;;  %v6927_v42 = vld [vmem:[#allocation14 + $0x68] sm:$0xff]  }
0x1893   :  { %v4013_v50 = vpop.f32.mrb[54].mxu1 }
0x1894   :  { %v8446_v10 = vadd.f32 %v4069_v13, %v4013_v50  ;;  %v6629_v38 = vpop.f32.mrb[55].mxu1 }
0x1899   :  { %v4147_v41 = vpop.f32.mrb[50].mxu1 }
0x189a   :  { %v6642_v14 = vpop.f32.mrb[51].mxu1  ;;  %v4148_v44 = vadd.f32 %v4147_v41, %v8063_v22  ;;  %v6928_v41 = vld [vmem:[#allocation14 + $0x70] sm:$0xff]  }
0x189b   :  { %v6929_v14 = vld [vmem:[#allocation14 + $0x78] sm:$0xff]  }
0x189c   :  { %v4229_v11 = vsel %vm816_vm2, %v4148_v44, -inf }
0x18a3   :  { %4230 = vmax.xlane.f32.xlu1 %v4229_v11 }
0x18fb   :  { %v4246_v51 = vpop.xlane.xlu1 %4245 }
0x18fc   :  { %7104 = vrcp.f32 %v4246_v51 }
0x18ff   :  { %v4543_v52 = vpop.permute.xlu1 %4542 }
0x1906   :  { %v7105_v48 = vpop.eup %7104 }
0x1907   :  { %v4250_v46 = vmul.f32 %v7105_v48, %v7103_v29 }
0x1909   :  { %6656 = vmatmul.mubr.msk.f32.vlgmr.msra.gmra.mrb[52].mxu0 %vm816_vm2, %v4250_v46 }
0x190a   :  { %6667 = vmatpush3.xpose.msk.msra.mxu0 %vm663_vm1, %v4465_v39  ;;  %6668 = vmatprep.mubr.msk.f32.mxu0 %vm7615_vm0, %v7613_v4 }
0x190b   :  { %6671 = vmatprep.subr.mxu0 %v7613_v4 }
0x190d   :  { %6669 = vmatmul.mubr.msk.f32.vlgmr.msra.gmra.mrb[54].mxu0 %vm663_vm1, %v4463_v49 }
0x190e   :  { %6672 = vmatpush3.xpose.msk.msra.mxu0 %vm663_vm1, %v4543_v52  ;;  %6673 = vmatprep.mubr.msk.f32.mxu0 %vm7615_vm0, %v7613_v4 }
0x190f   :  { %6676 = vmatprep.subr.mxu0 %v7613_v4 }
0x1911   :  { %6674 = vmatmul.mubr.msk.f32.vlgmr.msra.gmra.mrb[56].mxu0 %vm663_vm1, %v4541_v53 }
0x1912   :  { %6678 = vmatprep.mubr.msk.f32.mxu0 %vm7615_vm0, %v7613_v4 }
0x1930   :  { %v4231_v57 = vpop.xlane.xlu1 %4230 }
0x1931   :  { %v4235_v59 = vsub.f32 %v4148_v44, %v4231_v57 }
0x1933   :  { %v4237_v60 = vmul.f32 1.442695, %v4235_v59 }
0x1935   :  { %7106 = vpow2.f32 %v4237_v60 }
0x193f   :  { %v7107_v61 = vpop.eup %7106 }
0x1940   :  { %v4241_v26 = vsel %vm816_vm2, %v7107_v61, 0.0 }
0x1941   :  { %4242 = vadd.xlane.f32.xlu0 %v4241_v26 }
0x1957   :  { %4251 = vrot.lane.b32.xlu0 %v8318_v36, %s8672_s27 }
0x195b   :  { %4716 = vrot.lane.b32.xlu0 %v8340_v47, %s7618_s28 }
0x19ce   :  { %v4243_v37 = vpop.xlane.xlu0 %4242 }
0x19cf   :  { %7108 = vrcp.f32 %v4243_v37 }
0x19d2   :  { %v4252_v62 = vpop.permute.xlu0 %4251 }
0x19d3   :  { %6649 = vmatpush3.msra.mxu1 %v4252_v62 }
0x19d4   :  { %6658 = vmatprep.subr.bf16.mxu1 %v7613_v4 }
0x19d6   :  { %v4717_v25 = vpop.permute.xlu0 %4716 }
0x19d9   :  { %v7109_v28 = vpop.eup %7108 }
0x19da   :  { %v4248_v40 = vmul.f32 %v7109_v28, %v7107_v61  ;;  %v6130_v61 = vld [vmem:[#allocation16 + $0x1] ss:$0 sm:$0xff] }
0x19dc   :  { %6651 = vmatmul.mubr.msk.f32.vlgmr.msra.gmra.mrb[56].mxu1 %vm816_vm2, %v4248_v40  ;;  %v4399_v5 = vpop.f32.mrb[52].mxu0 }
0x19dd   :  { %v6657_v63 = vpop.f32.mrb[53].mxu0  ;;  %6662 = vmatprep.mubr.msk.bf16.mxu1 %vm7615_vm0, %v7613_v4  ;;  %6659 = vmatpush3.bf16.msra.mxu1 %v6926_v33 }
0x19de   :  { %6660 = vmatprep.subr.bf16.mxu1 %v7613_v4 }
0x19e0   :  { %v4536_v0 = vpop.f32.mrb[54].mxu0 }
0x19e1   :  { %v4537_v2 = vadd.f32 %v4536_v0, %v8063_v22  ;;  %v6670_v32 = vpop.f32.mrb[55].mxu0  ;;  %6661 = vmatpush3.bf16.msra.mxu1 %v6927_v42  ;;  %v6930_v0 = vld [vmem:[#allocation20 + $0x100] ss:$16 sps:$4 sm:$0xff]  }
0x19e2   :  { %6681 = vmatprep.subr.mxu1 %v7613_v4  ;;  %v6933_v32 = vld [vmem:[#allocation20 + $0x108] ss:$16 sps:$4 sm:$0xff]  }
0x19e3   :  { %v4618_v47 = vsel %vm816_vm2, %v4537_v2, -inf }
0x19e4   :  { %4619 = vmax.xlane.f32.xlu1 %v4618_v47  ;;  %v4614_v3 = vpop.f32.mrb[56].mxu0  ;;  %v6935_v47 = vld [vmem:[#allocation20 + $0x10c] ss:$16 sps:$4 sm:$0xff]  }
0x19e5   :  { %v4615_v6 = vadd.f32 %v4614_v3, %v8067_v27  ;;  %v6675_v7 = vpop.f32.mrb[57].mxu0  ;;  %v6941_v3 = vld [vmem:[#allocation20 + $0x12c] ss:$16 sps:$4 sm:$0xff]  }
0x19e6   :  { %v6939_v7 = vld [vmem:[#allocation20 + $0x128] ss:$16 sps:$4 sm:$0xff]  }
0x19e7   :  { %v4621_v8 = vsel %vm816_vm2, %v4615_v6, -inf }
0x19e8   :  { %4622 = vmax.xlane.f32.xlu1 %v4621_v8 }
0x1a71   :  { %v4620_v22 = vpop.xlane.xlu1 %4619 }
0x1a72   :  { %v4624_v43 = vsub.f32 %v4537_v2, %v4620_v22  ;;  %v6932_v2 = vld [vmem:[#allocation20 + $0x104] ss:$16 sps:$4 sm:$0xff]  }
0x1a74   :  { %v4626_v9 = vmul.f32 1.442695, %v4624_v43 }
0x1a75   :  { %v4623_v13 = vpop.xlane.xlu1 %4622 }
0x1a76   :  { %7110 = vpow2.f32 %v4626_v9  ;;  %v4625_v1 = vsub.f32 %v4615_v6, %v4623_v13  ;;  %v6936_v6 = vld [vmem:[#allocation20 + $0x120] ss:$16 sps:$4 sm:$0xff]   ;;  %v6944_v13 = vld [vmem:[#allocation20 + $0x144] ss:$16 sps:$4 sm:$0xff]  }
0x1a78   :  { %v4628_v15 = vmul.f32 1.442695, %v4625_v1  ;;  %v6947_v1 = vld [vmem:[#allocation20 + $0x14c] ss:$16 sps:$4 sm:$0xff]  }
0x1a7a   :  { %7112 = vpow2.f32 %v4628_v15  ;;  %v6942_v15 = vld [vmem:[#allocation20 + $0x140] ss:$16 sps:$4 sm:$0xff]  }
0x1a80   :  { %v7111_v27 = vpop.eup %7110 }
0x1a81   :  { %v4630_v16 = vsel %vm816_vm2, %v7111_v27, 0.0 }
0x1a82   :  { %4631 = vadd.xlane.f32.xlu1 %v4630_v16  ;;  %v6950_v16 = vld [vmem:[#allocation20 + $0x164] ss:$16 sps:$4 sm:$0xff]  }
0x1a84   :  { %v7113_v17 = vpop.eup %7112 }
0x1a85   :  { %v4633_v18 = vsel %vm816_vm2, %v7113_v17, 0.0 }
0x1a86   :  { %4634 = vadd.xlane.f32.xlu1 %v4633_v18  ;;  %v6948_v18 = vld [vmem:[#allocation20 + $0x160] ss:$16 sps:$4 sm:$0xff]  }
0x1a97   :  { %4640 = vrot.lane.b32.xlu1 %v8318_v36, %s7618_s28 }
0x1aaf   :  { %v4323_v23 = vpop.f32.mrb[56].mxu1 }
0x1ab0   :  { %v4403_v12 = vpack.c.bf16 %v4399_v5, %v4323_v23  ;;  %v6652_v24 = vpop.f32.mrb[57].mxu1  ;;  %v6951_v23 = vld [vmem:[#allocation20 + $0x168] ss:$16 sps:$4 sm:$0xff]  }
0x1ab1   :  { %v6956_v24 = vld [vmem:[#allocation20 + $0x184] ss:$16 sps:$4 sm:$0xff]  }
0x1ab2   :  { %6663 = vmatmul.mubr.msk.bf16.vlgmr.msra.gmra.mrb[60].mxu1 %vm663_vm1, %v4403_v12  ;;  %v6954_v12 = vld [vmem:[#allocation20 + $0x180] ss:$16 sps:$4 sm:$0xff]  }
0x1ab3   :  { %6682 = vmatpush3.msra.mxu1 %v4717_v25  ;;  %6683 = vmatprep.mubr.msk.f32.mxu1 %vm7615_vm0, %v7613_v4  ;;  %v6957_v25 = vld [vmem:[#allocation20 + $0x188] ss:$16 sps:$4 sm:$0xff]  }
0x1ab4   :  { %5122 = vmatprep.subr.bf16.mxu1 %v6932_v2  ;;  %v6980_v2 = vld [vmem:[#allocation23 + $0x100] sm:$0xff]  }
0x1b0f   :  { %v4632_v29 = vpop.xlane.xlu1 %4631 }
0x1b10   :  { %7114 = vrcp.f32 %v4632_v29  ;;  %v6959_v29 = vld [vmem:[#allocation20 + $0x18c] ss:$16 sps:$4 sm:$0xff]  }
0x1b13   :  { %v4635_v31 = vpop.xlane.xlu1 %4634 }
0x1b14   :  { %7116 = vrcp.f32 %v4635_v31  ;;  %v6962_v31 = vld [vmem:[#allocation20 + $0x1a4] ss:$16 sps:$4 sm:$0xff]  }
0x1b17   :  { %v4641_v34 = vpop.permute.xlu1 %4640 }
0x1b18   :  { %6677 = vmatpush3.msra.mxu0 %v4641_v34  ;;  %v6965_v34 = vld [vmem:[#allocation20 + $0x1ac] ss:$16 sps:$4 sm:$0xff]  }
0x1b19   :  { %6686 = vmatprep.subr.bf16.mxu0 %v7613_v4 }
0x1b1a   :  { %v7115_v35 = vpop.eup %7114 }
0x1b1b   :  { %v4637_v36 = vmul.f32 %v7115_v35, %v7111_v27  ;;  %v6945_v27 = vld [vmem:[#allocation20 + $0x148] ss:$16 sps:$4 sm:$0xff]   ;;  %v6960_v35 = vld [vmem:[#allocation20 + $0x1a0] ss:$16 sps:$4 sm:$0xff]  }
0x1b1d   :  { %6679 = vmatmul.mubr.msk.f32.vlgmr.msra.gmra.mrb[58].mxu0 %vm816_vm2, %v4637_v36  ;;  %v6963_v36 = vld [vmem:[#allocation20 + $0x1a8] ss:$16 sps:$4 sm:$0xff]  }
0x1b1e   :  { %v7117_v50 = vpop.eup %7116  ;;  %6690 = vmatprep.mubr.msk.bf16.mxu0 %vm7615_vm0, %v7613_v4  ;;  %6687 = vmatpush3.bf16.msra.mxu0 %v6928_v41  ;;  %v6966_v41 = vld [vmem:[#allocation20 + $0x1c0] ss:$16 sps:$4 sm:$0xff]  }
0x1b1f   :  { %v4639_v38 = vmul.f32 %v7117_v50, %v7113_v17  ;;  %6688 = vmatprep.subr.bf16.mxu0 %v7613_v4  ;;  %v6953_v17 = vld [vmem:[#allocation20 + $0x16c] ss:$16 sps:$4 sm:$0xff]   ;;  %v6968_v50 = vld [vmem:[#allocation20 + $0x1c4] ss:$16 sps:$4 sm:$0xff]  }
0x1b21   :  { %6684 = vmatmul.mubr.msk.f32.vlgmr.msra.gmra.mrb[58].mxu1 %vm816_vm2, %v4639_v38  ;;  %v6971_v38 = vld [vmem:[#allocation20 + $0x1cc] ss:$16 sps:$4 sm:$0xff]  }
0x1b22   :  { %5154 = vmatprep.mubr.bf16.mxu1 %v7614_v30  ;;  %6689 = vmatpush3.bf16.msra.mxu0 %v6929_v14  ;;  %v6969_v14 = vld [vmem:[#allocation20 + $0x1c8] ss:$16 sps:$4 sm:$0xff]  }
0x1b23   :  { %5165 = vmatprep.subr.bf16.mxu0 %v6935_v47  ;;  %5123 = vmatpush1.bf16.msra.mxu1 %v6930_v0  ;;  %v6979_v0 = vld [vmem:[#allocation23 + $0x1c0] sm:$0xff]   ;;  %v6982_v47 = vld [vmem:[#allocation23 + $0x148] sm:$0xff]  }
0x1b85   :  { %v4453_v44 = vpop.f32.mrb[60].mxu1 }
0x1b86   :  { %v4460_v11 = vadd.f32 %v4453_v44, %v8444_v45  ;;  %v6664_v39 = vpop.f32.mrb[61].mxu1  ;;  %v6974_v44 = vld [vmem:[#allocation20 + $0x1e4] ss:$16 sps:$4 sm:$0xff]  }
0x1b87   :  { %v4456_v51 = vpop.f32.mrb[62].mxu1  ;;  %v6972_v39 = vld [vmem:[#allocation20 + $0x1e0] ss:$16 sps:$4 sm:$0xff]  }
0x1b88   :  { %v4461_v48 = vadd.f32 %v4456_v51, %v8446_v10  ;;  %v6665_v46 = vpop.f32.mrb[63].mxu1  ;;  %v6975_v51 = vld [vmem:[#allocation20 + $0x1e8] ss:$16 sps:$4 sm:$0xff]  }
0x1bf0   :  { %v4712_v49 = vpop.f32.mrb[58].mxu0 }
0x1bf1   :  { %v6680_v52 = vpop.f32.mrb[59].mxu0 }
0x1bf4   :  { %v4788_v53 = vpop.f32.mrb[58].mxu1 }
0x1bf5   :  { %v4792_v57 = vpack.c.bf16 %v4788_v53, %v4712_v49  ;;  %v6685_v59 = vpop.f32.mrb[59].mxu1 }
0x1bf7   :  { %6691 = vmatmul.mubr.msk.bf16.vlgmr.msra.gmra.mrb[60].mxu0 %vm663_vm1, %v4792_v57 }
0x1bf8   :  { %5197 = vmatprep.mubr.bf16.mxu0 %v7614_v30  ;;  %v6938_v30 = vld [vmem:[#allocation20 + $0x124] ss:$16 sps:$4 sm:$0xff]   ;;  %5166 = vmatpush1.bf16.msra.mxu0 %v6933_v32  ;;  %v6981_v32 = vld [vmem:[#allocation23 + $0x180] sm:$0xff]  }
0x1bf9   :  { %5124 = vmatprep.subr.bf16.mxu1 %v6938_v30  ;;  %5167 = vmatprep.subr.bf16.mxu0 %v6941_v3  ;;  %v6983_v30 = vld [vmem:[#allocation23 + $0x1c8] sm:$0xff]  }
0x1bfa   :  { %5125 = vmatpush1.bf16.msra.mxu1 %v6936_v6  ;;  %v6984_v3 = vld [vmem:[#allocation23 + $0x108] sm:$0xff]  }
0x1bfb   :  { %5126 = vmatprep.subr.bf16.mxu1 %v6944_v13  ;;  %v6985_v6 = vld [vmem:[#allocation23 + $0x188] sm:$0xff]   ;;  %v6995_v13 = vld [vmem:[#allocation23 + $0x1e0] sm:$0xff]  }
0x1bfc   :  { %5168 = vmatpush1.bf16.msra.mxu0 %v6939_v7  ;;  %v6986_v7 = vld [vmem:[#allocation23 + $0x150] sm:$0xff]  }
0x1bfd   :  { %5169 = vmatprep.subr.bf16.mxu0 %v6947_v1  ;;  %v6996_v1 = vld [vmem:[#allocation23 + $0x120] sm:$0xff]  }
0x1bfe   :  { %5127 = vmatpush1.bf16.msra.mxu1 %v6942_v15  ;;  %v6997_v15 = vld [vmem:[#allocation23 + $0x1a0] sm:$0xff]  }
0x1bff   :  { %5128 = vmatprep.subr.bf16.mxu1 %v6950_v16  ;;  %v6999_v16 = vld [vmem:[#allocation23 + $0x1e8] sm:$0xff]  }
0x1c00   :  { %5170 = vmatpush1.bf16.msra.mxu0 %v6945_v27  ;;  %v6998_v27 = vld [vmem:[#allocation23 + $0x168] sm:$0xff]  }
0x1c01   :  { %5171 = vmatprep.subr.bf16.mxu0 %v6953_v17  ;;  %v7000_v17 = vld [vmem:[#allocation23 + $0x128] sm:$0xff]  }
0x1c02   :  { %5129 = vmatpush1.bf16.msra.mxu1 %v6948_v18  ;;  %v7001_v18 = vld [vmem:[#allocation23 + $0x1a8] sm:$0xff]  }
0x1c03   :  { %5130 = vmatprep.subr.bf16.mxu1 %v6956_v24  ;;  %v7004_v24 = vld [vmem:[#allocation23 + $0x130] sm:$0xff]  }
0x1c04   :  { %5172 = vmatpush1.bf16.msra.mxu0 %v6951_v23  ;;  %v7002_v23 = vld [vmem:[#allocation23 + $0x170] sm:$0xff]  }
0x1c05   :  { %5173 = vmatprep.subr.bf16.mxu0 %v6959_v29  ;;  %v7006_v29 = vld [vmem:[#allocation23 + $0x178] sm:$0xff]  }
0x1c06   :  { %5131 = vmatpush1.bf16.msra.mxu1 %v6954_v12  ;;  %v7003_v12 = vld [vmem:[#allocation23 + $0x1f0] sm:$0xff]  }
0x1c07   :  { %5132 = vmatprep.subr.bf16.mxu1 %v6962_v31  ;;  %v7007_v31 = vld [vmem:[#allocation23 + $0x1f8] sm:$0xff]  }
0x1c08   :  { %5174 = vmatpush1.bf16.msra.mxu0 %v6957_v25  ;;  %v7005_v25 = vld [vmem:[#allocation23 + $0x1b0] sm:$0xff]  }
0x1c09   :  { %5175 = vmatprep.subr.bf16.mxu0 %v6965_v34  ;;  %v7008_v34 = vld [vmem:[#allocation23 + $0x138] sm:$0xff]  }
0x1c0a   :  { %5133 = vmatpush1.bf16.msra.mxu1 %v6960_v35  ;;  %v7009_v35 = vld [vmem:[#allocation23 + $0x1b8] sm:$0xff]  }
0x1c0b   :  { %5134 = vmatprep.subr.bf16.mxu1 %v6968_v50 }
0x1c0c   :  { %5176 = vmatpush1.bf16.msra.mxu0 %v6963_v36  ;;  %v4940_v36 = vld [vmem:[#allocation22 + $0x4] sm:$0xf] }
0x1c0d   :  { %5177 = vmatprep.subr.bf16.mxu0 %v6971_v38  ;;  %v4945_v50 = vrot.slane %v4940_v36, %v8020_v55  ;;  %v4953_v38 = vrot.slane %v4940_v36, %v8023_v56 }
0x1c0e   :  { %5135 = vmatpush1.bf16.msra.mxu1 %v6966_v41  ;;  %v4949_v41 = vrot.slane %v4940_v36, %v8026_v58 }
0x1c0f   :  { %5136 = vmatprep.subr.bf16.mxu1 %v6974_v44 }
0x1c10   :  { %5178 = vmatpush1.bf16.msra.mxu0 %v6969_v14  ;;  %v4957_v14 = vrot.slane %v4940_v36, %v2309_v19 }
0x1c12   :  { %5137 = vmatpush1.bf16.msra.mxu1 %v6972_v39 }
0x1cca   :  { %v4842_v60 = vpop.f32.mrb[60].mxu0 }
0x1ccb   :  { %v4849_v26 = vadd.f32 %v4842_v60, %v4460_v11  ;;  %v6692_v37 = vpop.f32.mrb[61].mxu0  ;;  %v6977_v11 = vld [vmem:[#allocation20 + $0x1ec] ss:$16 sps:$4 sm:$0xff]  }
0x1ccc   :  { %v4845_v62 = vpop.f32.mrb[62].mxu0  ;;  %5179 = vmatprep.subr.bf16.mxu0 %v6977_v11 }
0x1ccd   :  { %v4859_v45 = vadd.f32 %v6130_v61, %v4849_v26  ;;  %v4850_v28 = vadd.f32 %v4845_v62, %v4461_v48  ;;  %v6693_v40 = vpop.f32.mrb[63].mxu0  ;;  %5180 = vmatpush1.bf16.msra.mxu0 %v6975_v51 }
0x1cce   :  { %6390 = vmatprep.subr.bf16.mxu0 %v6979_v0 }
0x1ccf   :  { %v4860_v5 = vadd.f32 %v6130_v61, %v4850_v28  ;;  %v4861_v10 = vadd.f32 %v4859_v45, %v8305_v20  ;;  %v6131_v61 = vld [vmem:[#allocation17 + $0x1] ss:$0 sm:$0xff]  ;;  %v6132_v45 = vld [vmem:[#allocation19 + $0x1] ss:$0 sm:$0xff] }
0x1cd1   :  { %4867 = vadd.xlane.f32.xlu0 %v4861_v10  ;;  %v4862_v63 = vadd.f32 %v4860_v5, %v8307_v21 }
0x1cd3   :  { %4869 = vadd.xlane.f32.xlu1 %v4862_v63 }
0x1d5e   :  { %v4868_v20 = vpop.xlane.xlu0 %4867 }
0x1d5f   :  { %v4871_v8 = vmul.f32 0.0078125, %v4868_v20  ;;  %v6987_v20 = vld [vmem:[#allocation23 + $0x1d0] sm:$0xff]  }
0x1d60   :  { %v4870_v21 = vpop.xlane.xlu1 %4869 }
0x1d61   :  { %v8498_v33 = vsub.f32 %v4861_v10, %v4871_v8  ;;  %v4872_v42 = vmul.f32 0.0078125, %v4870_v21  ;;  %v6988_v8 = vld [vmem:[#allocation23 + $0x110] sm:$0xff]  }
0x1d62   :  { %v6989_v21 = vld [vmem:[#allocation23 + $0x190] sm:$0xff]  }
0x1d63   :  { %v8500_v22 = vsub.f32 %v4862_v63, %v4872_v42  ;;  %v4875_v43 = vmul.f32 %v8498_v33, %v8498_v33  ;;  %v6978_v63 = vld [vmem:[#allocation23 + $0x140] sm:$0xff]   ;;  %v6991_v42 = vld [vmem:[#allocation23 + $0x1d8] sm:$0xff]  }
0x1d64   :  { %6368 = vmatprep.subr.bf16.mxu1 %v6978_v63 }
0x1d65   :  { %4877 = vadd.xlane.f32.xlu0 %v4875_v43  ;;  %v4876_v9 = vmul.f32 %v8500_v22, %v8500_v22  ;;  %v6993_v43 = vld [vmem:[#allocation23 + $0x198] sm:$0xff]  }
0x1d69   :  { %4879 = vadd.xlane.f32.xlu0 %v4876_v9  ;;  %v6994_v9 = vld [vmem:[#allocation23 + $0x160] sm:$0xff]  }
0x1df2   :  { %v4878_v48 = vpop.xlane.xlu0 %4877 }
0x1df3   :  { %v4881_v46 = vmul.f32 0.0078125, %v4878_v48 }
0x1df5   :  { %v4883_v49 = vadd.f32 1e-12, %v4881_v46 }
0x1df6   :  { %v4880_v52 = vpop.xlane.xlu0 %4879 }
0x1df7   :  { %7118 = vrsqrt.f32 %v4883_v49  ;;  %v4882_v53 = vmul.f32 0.0078125, %v4880_v52 }
0x1df9   :  { %v4884_v57 = vadd.f32 1e-12, %v4882_v53 }
0x1dfb   :  { %7120 = vrsqrt.f32 %v4884_v57 }
0x1e01   :  { %v7119_v59 = vpop.eup %7118 }
0x1e02   :  { %v4887_v60 = vmul.f32 %v7119_v59, %v8498_v33  ;;  %v6990_v33 = vld [vmem:[#allocation23 + $0x158] sm:$0xff]  }
0x1e04   :  { %v4895_v62 = vmul.f32 %v6131_v61, %v4887_v60 }
0x1e05   :  { %v7121_v26 = vpop.eup %7120 }
0x1e06   :  { %v4888_v37 = vmul.f32 %v7121_v26, %v8500_v22  ;;  %v8508_v40 = vadd.f32 %v6132_v45, %v4895_v62  ;;  %v6992_v22 = vld [vmem:[#allocation23 + $0x118] sm:$0xff]  }
0x1e08   :  { %v4896_v28 = vmul.f32 %v6131_v61, %v4888_v37 }
0x1e0a   :  { %v8510_v5 = vadd.f32 %v6132_v45, %v4896_v28 }
0x1e0c   :  { %v4905_v10 = vpack.c.bf16 %v8510_v5, %v8508_v40 }
0x1e0e   :  { %5155 = vmatmul.mubr.bf16.vlgmr.msra.gmra.mrb[64].mxu1 %v4905_v10  ;;  %5198 = vmatmul.mubr.bf16.vlgmr.msra.gmra.mrb[64].mxu0 %v4905_v10 }
0x1e0f   :  { %6369 = vmatpush3.bf16.msra.mxu1 %v6980_v2  ;;  %6391 = vmatpush3.bf16.msra.mxu0 %v6981_v32 }
0x1e10   :  { %6370 = vmatprep.subr.bf16.mxu1 %v6982_v47  ;;  %6392 = vmatprep.subr.bf16.mxu0 %v6983_v30 }
0x1e13   :  { %6371 = vmatpush3.bf16.msra.mxu1 %v6984_v3  ;;  %6393 = vmatpush3.bf16.msra.mxu0 %v6985_v6 }
0x1e14   :  { %6372 = vmatprep.subr.bf16.mxu1 %v6986_v7  ;;  %6394 = vmatprep.subr.bf16.mxu0 %v6987_v20 }
0x1e17   :  { %6373 = vmatpush3.bf16.msra.mxu1 %v6988_v8  ;;  %6395 = vmatpush3.bf16.msra.mxu0 %v6989_v21 }
0x1e18   :  { %6374 = vmatprep.subr.bf16.mxu1 %v6990_v33  ;;  %6396 = vmatprep.subr.bf16.mxu0 %v6991_v42 }
0x1e1b   :  { %6375 = vmatpush3.bf16.msra.mxu1 %v6992_v22  ;;  %6397 = vmatpush3.bf16.msra.mxu0 %v6993_v43 }
0x1e1c   :  { %6376 = vmatprep.subr.bf16.mxu1 %v6994_v9  ;;  %6398 = vmatprep.subr.bf16.mxu0 %v6995_v13 }
0x1e1f   :  { %6377 = vmatpush3.bf16.msra.mxu1 %v6996_v1  ;;  %6399 = vmatpush3.bf16.msra.mxu0 %v6997_v15 }
0x1e20   :  { %6378 = vmatprep.subr.bf16.mxu1 %v6998_v27  ;;  %6400 = vmatprep.subr.bf16.mxu0 %v6999_v16 }
0x1e23   :  { %6379 = vmatpush3.bf16.msra.mxu1 %v7000_v17  ;;  %6401 = vmatpush3.bf16.msra.mxu0 %v7001_v18 }
0x1e24   :  { %6380 = vmatprep.subr.bf16.mxu1 %v7002_v23  ;;  %6402 = vmatprep.subr.bf16.mxu0 %v7003_v12 }
0x1e27   :  { %6381 = vmatpush3.bf16.msra.mxu1 %v7004_v24  ;;  %6403 = vmatpush3.bf16.msra.mxu0 %v7005_v25 }
0x1e28   :  { %6382 = vmatprep.subr.bf16.mxu1 %v7006_v29  ;;  %6404 = vmatprep.subr.bf16.mxu0 %v7007_v31 }
0x1e2b   :  { %6383 = vmatpush3.bf16.msra.mxu1 %v7008_v34  ;;  %6405 = vmatpush3.bf16.msra.mxu0 %v7009_v35 }
0x1e2c   :  { %6694 = vmatprep.subr.bf16.mxu1 %v7613_v4  ;;  %6714 = vmatprep.subr.bf16.mxu0 %v7613_v4 }
0x1ee1   :  { %v5156_v44 = vpop.f32.mrb[64].mxu1  ;;  %v5199_v11 = vpop.f32.mrb[64].mxu0 }
0x1ee2   :  { %v8521_v39 = vadd.f32 %v5156_v44, %v4945_v50  ;;  %v8523_v51 = vadd.f32 %v5199_v11, %v4953_v38  ;;  %v5158_v48 = vpop.f32.mrb[65].mxu1  ;;  %v5201_v46 = vpop.f32.mrb[65].mxu0 }
0x1ee3   :  { %v8525_v49 = vadd.f32 %v5158_v48, %v4949_v41  ;;  %v8527_v52 = vadd.f32 %v5201_v46, %v4957_v14  ;;  %v5160_v55 = vpop.f32.mrb[66].mxu1  ;;  %v5203_v53 = vpop.f32.mrb[66].mxu0 }
0x1ee4   :  { %v5216_v56 = vmul.f32 0.044715, %v8521_v39  ;;  %v5218_v58 = vmul.f32 0.044715, %v8523_v51  ;;  %v5161_v54 = vadd.f32 %v5160_v55, %v4945_v50  ;;  %v5204_v19 = vadd.f32 %v5203_v53, %v4953_v38  ;;  %v5162_v57 = vpop.f32.mrb[67].mxu1  ;;  %v5205_v59 = vpop.f32.mrb[67].mxu0 }
0x1ee5   :  { %v5217_v60 = vmul.f32 0.044715, %v8525_v49  ;;  %v5219_v61 = vmul.f32 0.044715, %v8527_v52  ;;  %v8533_v26 = vadd.f32 %v5162_v57, %v4949_v41  ;;  %v8535_v37 = vadd.f32 %v5205_v59, %v4957_v14 }
0x1ee6   :  { %v5224_v62 = vmul.f32 %v5216_v56, %v8521_v39  ;;  %v5226_v45 = vmul.f32 %v5218_v58, %v8523_v51  ;;  %v5220_v28 = vmul.f32 0.044715, %v5161_v54  ;;  %v5222_v10 = vmul.f32 0.044715, %v5204_v19 }
0x1ee7   :  { %v5225_v63 = vmul.f32 %v5217_v60, %v8525_v49  ;;  %v5227_v0 = vmul.f32 %v5219_v61, %v8527_v52  ;;  %v5221_v2 = vmul.f32 0.044715, %v8533_v26  ;;  %v5223_v32 = vmul.f32 0.044715, %v8535_v37 }
0x1ee8   :  { %v5232_v47 = vmul.f32 %v5224_v62, %v8521_v39  ;;  %v5234_v30 = vmul.f32 %v5226_v45, %v8523_v51  ;;  %v5228_v3 = vmul.f32 %v5220_v28, %v5161_v54  ;;  %v5230_v6 = vmul.f32 %v5222_v10, %v5204_v19 }
0x1ee9   :  { %v5233_v7 = vmul.f32 %v5225_v63, %v8525_v49  ;;  %v5235_v20 = vmul.f32 %v5227_v0, %v8527_v52  ;;  %v5229_v8 = vmul.f32 %v5221_v2, %v8533_v26  ;;  %v5231_v21 = vmul.f32 %v5223_v32, %v8535_v37 }
0x1eea   :  { %v5240_v33 = vadd.f32 %v5232_v47, %v8521_v39  ;;  %v5242_v42 = vadd.f32 %v5234_v30, %v8523_v51  ;;  %v5236_v22 = vmul.f32 %v5228_v3, %v5161_v54  ;;  %v5238_v43 = vmul.f32 %v5230_v6, %v5204_v19 }
0x1eeb   :  { %v5237_v9 = vmul.f32 %v5229_v8, %v8533_v26  ;;  %v5239_v13 = vmul.f32 %v5231_v21, %v8535_v37  ;;  %v5241_v17 = vadd.f32 %v5233_v7, %v8525_v49  ;;  %v5243_v24 = vadd.f32 %v5235_v20, %v8527_v52 }
0x1eec   :  { %v5248_v1 = vmul.f32 0.7978846, %v5240_v33  ;;  %v5250_v15 = vmul.f32 0.7978846, %v5242_v42  ;;  %v5244_v27 = vadd.f32 %v5236_v22, %v5161_v54  ;;  %v5246_v16 = vadd.f32 %v5238_v43, %v5204_v19 }
0x1eed   :  { %v5245_v18 = vadd.f32 %v5237_v9, %v8533_v26  ;;  %v5249_v25 = vmul.f32 0.7978846, %v5241_v17  ;;  %v5247_v31 = vadd.f32 %v5239_v13, %v8535_v37  ;;  %v5251_v34 = vmul.f32 0.7978846, %v5243_v24 }
0x1eee   :  { %7122 = vtanh.f32 %v5248_v1  ;;  %v5252_v23 = vmul.f32 0.7978846, %v5244_v27  ;;  %v5254_v12 = vmul.f32 0.7978846, %v5246_v16  ;;  %v5208_v11 = vmul.f32 0.5, %v8521_v39 }
0x1eef   :  { %7124 = vtanh.f32 %v5250_v15  ;;  %v5253_v29 = vmul.f32 0.7978846, %v5245_v18  ;;  %v5255_v35 = vmul.f32 0.7978846, %v5247_v31  ;;  %v5212_v48 = vmul.f32 0.5, %v5161_v54 }
0x1ef0   :  { %7126 = vtanh.f32 %v5252_v23  ;;  %v5210_v53 = vmul.f32 0.5, %v8523_v51  ;;  %v5214_v56 = vmul.f32 0.5, %v5204_v19  ;;  %v5209_v59 = vmul.f32 0.5, %v8525_v49 }
0x1ef1   :  { %7128 = vtanh.f32 %v5254_v12  ;;  %v5213_v28 = vmul.f32 0.5, %v8533_v26  ;;  %v5211_v54 = vmul.f32 0.5, %v8527_v52  ;;  %v5215_v2 = vmul.f32 0.5, %v8535_v37  ;;  %v6165_v26 = vld [vmem:[#allocation25 + $0x1] ss:$0 sm:$0xff] }
0x1ef2   :  { %7130 = vtanh.f32 %v5249_v25 }
0x1ef3   :  { %7132 = vtanh.f32 %v5253_v29 }
0x1ef4   :  { %7134 = vtanh.f32 %v5251_v34 }
0x1ef5   :  { %7136 = vtanh.f32 %v5255_v35 }
0x1ef8   :  { %v7123_v36 = vpop.eup %7122 }
0x1ef9   :  { %v7125_v50 = vpop.eup %7124  ;;  %v5264_v38 = vadd.f32 1.0, %v7123_v36 }
0x1efa   :  { %v7127_v41 = vpop.eup %7126  ;;  %v5266_v14 = vadd.f32 1.0, %v7125_v50 }
0x1efb   :  { %v7129_v44 = vpop.eup %7128  ;;  %v5268_v46 = vadd.f32 1.0, %v7127_v41  ;;  %v5272_v61 = vmul.f32 %v5264_v38, %v5208_v11  ;;  %v7010_v38 = vld [vmem:[%s8642_s17] sm:$0xff]   ;;  %v7013_v41 = vld [vmem:[%s8642_s17 + $0x18] sm:$0xff]   ;;  %v7016_v11 = vld [vmem:[%s8642_s17 + $0x30] sm:$0xff]  }
0x1efc   :  { %v7131_v55 = vpop.eup %7130  ;;  %v5270_v58 = vadd.f32 1.0, %v7129_v44  ;;  %v5274_v63 = vmul.f32 %v5266_v14, %v5210_v53  ;;  %v7014_v14 = vld [vmem:[%s8642_s17 + $0x20] sm:$0xff]   ;;  %v7015_v44 = vld [vmem:[%s8642_s17 + $0x28] sm:$0xff]  }
0x1efd   :  { %v7133_v57 = vpop.eup %7132  ;;  %v5265_v60 = vadd.f32 1.0, %v7131_v55  ;;  %v5276_v62 = vmul.f32 %v5268_v46, %v5212_v48  ;;  %v7018_v48 = vld [vmem:[#allocation29] sm:$0xff]   ;;  %v7019_v46 = vld [vmem:[#allocation29 + $0x8] sm:$0xff]   ;;  %v7020_v53 = vld [vmem:[#allocation29 + $0x10] sm:$0xff]  }
0x1efe   :  { %v7135_v45 = vpop.eup %7134  ;;  %v5269_v10 = vadd.f32 1.0, %v7133_v57  ;;  %v5278_v0 = vmul.f32 %v5270_v58, %v5214_v56  ;;  %v7017_v55 = vld [vmem:[%s8642_s17 + $0x38] sm:$0xff]   ;;  %v7021_v56 = vld [vmem:[#allocation29 + $0x18] sm:$0xff]  }
0x1eff   :  { %v7137_v39 = vpop.eup %7136  ;;  %v5267_v51 = vadd.f32 1.0, %v7135_v45  ;;  %v5280_v19 = vpack.c.bf16 %v5276_v62, %v5272_v61  ;;  %v5273_v32 = vmul.f32 %v5265_v60, %v5209_v59 }
0x1f00   :  { %v5277_v47 = vmul.f32 %v5269_v10, %v5213_v28  ;;  %v5271_v30 = vadd.f32 1.0, %v7137_v39  ;;  %v5282_v49 = vpack.c.bf16 %v5278_v0, %v5274_v63  ;;  %v6198_v28 = vld [vmem:[#allocation26 + $0x1] ss:$0 sm:$0xff]  ;;  %v6199_v63 = vld [vmem:[#allocation28 + $0x1] ss:$0 sm:$0xff] }
0x1f01   :  { %v5275_v6 = vmul.f32 %v5267_v51, %v5211_v54 }
0x1f02   :  { %v5281_v3 = vpack.c.bf16 %v5277_v47, %v5273_v32  ;;  %v5279_v7 = vmul.f32 %v5271_v30, %v5215_v2 }
0x1f04   :  { %5581 = vmatprep.mubr.bf16.mxu1 %v5281_v3  ;;  %v5283_v20 = vpack.c.bf16 %v5279_v7, %v5275_v6 }
0x1f05   :  { %5582 = vmatmul.mubr.bf16.vlgmr.msra.gmra.mrb[68].mxu1 %v5280_v19 }
0x1f06   :  { %5622 = vmatprep.mubr.bf16.mxu0 %v5283_v20  ;;  %6710 = vmatprep.mubr.msk.bf16.mxu1 %vm7615_vm0, %v7613_v4  ;;  %v7022_v20 = vld [vmem:[#allocation29 + $0x20] sm:$0xff]  }
0x1f07   :  { %5623 = vmatmul.mubr.bf16.vlgmr.msra.gmra.mrb[68].mxu0 %v5282_v49  ;;  %6695 = vmatpush3.bf16.msra.mxu1 %v7010_v38 }
0x1f08   :  { %6730 = vmatprep.mubr.msk.bf16.mxu0 %vm7615_vm0, %v7613_v4  ;;  %6696 = vmatprep.subr.bf16.mxu1 %v7613_v4 }
0x1f09   :  { %6715 = vmatpush3.bf16.msra.mxu0 %v7018_v48 }
0x1f0a   :  { %6716 = vmatprep.subr.bf16.mxu0 %v7613_v4 }
0x1f0d   :  { %6717 = vmatpush3.bf16.msra.mxu0 %v7019_v46 }
0x1f0e   :  { %6718 = vmatprep.subr.bf16.mxu0 %v7613_v4 }
0x1f11   :  { %6719 = vmatpush3.bf16.msra.mxu0 %v7020_v53 }
0x1f12   :  { %6720 = vmatprep.subr.bf16.mxu0 %v7613_v4 }
0x1f15   :  { %6721 = vmatpush3.bf16.msra.mxu0 %v7021_v56 }
0x1f16   :  { %6722 = vmatprep.subr.bf16.mxu0 %v7613_v4 }
0x1f19   :  { %6723 = vmatpush3.bf16.msra.mxu0 %v7022_v20 }
0x1f1a   :  { %6724 = vmatprep.subr.bf16.mxu0 %v7613_v4 }
0x1fd8   :  { %v6384_v52 = vpop.f32.mrb[68].mxu1 }
0x1fd9   :  { %v6385_v37 = vpop.f32.mrb[69].mxu1 }
0x1fda   :  { %v6406_v8 = vpop.f32.mrb[68].mxu0  ;;  %v6386_v21 = vadd.f32 %v6385_v37, %v6384_v52  ;;  %v6387_v33 = vpop.f32.mrb[70].mxu1  ;;  %v7023_v52 = vld [vmem:[#allocation29 + $0x28] sm:$0xff]   ;;  %v7025_v37 = vld [vmem:[#allocation29 + $0x38] sm:$0xff]  }
0x1fdb   :  { %v6407_v42 = vpop.f32.mrb[69].mxu0  ;;  %v6388_v22 = vpop.f32.mrb[71].mxu1  ;;  %6725 = vmatpush3.bf16.msra.mxu0 %v7023_v52 }
0x1fdc   :  { %v5584_v43 = vadd.f32 %v6386_v21, %v6165_v26  ;;  %v6408_v9 = vadd.f32 %v6407_v42, %v6406_v8  ;;  %v6409_v13 = vpop.f32.mrb[70].mxu0  ;;  %v6389_v1 = vadd.f32 %v6388_v22, %v6387_v33  ;;  %6726 = vmatprep.subr.bf16.mxu0 %v7613_v4  ;;  %v6200_v8 = vld [vmem:[%s8643_s18] ss:$0 sm:$0xff]  ;;  %s7540_s18 = scalar_lea.vmem %s5920_s23, 32 }
0x1fdd   :  { %v6410_v15 = vpop.f32.mrb[71].mxu0  ;;  %p7541_p4 = scmp.ne.s32.totalorder %s5920_s23, %s7540_s18  ;;  %p7546_p6 = scmp.lt.s32.totalorder %s7540_s18, %s7540_s18 }
0x1fde   :  { %v5625_v27 = vadd.f32 %v6408_v9, %v5584_v43  ;;  %v5587_v16 = vadd.f32 %v6389_v1, %v6165_v26  ;;  %v6411_v17 = vadd.f32 %v6410_v15, %v6409_v13  ;;  %v7024_v26 = vld [vmem:[#allocation29 + $0x30] sm:$0xff]   ;;  %v5798_v9 = vld [vmem:[#allocation7] sm:$0x3] }
0x1fdf   :  { %6727 = vmatpush3.bf16.msra.mxu0 %v7024_v26  ;;  %p7547_p7 = por %p7546_p6, %p7545_p5 }
0x1fe0   :  { %v5628_v18 = vadd.f32 %v6411_v17, %v5587_v16  ;;  %v5631_v12 = vadd.f32 %v5625_v27, %v8508_v40  ;;  %v7011_v40 = vld [vmem:[%s8642_s17 + $0x8] sm:$0xff]   ;;  %6728 = vmatprep.subr.bf16.mxu0 %v7613_v4 }
0x1fe1   :  { %6697 = vmatpush3.bf16.msra.mxu1 %v7011_v40  ;;  %p7548_p8 = pnand %p7547_p7, %p7541_p4 }
0x1fe2   :  { %v5632_v23 = vadd.f32 %v5628_v18, %v8510_v5  ;;  %6698 = vmatprep.subr.bf16.mxu1 %v7613_v4  ;;  %v7012_v5 = vld [vmem:[%s8642_s17 + $0x10] sm:$0xff]  }
0x1fe3   :  { %6729 = vmatpush3.bf16.msra.mxu0 %v7025_v37 }
0x1fe4   :  { %5639 = vadd.xlane.f32.xlu0 %v5632_v23 }
0x1fe5   :  { %6699 = vmatpush3.bf16.msra.mxu1 %v7012_v5 }
0x1fe6   :  { %6700 = vmatprep.subr.bf16.mxu1 %v7613_v4 }
0x1fe8   :  { %5637 = vadd.xlane.f32.xlu0 %v5631_v12 }
0x1fe9   :  { %6701 = vmatpush3.bf16.msra.mxu1 %v7013_v41 }
0x1fea   :  { %6702 = vmatprep.subr.bf16.mxu1 %v7613_v4 }
0x1fed   :  { %6703 = vmatpush3.bf16.msra.mxu1 %v7014_v14 }
0x1fee   :  { %6704 = vmatprep.subr.bf16.mxu1 %v7613_v4 }
0x1ff1   :  { %6705 = vmatpush3.bf16.msra.mxu1 %v7015_v44 }
0x1ff2   :  { %6706 = vmatprep.subr.bf16.mxu1 %v7613_v4 }
0x1ff5   :  { %6707 = vmatpush3.bf16.msra.mxu1 %v7016_v11 }
0x1ff6   :  { %6708 = vmatprep.subr.bf16.mxu1 %v7613_v4  ;;  %v6209_v4 = vld [vmem:[%s8645_s20] ss:$0 sm:$0xff] }
0x1ff9   :  { %6709 = vmatpush3.bf16.msra.mxu1 %v7017_v55 }
0x2071   :  { %v5640_v24 = vpop.xlane.xlu0 %5639 }
0x2072   :  { %v5642_v25 = vmul.f32 0.0078125, %v5640_v24 }
0x2074   :  { %v5644_v29 = vsub.f32 %v5632_v23, %v5642_v25 }
0x2075   :  { %v5638_v31 = vpop.xlane.xlu0 %5637 }
0x2076   :  { %v5641_v34 = vmul.f32 0.0078125, %v5638_v31  ;;  %v5646_v35 = vmul.f32 %v5644_v29, %v5644_v29 }
0x2078   :  { %v5643_v36 = vsub.f32 %v5631_v12, %v5641_v34  ;;  %5649 = vadd.xlane.f32.xlu0 %v5646_v35 }
0x207a   :  { %v5645_v50 = vmul.f32 %v5643_v36, %v5643_v36 }
0x207c   :  { %5647 = vadd.xlane.f32.xlu1 %v5645_v50 }
0x2105   :  { %v5650_v58 = vpop.xlane.xlu0 %5649 }
0x2106   :  { %v5652_v57 = vmul.f32 0.0078125, %v5650_v58 }
0x2108   :  { %v5654_v59 = vadd.f32 1e-12, %v5652_v57 }
0x2109   :  { %v5648_v60 = vpop.xlane.xlu1 %5647 }
0x210a   :  { %7138 = vrsqrt.f32 %v5654_v59  ;;  %v5651_v61 = vmul.f32 0.0078125, %v5648_v60 }
0x210c   :  { %v5653_v62 = vadd.f32 1e-12, %v5651_v61 }
0x210e   :  { %7140 = vrsqrt.f32 %v5653_v62 }
0x2114   :  { %v7139_v45 = vpop.eup %7138 }
0x2115   :  { %v5658_v10 = vmul.f32 %v7139_v45, %v5644_v29 }
0x2117   :  { %v5666_v0 = vmul.f32 %v6198_v28, %v5658_v10 }
0x2118   :  { %v7141_v39 = vpop.eup %7140 }
0x2119   :  { %v5657_v54 = vmul.f32 %v7141_v39, %v5643_v36  ;;  %v5674_v2 = vadd.f32 %v6199_v63, %v5666_v0 }
0x211b   :  { %v5665_v51 = vmul.f32 %v6198_v28, %v5657_v54  ;;  %v5676_v19 = vpack.c.bf16 %v5674_v2, %v5674_v2 }
0x211d   :  { %v5673_v32 = vadd.f32 %v6199_v63, %v5665_v51  ;;  %v5703_v47 = vunpack.c.l.b16 %v5676_v19 }
0x211f   :  { %v5675_v30 = vpack.c.bf16 %v5673_v32, %v5673_v32  ;;  %v5704_v3 = vrot.slane %v5703_v47, 7 }
0x2121   :  { %v5702_v49 = vunpack.c.l.b16 %v5675_v30 }
0x2123   :  { %v5706_v6 = vsel %vm5705_vm3, %v5704_v3, %v5702_v49 }
0x2124   :  { %v5707_v7 = vpack.c.b16 %v5706_v6, %v5706_v6 }
0x2126   :  { %6711 = vmatmul.mubr.bf16.vlgmr.msra.gmra.mrb[72].mxu1 %v5707_v7 }
0x21f9   :  { %v5791_v21 = vpop.f32.mrb[72].mxu1 }
0x21fa   :  { %v5792_v33 = vadd.f32 %v6200_v8, %v5791_v21  ;;  %v6712_v42 = vpop.f32.mrb[73].mxu1 }
0x21fb   :  { %v5794_v22 = vpop.f32.mrb[74].mxu1 }
0x21fc   :  { %7142 = vtanh.f32 %v5792_v33  ;;  %v6713_v43 = vpop.f32.mrb[75].mxu1 }
0x2206   :  { %v7143_v13 = vpop.eup %7142 }
0x2207   :  { %v5799_v1 = vmul.f32 %v7143_v13, %v5798_v9 }
0x2209   :  { %v5800_v15 = vpack.c.bf16 %v5799_v1, %v5799_v1 }
0x220b   :  { %6731 = vmatmul.mubr.bf16.vlgmr.msra.gmra.mrb[72].mxu0 %v5800_v15 }
0x22de   :  { %v5906_v27 = vpop.f32.mrb[72].mxu0 }
0x22df   :  { %v5907_v16 = vadd.f32 %v6209_v4, %v5906_v27  ;;  %v6732_v17 = vpop.f32.mrb[73].mxu0 }
0x22e0   :  { %v5909_v18 = vpop.f32.mrb[74].mxu0 }
0x22e1   :  { %5912 = vst [vmem:[#allocation31] sm:$0x3] %v5907_v16  ;;  %v6733_v23 = vpop.f32.mrb[75].mxu0 }
0x22e2   :  { %7551 = shalt.err (!%p7548_p8)
}
0x22e3   :  { %s8673_s9 = sld [smem:[#allocation49_spill]] }
0x22e9   :  { %s7552_s20 = scalar_lea.hbm %s8673_s9, 32 }
0x22ea   :  { %p7553_p9 = scmp.ne.s32.totalorder %s8673_s9, %s7552_s20  ;;  %p7556_p10 = scmp.lt.u32.totalorder %s7552_s20, %s8673_s9 }
0x22ec   :  { %p7558_p11 = pnand %p7556_p10, %p7553_p9 }
0x22ee   :  { %7561 = shalt.err (!%p7558_p11)
}
0x22ef   :  { %5922 = dma.vmem_to_hbm [thread:$0]  %s5920_s23, 32, %s8673_s9, [#allocation4]  }
0x22f0   :  { %7582 = dma.done.wait [#allocation4], 32  }
0x22f1   :  { %7583 = vsyncadd [#allocation4], 4294967264 }
0x22f2   :  { %5926 = vsyncpa [#allocation3], 1 }
0x22f3   :  { %5927 = vsyncpa [#allocation6], 1 }
0x22f4   :  { %5928 = vsyncpa [#allocation9], 1 }
0x22f5   :  { %5929 = vsyncpa [#allocation12], 1 }
0x22f6   :  { %5930 = vsyncpa [#allocation15], 1 }
0x22f7   :  { %5931 = vsyncpa [#allocation18], 1 }
0x22f8   :  { %5932 = vsyncpa [#allocation21], 1 }
0x22f9   :  { %5933 = vsyncpa [#allocation24], 1 }
0x22fa   :  { %5934 = vsyncpa [#allocation27], 1 }
0x22fb   :  { %5935 = vsyncpa [#allocation30], 1 }
0x22fc   :  { %5936 = vsyncpa [#allocation4], 1 }

</bundles_post_ra>
